<compile_context>
chip_gen: v7x
topology: tpu7x:2x2x1
jax: 0.10.0
libtpu: 0.0.40
codegen_flags: <defaults>
</compile_context>

<pallas_src>
import jax
import jax.numpy as jnp
from jax.experimental import pallas as pl
from jax.experimental.pallas import tpu as pltpu

_EPS = 1e-5


def _round_up(n, m):
    return -(-n // m) * m


# ---------------------------------------------------------------------------
# Weight preparation (conv+BN folding, channels-last, per-tap slabs)
# ---------------------------------------------------------------------------

def _fold_conv3_bn(p, eps=_EPS):
    """Conv1d(k=3,pad=1)+BN(inference) -> bf16 (3, C_in, C_out) per-tap slabs + f32 shift row."""
    c_out, c_in, k = p['w'].shape
    assert k == 3
    s = p['gamma'] / jnp.sqrt(p['var'] + eps)
    shift = p['beta'] - s * p['mean'] + s * p['bias']
    w = (jnp.transpose(p['w'], (2, 1, 0)) * s[None, None, :]).astype(jnp.bfloat16)
    return {'w': w, 's': shift.reshape(1, c_out).astype(jnp.float32)}


def _fold_conv1_bn(p, eps=_EPS):
    """Conv1d(k=1)+BN -> bf16 (C_in, C_out) + f32 shift row."""
    c_out, c_in, k = p['w'].shape
    assert k == 1
    s = p['gamma'] / jnp.sqrt(p['var'] + eps)
    shift = p['beta'] - s * p['mean'] + s * p['bias']
    w = (p['w'][:, :, 0].T * s[None, :]).astype(jnp.bfloat16)
    return {'w': w, 's': shift.reshape(1, c_out).astype(jnp.float32)}


def _fold_stem_bn(p, eps=_EPS):
    """Stem conv (k=7, stride 2)+BN: flattened (K*C_in rounded to 16, C_out) im2col weight."""
    c_out, c_in, k = p['w'].shape
    s = p['gamma'] / jnp.sqrt(p['var'] + eps)
    shift = p['beta'] - s * p['mean'] + s * p['bias']
    w = (jnp.transpose(p['w'], (2, 1, 0)) * s[None, None, :]).reshape(k * c_in, c_out)
    kc_pad = _round_up(k * c_in, 16)
    w = jnp.pad(w, ((0, kc_pad - k * c_in), (0, 0))).astype(jnp.bfloat16)
    return {'w': w, 's': shift.reshape(1, c_out).astype(jnp.float32)}


def _fold_fc(fc, eps=_EPS):
    s = fc['gamma'] / jnp.sqrt(fc['var'] + eps)
    shift = fc['beta'] - s * fc['mean'] + s * fc['b1']
    nc = fc['w2'].shape[0]
    nc_pad = _round_up(nc, 128)                      # lane-dense padded output
    w2 = jnp.pad(fc['w2'].T, ((0, 0), (0, nc_pad - nc)))
    b2 = jnp.pad(fc['b2'], (0, nc_pad - nc))
    return {'w1': (fc['w1'].T * s[None, :]).astype(jnp.bfloat16),   # (C, H)
            's1': shift.reshape(1, -1).astype(jnp.float32),         # (1, H)
            'w2': w2.astype(jnp.bfloat16),                          # (H, nc_pad)
            'b2': b2.reshape(1, nc_pad).astype(jnp.float32)}        # (1, nc_pad)


def _prepare_weights(params):
    prep = {'conv1': _fold_stem_bn(params['conv1'])}
    blocks = []
    for layer in ('layer1', 'layer2', 'layer3'):
        for blk in params[layer]:
            d = {'c1': _fold_conv3_bn(blk['conv1']),
                 'c2': _fold_conv3_bn(blk['conv2'])}
            if blk['shortcut'] is not None:
                d['sc'] = _fold_conv1_bn(blk['shortcut'])
            blocks.append(d)
    prep['blocks'] = blocks
    prep['fc'] = _fold_fc(params['fc'])
    return prep


# ---------------------------------------------------------------------------
# Fused forward kernel (stem + maxpool + 9 residual blocks + GAP/fc head)
# ---------------------------------------------------------------------------

def _make_fused_kernel(treedef, n_weights, m_rows, lp):
    inv_lp = 1.0 / float(lp)

    def kernel(x1e_ref, x1o_ref, mlo_ref, mhi_ref, pool_ref, *rest):
        w_refs = rest[:n_weights]
        o_ref = rest[n_weights]
        wt = jax.tree_util.tree_unflatten(treedef, w_refs)

        mlo = mlo_ref[...]       # (M,1) f32: 0 where l == 0     within each batch element
        mhi = mhi_ref[...]       # (M,1) f32: 0 where l == lp-1  within each batch element

        def shift_prev(v):       # v[l-1] per element; zeros at l == 0 (XLU roll + VPU mask)
            return pltpu.roll(v, 1, axis=0) * mlo

        def shift_next(v):       # v[l+1] per element; zeros at l == lp-1
            return pltpu.roll(v, m_rows - 1, axis=0) * mhi

        def conv3x3_bn(x, p, relu):
            # K=3 / stride 1 / pad 1 conv + folded BN as three per-tap matmuls accumulated
            # in f32; shifted taps come from roll+mask, not MXU shift matmuls, and no
            # (M, 3*Cin) im2col concat is materialized.
            w = p['w']
            xb = x.astype(jnp.bfloat16)
            xm1 = shift_prev(x).astype(jnp.bfloat16)
            xp1 = shift_next(x).astype(jnp.bfloat16)
            y = jnp.dot(xm1, w[0], preferred_element_type=jnp.float32)
            y = y + jnp.dot(xb, w[1], preferred_element_type=jnp.float32)
            y = y + jnp.dot(xp1, w[2], preferred_element_type=jnp.float32)
            y = y + p['s'][...]
            return jnp.maximum(y, 0.0) if relu else y

        def conv1x1_bn(x, p):
            return jnp.dot(x.astype(jnp.bfloat16), p['w'][...],
                           preferred_element_type=jnp.float32) + p['s'][...]

        # --- stem conv (K=7, stride 2) + BN + ReLU at even / odd output positions ---
        w1 = wt['conv1']['w'][...]
        s1 = wt['conv1']['s'][...]
        e = jnp.maximum(jnp.dot(x1e_ref[...], w1,
                                preferred_element_type=jnp.float32) + s1, 0.0)
        o = jnp.maximum(jnp.dot(x1o_ref[...], w1,
                                preferred_element_type=jnp.float32) + s1, 0.0)

        # --- MaxPool1d(3,2,1): out[l] = max(o[l-1], e[l], o[l]).  Post-ReLU values are >= 0,
        # so the zeros shift_prev() injects at l == 0 are a safe stand-in for the -inf pad. ---
        x = jnp.maximum(jnp.maximum(e, o), shift_prev(o))            # (M, 32) f32

        # --- residual blocks (BN folded into weights, shortcut fused) ---
        for blk in wt['blocks']:
            h = conv3x3_bn(x, blk['c1'], relu=True)
            sc = conv1x1_bn(x, blk['sc']) if 'sc' in blk else x
            x = jnp.maximum(conv3x3_bn(h, blk['c2'], relu=False) + sc, 0.0)

        # --- head: per-element global avg pool (one small segment-sum matmul), fc1 + bn_fc1
        # + ReLU, dropout = identity (eval), fc2; stored as a lane-dense (TB, 128) tile ---
        fc = wt['fc']
        feat = jnp.dot(pool_ref[...], x.astype(jnp.bfloat16),
                       preferred_element_type=jnp.float32) * inv_lp   # (TB, 128)
        h = jnp.maximum(jnp.dot(feat.astype(jnp.bfloat16), fc['w1'][...],
                                preferred_element_type=jnp.float32) + fc['s1'][...], 0.0)
        out = jnp.dot(h.astype(jnp.bfloat16), fc['w2'][...],
                      preferred_element_type=jnp.float32) + fc['b2'][...]
        o_ref[...] = out.astype(o_ref.dtype)

    return kernel


def _choose_tiling(b, lp, rows_target):
    """Pick batch tile TB so each grid step runs matmuls with M = TB*lp rows."""
    if b * lp <= rows_target:                 # everything fits in one fat grid step
        b_pad = b
        while (b_pad * lp) % 8:               # keep M sublane-aligned
            b_pad += 1
        return b_pad, b_pad
    tb = max(8, (rows_target // lp) // 8 * 8)  # multiple of 8 -> aligned blocks for grid > 1
    b_pad = _round_up(b, tb)
    return tb, b_pad


def resnet1dcnn_forward(params, x, *, rows_target=256):
    """x: (B, sequence_length, input_channels) -> (B, num_classes) logits.

    rows_target: MXU row fill per grid step (256 for v6e/v7x; 128 is enough on v5e).
    """
    b, seq, c_in = x.shape
    prep = _prepare_weights(params)
    nc = params['fc']['w2'].shape[0]
    nc_pad = prep['fc']['w2'].shape[1]

    # Stem-conv im2col (tiny, host-side, once). Rows are split into even / odd conv output
    # positions so the fused MaxPool1d(3,2,1) needs no strided access inside the kernel.
    k_stem, s_stem, p_stem = 7, 2, 3
    l1 = (seq + 2 * p_stem - k_stem) // s_stem + 1
    assert l1 % 2 == 0, "stem conv output length must be even for the fused maxpool"
    lp = l1 // 2
    kc_pad = prep['conv1']['w'].shape[0]

    tb, b_pad = _choose_tiling(b, lp, rows_target)
    m_rows = tb * lp
    grid = (b_pad // tb,)

    xpad = jnp.pad(x.astype(jnp.float32), ((0, 0), (p_stem, p_stem), (0, 0)))
    taps = [xpad[:, k:k + s_stem * (l1 - 1) + 1:s_stem, :] for k in range(k_stem)]
    x1 = jnp.concatenate(taps, axis=2)                                # (B, l1, K*C_in)
    x1 = jnp.pad(x1, ((0, b_pad - b), (0, 0), (0, kc_pad - k_stem * c_in)))
    x1e = x1[:, 0::2, :].reshape(b_pad * lp, kc_pad).astype(jnp.bfloat16)   # even positions
    x1o = x1[:, 1::2, :].reshape(b_pad * lp, kc_pad).astype(jnp.bfloat16)   # odd positions

    # Per-tile constants, hoisted out of the kernel (no per-step iota/where rebuild).
    l_idx = jnp.arange(m_rows) % lp
    mask_lo = (l_idx != 0).astype(jnp.float32).reshape(m_rows, 1)
    mask_hi = (l_idx != lp - 1).astype(jnp.float32).reshape(m_rows, 1)
    pool = (jnp.arange(m_rows)[None, :] // lp ==
            jnp.arange(tb)[:, None]).astype(jnp.bfloat16)             # (TB, M) segment-sum

    flat, treedef = jax.tree_util.tree_flatten(prep)
    kernel = _make_fused_kernel(treedef, len(flat), m_rows, lp)

    def _const_map(ndim):
        return lambda i: (0,) * ndim

    in_specs = [pl.BlockSpec((m_rows, kc_pad), lambda i: (i, 0)),     # x1e tile
                pl.BlockSpec((m_rows, kc_pad), lambda i: (i, 0)),     # x1o tile
                pl.BlockSpec((m_rows, 1), _const_map(2)),             # mask_lo
                pl.BlockSpec((m_rows, 1), _const_map(2)),             # mask_hi
                pl.BlockSpec((tb, m_rows), _const_map(2))]            # pooling matrix
    # Weights: full-array blocks with constant index maps -> fetched once, VMEM-resident.
    in_specs += [pl.BlockSpec(a.shape, _const_map(a.ndim)) for a in flat]

    out = pl.pallas_call(
        kernel,
        out_shape=jax.ShapeDtypeStruct((b_pad, nc_pad), jnp.float32),
        grid=grid,
        in_specs=in_specs,
        out_specs=pl.BlockSpec((tb, nc_pad), lambda i: (i, 0)),
        compiler_params=pltpu.CompilerParams(
            dimension_semantics=("parallel",)),     # batch tiles across TensorCores on v7x
    )(x1e, x1o, mask_lo, mask_hi, pool, *flat)
    return out[:b, :nc]


# ---------------------------------------------------------------------------
# Deterministic parameter initialization
# ---------------------------------------------------------------------------

def _conv_bn_init(key, c_in, c_out, k):
    ks = jax.random.split(key, 6)
    fan_in = float(c_in * k)
    return dict(
        w=jax.random.normal(ks[0], (c_out, c_in, k), jnp.float32) / jnp.sqrt(fan_in),
        bias=0.05 * jax.random.normal(ks[1], (c_out,), jnp.float32),
        gamma=1.0 + 0.1 * jax.random.normal(ks[2], (c_out,), jnp.float32),
        beta=0.05 * jax.random.normal(ks[3], (c_out,), jnp.float32),
        mean=0.05 * jax.random.normal(ks[4], (c_out,), jnp.float32),
        var=1.0 + 0.2 * jax.random.uniform(ks[5], (c_out,), jnp.float32),
    )


def _block_init(key, c_in, c_out):
    k1, k2, k3 = jax.random.split(key, 3)
    return dict(
        conv1=_conv_bn_init(k1, c_in, c_out, 3),
        conv2=_conv_bn_init(k2, c_out, c_out, 3),
        shortcut=_conv_bn_init(k3, c_in, c_out, 1) if c_in != c_out else None,
    )


def init_model(key, input_channels, num_classes):
    keys = jax.random.split(key, 11)
    params = dict(conv1=_conv_bn_init(keys[0], input_channels, 32, 7))
    params['layer1'] = [_block_init(keys[1], 32, 32),
                        _block_init(keys[2], 32, 32)]
    params['layer2'] = [_block_init(keys[3], 32, 64),
                        _block_init(keys[4], 64, 64),
                        _block_init(keys[5], 64, 64)]
    params['layer3'] = [_block_init(keys[6], 64, 128),
                        _block_init(keys[7], 128, 128),
                        _block_init(keys[8], 128, 128),
                        _block_init(keys[9], 128, 128)]
    flatten_size = 128  # adaptive_avg_pool1d(.,1) on (1,128,Lx) -> numel == 128
    kf = jax.random.split(keys[10], 8)
    params['fc'] = dict(
        w1=jax.random.normal(kf[0], (128, flatten_size), jnp.float32) / jnp.sqrt(float(flatten_size)),
        b1=0.05 * jax.random.normal(kf[1], (128,), jnp.float32),
        gamma=1.0 + 0.1 * jax.random.normal(kf[2], (128,), jnp.float32),
        beta=0.05 * jax.random.normal(kf[3], (128,), jnp.float32),
        mean=0.05 * jax.random.normal(kf[4], (128,), jnp.float32),
        var=1.0 + 0.2 * jax.random.uniform(kf[5], (128,), jnp.float32),
        w2=jax.random.normal(kf[6], (num_classes, 128), jnp.float32) / jnp.sqrt(128.0),
        b2=0.05 * jax.random.normal(kf[7], (num_classes,), jnp.float32),
    )
    return params


# ---------------------------------------------------------------------------

if __name__ == "__main__":
    input_channels = 4
    sequence_length = 16
    num_classes = 5
    batch = 2

    key = jax.random.PRNGKey(0)
    kp, kx = jax.random.split(key)
    params = init_model(kp, input_channels, num_classes)
    x = jax.random.normal(kx, (batch, sequence_length, input_channels), jnp.float32)

    fwd = jax.jit(resnet1dcnn_forward)
    out = jax.block_until_ready(fwd(params, x))
    assert out.shape == (batch, num_classes), out.shape
    assert bool(jnp.all(jnp.isfinite(out)))
    print("KERNEL_OK")
</pallas_src>

<mosaic_0001>
module attributes {stable_mosaic.version = 11 : i64} {
  func.func @kernel(%arg0: i32, %arg1: memref<8x32xbf16, #tpu.memory_space<vmem>>, %arg2: memref<8x32xbf16, #tpu.memory_space<vmem>>, %arg3: memref<8x1xf32, #tpu.memory_space<vmem>>, %arg4: memref<8x1xf32, #tpu.memory_space<vmem>>, %arg5: memref<2x8xbf16, #tpu.memory_space<vmem>>, %arg6: memref<1x32xf32, #tpu.memory_space<vmem>>, %arg7: memref<3x32x32xbf16, #tpu.memory_space<vmem>>, %arg8: memref<1x32xf32, #tpu.memory_space<vmem>>, %arg9: memref<3x32x32xbf16, #tpu.memory_space<vmem>>, %arg10: memref<1x32xf32, #tpu.memory_space<vmem>>, %arg11: memref<3x32x32xbf16, #tpu.memory_space<vmem>>, %arg12: memref<1x32xf32, #tpu.memory_space<vmem>>, %arg13: memref<3x32x32xbf16, #tpu.memory_space<vmem>>, %arg14: memref<1x64xf32, #tpu.memory_space<vmem>>, %arg15: memref<3x32x64xbf16, #tpu.memory_space<vmem>>, %arg16: memref<1x64xf32, #tpu.memory_space<vmem>>, %arg17: memref<3x64x64xbf16, #tpu.memory_space<vmem>>, %arg18: memref<1x64xf32, #tpu.memory_space<vmem>>, %arg19: memref<32x64xbf16, #tpu.memory_space<vmem>>, %arg20: memref<1x64xf32, #tpu.memory_space<vmem>>, %arg21: memref<3x64x64xbf16, #tpu.memory_space<vmem>>, %arg22: memref<1x64xf32, #tpu.memory_space<vmem>>, %arg23: memref<3x64x64xbf16, #tpu.memory_space<vmem>>, %arg24: memref<1x64xf32, #tpu.memory_space<vmem>>, %arg25: memref<3x64x64xbf16, #tpu.memory_space<vmem>>, %arg26: memref<1x64xf32, #tpu.memory_space<vmem>>, %arg27: memref<3x64x64xbf16, #tpu.memory_space<vmem>>, %arg28: memref<1x128xf32, #tpu.memory_space<vmem>>, %arg29: memref<3x64x128xbf16, #tpu.memory_space<vmem>>, %arg30: memref<1x128xf32, #tpu.memory_space<vmem>>, %arg31: memref<3x128x128xbf16, #tpu.memory_space<vmem>>, %arg32: memref<1x128xf32, #tpu.memory_space<vmem>>, %arg33: memref<64x128xbf16, #tpu.memory_space<vmem>>, %arg34: memref<1x128xf32, #tpu.memory_space<vmem>>, %arg35: memref<3x128x128xbf16, #tpu.memory_space<vmem>>, %arg36: memref<1x128xf32, #tpu.memory_space<vmem>>, %arg37: memref<3x128x128xbf16, #tpu.memory_space<vmem>>, %arg38: memref<1x128xf32, #tpu.memory_space<vmem>>, %arg39: memref<3x128x128xbf16, #tpu.memory_space<vmem>>, %arg40: memref<1x128xf32, #tpu.memory_space<vmem>>, %arg41: memref<3x128x128xbf16, #tpu.memory_space<vmem>>, %arg42: memref<1x128xf32, #tpu.memory_space<vmem>>, %arg43: memref<3x128x128xbf16, #tpu.memory_space<vmem>>, %arg44: memref<1x128xf32, #tpu.memory_space<vmem>>, %arg45: memref<3x128x128xbf16, #tpu.memory_space<vmem>>, %arg46: memref<1x32xf32, #tpu.memory_space<vmem>>, %arg47: memref<32x32xbf16, #tpu.memory_space<vmem>>, %arg48: memref<1x128xf32, #tpu.memory_space<vmem>>, %arg49: memref<1x128xf32, #tpu.memory_space<vmem>>, %arg50: memref<128x128xbf16, #tpu.memory_space<vmem>>, %arg51: memref<128x128xbf16, #tpu.memory_space<vmem>>, %arg52: memref<2x128xf32, #tpu.memory_space<vmem>>) attributes {dimension_semantics = [#tpu.dimension_semantics<parallel>], iteration_bounds = array<i64: 1>, scalar_prefetch = 0 : i64, scratch_operands = 0 : i64, tpu.core_type = #tpu.core_type<tc>, window_params = [{transform_indices = @transform_0, window_bounds = array<i64: 8, 32>}, {transform_indices = @transform_1, window_bounds = array<i64: 8, 32>}, {pipeline_mode = #tpu.pipeline_mode<synchronous>, transform_indices = @transform_2, window_bounds = array<i64: 8, 1>}, {pipeline_mode = #tpu.pipeline_mode<synchronous>, transform_indices = @transform_3, window_bounds = array<i64: 8, 1>}, {pipeline_mode = #tpu.pipeline_mode<synchronous>, transform_indices = @transform_4, window_bounds = array<i64: 2, 8>}, {pipeline_mode = #tpu.pipeline_mode<synchronous>, transform_indices = @transform_5, window_bounds = array<i64: 1, 32>}, {pipeline_mode = #tpu.pipeline_mode<synchronous>, transform_indices = @transform_6, window_bounds = array<i64: 3, 32, 32>}, {pipeline_mode = #tpu.pipeline_mode<synchronous>, transform_indices = @transform_7, window_bounds = array<i64: 1, 32>}, {pipeline_mode = #tpu.pipeline_mode<synchronous>, transform_indices = @transform_8, window_bounds = array<i64: 3, 32, 32>}, {pipeline_mode = #tpu.pipeline_mode<synchronous>, transform_indices = @transform_9, window_bounds = array<i64: 1, 32>}, {pipeline_mode = #tpu.pipeline_mode<synchronous>, transform_indices = @transform_10, window_bounds = array<i64: 3, 32, 32>}, {pipeline_mode = #tpu.pipeline_mode<synchronous>, transform_indices = @transform_11, window_bounds = array<i64: 1, 32>}, {pipeline_mode = #tpu.pipeline_mode<synchronous>, transform_indices = @transform_12, window_bounds = array<i64: 3, 32, 32>}, {pipeline_mode = #tpu.pipeline_mode<synchronous>, transform_indices = @transform_13, window_bounds = array<i64: 1, 64>}, {pipeline_mode = #tpu.pipeline_mode<synchronous>, transform_indices = @transform_14, window_bounds = array<i64: 3, 32, 64>}, {pipeline_mode = #tpu.pipeline_mode<synchronous>, transform_indices = @transform_15, window_bounds = array<i64: 1, 64>}, {pipeline_mode = #tpu.pipeline_mode<synchronous>, transform_indices = @transform_16, window_bounds = array<i64: 3, 64, 64>}, {pipeline_mode = #tpu.pipeline_mode<synchronous>, transform_indices = @transform_17, window_bounds = array<i64: 1, 64>}, {pipeline_mode = #tpu.pipeline_mode<synchronous>, transform_indices = @transform_18, window_bounds = array<i64: 32, 64>}, {pipeline_mode = #tpu.pipeline_mode<synchronous>, transform_indices = @transform_19, window_bounds = array<i64: 1, 64>}, {pipeline_mode = #tpu.pipeline_mode<synchronous>, transform_indices = @transform_20, window_bounds = array<i64: 3, 64, 64>}, {pipeline_mode = #tpu.pipeline_mode<synchronous>, transform_indices = @transform_21, window_bounds = array<i64: 1, 64>}, {pipeline_mode = #tpu.pipeline_mode<synchronous>, transform_indices = @transform_22, window_bounds = array<i64: 3, 64, 64>}, {pipeline_mode = #tpu.pipeline_mode<synchronous>, transform_indices = @transform_23, window_bounds = array<i64: 1, 64>}, {pipeline_mode = #tpu.pipeline_mode<synchronous>, transform_indices = @transform_24, window_bounds = array<i64: 3, 64, 64>}, {pipeline_mode = #tpu.pipeline_mode<synchronous>, transform_indices = @transform_25, window_bounds = array<i64: 1, 64>}, {pipeline_mode = #tpu.pipeline_mode<synchronous>, transform_indices = @transform_26, window_bounds = array<i64: 3, 64, 64>}, {pipeline_mode = #tpu.pipeline_mode<synchronous>, transform_indices = @transform_27, window_bounds = array<i64: 1, 128>}, {pipeline_mode = #tpu.pipeline_mode<synchronous>, transform_indices = @transform_28, window_bounds = array<i64: 3, 64, 128>}, {pipeline_mode = #tpu.pipeline_mode<synchronous>, transform_indices = @transform_29, window_bounds = array<i64: 1, 128>}, {pipeline_mode = #tpu.pipeline_mode<synchronous>, transform_indices = @transform_30, window_bounds = array<i64: 3, 128, 128>}, {pipeline_mode = #tpu.pipeline_mode<synchronous>, transform_indices = @transform_31, window_bounds = array<i64: 1, 128>}, {pipeline_mode = #tpu.pipeline_mode<synchronous>, transform_indices = @transform_32, window_bounds = array<i64: 64, 128>}, {pipeline_mode = #tpu.pipeline_mode<synchronous>, transform_indices = @transform_33, window_bounds = array<i64: 1, 128>}, {pipeline_mode = #tpu.pipeline_mode<synchronous>, transform_indices = @transform_34, window_bounds = array<i64: 3, 128, 128>}, {pipeline_mode = #tpu.pipeline_mode<synchronous>, transform_indices = @transform_35, window_bounds = array<i64: 1, 128>}, {pipeline_mode = #tpu.pipeline_mode<synchronous>, transform_indices = @transform_36, window_bounds = array<i64: 3, 128, 128>}, {pipeline_mode = #tpu.pipeline_mode<synchronous>, transform_indices = @transform_37, window_bounds = array<i64: 1, 128>}, {pipeline_mode = #tpu.pipeline_mode<synchronous>, transform_indices = @transform_38, window_bounds = array<i64: 3, 128, 128>}, {pipeline_mode = #tpu.pipeline_mode<synchronous>, transform_indices = @transform_39, window_bounds = array<i64: 1, 128>}, {pipeline_mode = #tpu.pipeline_mode<synchronous>, transform_indices = @transform_40, window_bounds = array<i64: 3, 128, 128>}, {pipeline_mode = #tpu.pipeline_mode<synchronous>, transform_indices = @transform_41, window_bounds = array<i64: 1, 128>}, {pipeline_mode = #tpu.pipeline_mode<synchronous>, transform_indices = @transform_42, window_bounds = array<i64: 3, 128, 128>}, {pipeline_mode = #tpu.pipeline_mode<synchronous>, transform_indices = @transform_43, window_bounds = array<i64: 1, 128>}, {pipeline_mode = #tpu.pipeline_mode<synchronous>, transform_indices = @transform_44, window_bounds = array<i64: 3, 128, 128>}, {pipeline_mode = #tpu.pipeline_mode<synchronous>, transform_indices = @transform_45, window_bounds = array<i64: 1, 32>}, {pipeline_mode = #tpu.pipeline_mode<synchronous>, transform_indices = @transform_46, window_bounds = array<i64: 32, 32>}, {pipeline_mode = #tpu.pipeline_mode<synchronous>, transform_indices = @transform_47, window_bounds = array<i64: 1, 128>}, {pipeline_mode = #tpu.pipeline_mode<synchronous>, transform_indices = @transform_48, window_bounds = array<i64: 1, 128>}, {pipeline_mode = #tpu.pipeline_mode<synchronous>, transform_indices = @transform_49, window_bounds = array<i64: 128, 128>}, {pipeline_mode = #tpu.pipeline_mode<synchronous>, transform_indices = @transform_50, window_bounds = array<i64: 128, 128>}, {transform_indices = @transform_51, window_bounds = array<i64: 2, 128>}]} {
    %c0 = arith.constant 0 : index
    %c0_0 = arith.constant 0 : index
    %0 = vector.load %arg3[%c0, %c0_0] : memref<8x1xf32, #tpu.memory_space<vmem>>, vector<8x1xf32>
    %c0_1 = arith.constant 0 : index
    %c0_2 = arith.constant 0 : index
    %1 = vector.load %arg4[%c0_1, %c0_2] : memref<8x1xf32, #tpu.memory_space<vmem>>, vector<8x1xf32>
    %c0_3 = arith.constant 0 : index
    %c0_4 = arith.constant 0 : index
    %2 = vector.load %arg47[%c0_3, %c0_4] : memref<32x32xbf16, #tpu.memory_space<vmem>>, vector<32x32xbf16>
    %c0_5 = arith.constant 0 : index
    %c0_6 = arith.constant 0 : index
    %3 = vector.load %arg46[%c0_5, %c0_6] : memref<1x32xf32, #tpu.memory_space<vmem>>, vector<1x32xf32>
    %c0_7 = arith.constant 0 : index
    %c0_8 = arith.constant 0 : index
    %4 = vector.load %arg1[%c0_7, %c0_8] : memref<8x32xbf16, #tpu.memory_space<vmem>>, vector<8x32xbf16>
    %cst = arith.constant dense<0.000000e+00> : vector<8x32xf32>
    %5 = tpu.matmul %4, %2, %cst {dimension_numbers = #tpu.dot_dimension_numbers<[1], [0], [0], [1], [0, 0, 1, 1], [], []>} : vector<8x32xbf16>, vector<32x32xbf16>, vector<8x32xf32> -> vector<8x32xf32>
    %6 = vector.broadcast %3 : vector<1x32xf32> to vector<8x32xf32>
    %7 = arith.addf %5, %6 : vector<8x32xf32>
    %cst_9 = arith.constant 0.000000e+00 : f32
    %8 = vector.broadcast %cst_9 : f32 to vector<8x32xf32>
    %9 = arith.maximumf %7, %8 : vector<8x32xf32>
    %c0_10 = arith.constant 0 : index
    %c0_11 = arith.constant 0 : index
    %10 = vector.load %arg2[%c0_10, %c0_11] : memref<8x32xbf16, #tpu.memory_space<vmem>>, vector<8x32xbf16>
    %cst_12 = arith.constant dense<0.000000e+00> : vector<8x32xf32>
    %11 = tpu.matmul %10, %2, %cst_12 {dimension_numbers = #tpu.dot_dimension_numbers<[1], [0], [0], [1], [0, 0, 1, 1], [], []>} : vector<8x32xbf16>, vector<32x32xbf16>, vector<8x32xf32> -> vector<8x32xf32>
    %12 = vector.broadcast %3 : vector<1x32xf32> to vector<8x32xf32>
    %13 = arith.addf %11, %12 : vector<8x32xf32>
    %cst_13 = arith.constant 0.000000e+00 : f32
    %14 = vector.broadcast %cst_13 : f32 to vector<8x32xf32>
    %15 = arith.maximumf %13, %14 : vector<8x32xf32>
    %16 = arith.maximumf %9, %15 : vector<8x32xf32>
    %c1_i32 = arith.constant 1 : i32
    %17 = tpu.dynamic_rotate %15 by %c1_i32 dim 0 : vector<8x32xf32>, i32 -> vector<8x32xf32>
    %18 = vector.broadcast %0 : vector<8x1xf32> to vector<8x32xf32>
    %19 = arith.mulf %17, %18 : vector<8x32xf32>
    %20 = arith.maximumf %16, %19 : vector<8x32xf32>
    %21 = arith.truncf %20 : vector<8x32xf32> to vector<8x32xbf16>
    %c1_i32_14 = arith.constant 1 : i32
    %22 = tpu.dynamic_rotate %20 by %c1_i32_14 dim 0 : vector<8x32xf32>, i32 -> vector<8x32xf32>
    %23 = vector.broadcast %0 : vector<8x1xf32> to vector<8x32xf32>
    %24 = arith.mulf %22, %23 : vector<8x32xf32>
    %25 = arith.truncf %24 : vector<8x32xf32> to vector<8x32xbf16>
    %c7_i32 = arith.constant 7 : i32
    %26 = tpu.dynamic_rotate %20 by %c7_i32 dim 0 : vector<8x32xf32>, i32 -> vector<8x32xf32>
    %27 = vector.broadcast %1 : vector<8x1xf32> to vector<8x32xf32>
    %28 = arith.mulf %26, %27 : vector<8x32xf32>
    %29 = arith.truncf %28 : vector<8x32xf32> to vector<8x32xbf16>
    %c0_15 = arith.constant 0 : index
    %c0_16 = arith.constant 0 : index
    %c0_17 = arith.constant 0 : index
    %30 = vector.load %arg7[%c0_15, %c0_16, %c0_17] : memref<3x32x32xbf16, #tpu.memory_space<vmem>>, vector<1x32x32xbf16>
    %31 = vector.shape_cast %30 : vector<1x32x32xbf16> to vector<32x32xbf16>
    %cst_18 = arith.constant dense<0.000000e+00> : vector<8x32xf32>
    %32 = tpu.matmul %25, %31, %cst_18 {dimension_numbers = #tpu.dot_dimension_numbers<[1], [0], [0], [1], [0, 0, 1, 1], [], []>} : vector<8x32xbf16>, vector<32x32xbf16>, vector<8x32xf32> -> vector<8x32xf32>
    %c1 = arith.constant 1 : index
    %c0_19 = arith.constant 0 : index
    %c0_20 = arith.constant 0 : index
    %33 = vector.load %arg7[%c1, %c0_19, %c0_20] : memref<3x32x32xbf16, #tpu.memory_space<vmem>>, vector<1x32x32xbf16>
    %34 = vector.shape_cast %33 : vector<1x32x32xbf16> to vector<32x32xbf16>
    %cst_21 = arith.constant dense<0.000000e+00> : vector<8x32xf32>
    %35 = tpu.matmul %21, %34, %cst_21 {dimension_numbers = #tpu.dot_dimension_numbers<[1], [0], [0], [1], [0, 0, 1, 1], [], []>} : vector<8x32xbf16>, vector<32x32xbf16>, vector<8x32xf32> -> vector<8x32xf32>
    %36 = arith.addf %32, %35 : vector<8x32xf32>
    %c2 = arith.constant 2 : index
    %c0_22 = arith.constant 0 : index
    %c0_23 = arith.constant 0 : index
    %37 = vector.load %arg7[%c2, %c0_22, %c0_23] : memref<3x32x32xbf16, #tpu.memory_space<vmem>>, vector<1x32x32xbf16>
    %38 = vector.shape_cast %37 : vector<1x32x32xbf16> to vector<32x32xbf16>
    %cst_24 = arith.constant dense<0.000000e+00> : vector<8x32xf32>
    %39 = tpu.matmul %29, %38, %cst_24 {dimension_numbers = #tpu.dot_dimension_numbers<[1], [0], [0], [1], [0, 0, 1, 1], [], []>} : vector<8x32xbf16>, vector<32x32xbf16>, vector<8x32xf32> -> vector<8x32xf32>
    %40 = arith.addf %36, %39 : vector<8x32xf32>
    %c0_25 = arith.constant 0 : index
    %c0_26 = arith.constant 0 : index
    %41 = vector.load %arg6[%c0_25, %c0_26] : memref<1x32xf32, #tpu.memory_space<vmem>>, vector<1x32xf32>
    %42 = vector.broadcast %41 : vector<1x32xf32> to vector<8x32xf32>
    %43 = arith.addf %40, %42 : vector<8x32xf32>
    %cst_27 = arith.constant 0.000000e+00 : f32
    %44 = vector.broadcast %cst_27 : f32 to vector<8x32xf32>
    %45 = arith.maximumf %43, %44 : vector<8x32xf32>
    %46 = arith.truncf %45 : vector<8x32xf32> to vector<8x32xbf16>
    %c1_i32_28 = arith.constant 1 : i32
    %47 = tpu.dynamic_rotate %45 by %c1_i32_28 dim 0 : vector<8x32xf32>, i32 -> vector<8x32xf32>
    %48 = vector.broadcast %0 : vector<8x1xf32> to vector<8x32xf32>
    %49 = arith.mulf %47, %48 : vector<8x32xf32>
    %50 = arith.truncf %49 : vector<8x32xf32> to vector<8x32xbf16>
    %c7_i32_29 = arith.constant 7 : i32
    %51 = tpu.dynamic_rotate %45 by %c7_i32_29 dim 0 : vector<8x32xf32>, i32 -> vector<8x32xf32>
    %52 = vector.broadcast %1 : vector<8x1xf32> to vector<8x32xf32>
    %53 = arith.mulf %51, %52 : vector<8x32xf32>
    %54 = arith.truncf %53 : vector<8x32xf32> to vector<8x32xbf16>
    %c0_30 = arith.constant 0 : index
    %c0_31 = arith.constant 0 : index
    %c0_32 = arith.constant 0 : index
    %55 = vector.load %arg9[%c0_30, %c0_31, %c0_32] : memref<3x32x32xbf16, #tpu.memory_space<vmem>>, vector<1x32x32xbf16>
    %56 = vector.shape_cast %55 : vector<1x32x32xbf16> to vector<32x32xbf16>
    %cst_33 = arith.constant dense<0.000000e+00> : vector<8x32xf32>
    %57 = tpu.matmul %50, %56, %cst_33 {dimension_numbers = #tpu.dot_dimension_numbers<[1], [0], [0], [1], [0, 0, 1, 1], [], []>} : vector<8x32xbf16>, vector<32x32xbf16>, vector<8x32xf32> -> vector<8x32xf32>
    %c1_34 = arith.constant 1 : index
    %c0_35 = arith.constant 0 : index
    %c0_36 = arith.constant 0 : index
    %58 = vector.load %arg9[%c1_34, %c0_35, %c0_36] : memref<3x32x32xbf16, #tpu.memory_space<vmem>>, vector<1x32x32xbf16>
    %59 = vector.shape_cast %58 : vector<1x32x32xbf16> to vector<32x32xbf16>
    %cst_37 = arith.constant dense<0.000000e+00> : vector<8x32xf32>
    %60 = tpu.matmul %46, %59, %cst_37 {dimension_numbers = #tpu.dot_dimension_numbers<[1], [0], [0], [1], [0, 0, 1, 1], [], []>} : vector<8x32xbf16>, vector<32x32xbf16>, vector<8x32xf32> -> vector<8x32xf32>
    %61 = arith.addf %57, %60 : vector<8x32xf32>
    %c2_38 = arith.constant 2 : index
    %c0_39 = arith.constant 0 : index
    %c0_40 = arith.constant 0 : index
    %62 = vector.load %arg9[%c2_38, %c0_39, %c0_40] : memref<3x32x32xbf16, #tpu.memory_space<vmem>>, vector<1x32x32xbf16>
    %63 = vector.shape_cast %62 : vector<1x32x32xbf16> to vector<32x32xbf16>
    %cst_41 = arith.constant dense<0.000000e+00> : vector<8x32xf32>
    %64 = tpu.matmul %54, %63, %cst_41 {dimension_numbers = #tpu.dot_dimension_numbers<[1], [0], [0], [1], [0, 0, 1, 1], [], []>} : vector<8x32xbf16>, vector<32x32xbf16>, vector<8x32xf32> -> vector<8x32xf32>
    %65 = arith.addf %61, %64 : vector<8x32xf32>
    %c0_42 = arith.constant 0 : index
    %c0_43 = arith.constant 0 : index
    %66 = vector.load %arg8[%c0_42, %c0_43] : memref<1x32xf32, #tpu.memory_space<vmem>>, vector<1x32xf32>
    %67 = vector.broadcast %66 : vector<1x32xf32> to vector<8x32xf32>
    %68 = arith.addf %65, %67 : vector<8x32xf32>
    %69 = arith.addf %68, %20 : vector<8x32xf32>
    %cst_44 = arith.constant 0.000000e+00 : f32
    %70 = vector.broadcast %cst_44 : f32 to vector<8x32xf32>
    %71 = arith.maximumf %69, %70 : vector<8x32xf32>
    %72 = arith.truncf %71 : vector<8x32xf32> to vector<8x32xbf16>
    %c1_i32_45 = arith.constant 1 : i32
    %73 = tpu.dynamic_rotate %71 by %c1_i32_45 dim 0 : vector<8x32xf32>, i32 -> vector<8x32xf32>
    %74 = vector.broadcast %0 : vector<8x1xf32> to vector<8x32xf32>
    %75 = arith.mulf %73, %74 : vector<8x32xf32>
    %76 = arith.truncf %75 : vector<8x32xf32> to vector<8x32xbf16>
    %c7_i32_46 = arith.constant 7 : i32
    %77 = tpu.dynamic_rotate %71 by %c7_i32_46 dim 0 : vector<8x32xf32>, i32 -> vector<8x32xf32>
    %78 = vector.broadcast %1 : vector<8x1xf32> to vector<8x32xf32>
    %79 = arith.mulf %77, %78 : vector<8x32xf32>
    %80 = arith.truncf %79 : vector<8x32xf32> to vector<8x32xbf16>
    %c0_47 = arith.constant 0 : index
    %c0_48 = arith.constant 0 : index
    %c0_49 = arith.constant 0 : index
    %81 = vector.load %arg11[%c0_47, %c0_48, %c0_49] : memref<3x32x32xbf16, #tpu.memory_space<vmem>>, vector<1x32x32xbf16>
    %82 = vector.shape_cast %81 : vector<1x32x32xbf16> to vector<32x32xbf16>
    %cst_50 = arith.constant dense<0.000000e+00> : vector<8x32xf32>
    %83 = tpu.matmul %76, %82, %cst_50 {dimension_numbers = #tpu.dot_dimension_numbers<[1], [0], [0], [1], [0, 0, 1, 1], [], []>} : vector<8x32xbf16>, vector<32x32xbf16>, vector<8x32xf32> -> vector<8x32xf32>
    %c1_51 = arith.constant 1 : index
    %c0_52 = arith.constant 0 : index
    %c0_53 = arith.constant 0 : index
    %84 = vector.load %arg11[%c1_51, %c0_52, %c0_53] : memref<3x32x32xbf16, #tpu.memory_space<vmem>>, vector<1x32x32xbf16>
    %85 = vector.shape_cast %84 : vector<1x32x32xbf16> to vector<32x32xbf16>
    %cst_54 = arith.constant dense<0.000000e+00> : vector<8x32xf32>
    %86 = tpu.matmul %72, %85, %cst_54 {dimension_numbers = #tpu.dot_dimension_numbers<[1], [0], [0], [1], [0, 0, 1, 1], [], []>} : vector<8x32xbf16>, vector<32x32xbf16>, vector<8x32xf32> -> vector<8x32xf32>
    %87 = arith.addf %83, %86 : vector<8x32xf32>
    %c2_55 = arith.constant 2 : index
    %c0_56 = arith.constant 0 : index
    %c0_57 = arith.constant 0 : index
    %88 = vector.load %arg11[%c2_55, %c0_56, %c0_57] : memref<3x32x32xbf16, #tpu.memory_space<vmem>>, vector<1x32x32xbf16>
    %89 = vector.shape_cast %88 : vector<1x32x32xbf16> to vector<32x32xbf16>
    %cst_58 = arith.constant dense<0.000000e+00> : vector<8x32xf32>
    %90 = tpu.matmul %80, %89, %cst_58 {dimension_numbers = #tpu.dot_dimension_numbers<[1], [0], [0], [1], [0, 0, 1, 1], [], []>} : vector<8x32xbf16>, vector<32x32xbf16>, vector<8x32xf32> -> vector<8x32xf32>
    %91 = arith.addf %87, %90 : vector<8x32xf32>
    %c0_59 = arith.constant 0 : index
    %c0_60 = arith.constant 0 : index
    %92 = vector.load %arg10[%c0_59, %c0_60] : memref<1x32xf32, #tpu.memory_space<vmem>>, vector<1x32xf32>
    %93 = vector.broadcast %92 : vector<1x32xf32> to vector<8x32xf32>
    %94 = arith.addf %91, %93 : vector<8x32xf32>
    %cst_61 = arith.constant 0.000000e+00 : f32
    %95 = vector.broadcast %cst_61 : f32 to vector<8x32xf32>
    %96 = arith.maximumf %94, %95 : vector<8x32xf32>
    %97 = arith.truncf %96 : vector<8x32xf32> to vector<8x32xbf16>
    %c1_i32_62 = arith.constant 1 : i32
    %98 = tpu.dynamic_rotate %96 by %c1_i32_62 dim 0 : vector<8x32xf32>, i32 -> vector<8x32xf32>
    %99 = vector.broadcast %0 : vector<8x1xf32> to vector<8x32xf32>
    %100 = arith.mulf %98, %99 : vector<8x32xf32>
    %101 = arith.truncf %100 : vector<8x32xf32> to vector<8x32xbf16>
    %c7_i32_63 = arith.constant 7 : i32
    %102 = tpu.dynamic_rotate %96 by %c7_i32_63 dim 0 : vector<8x32xf32>, i32 -> vector<8x32xf32>
    %103 = vector.broadcast %1 : vector<8x1xf32> to vector<8x32xf32>
    %104 = arith.mulf %102, %103 : vector<8x32xf32>
    %105 = arith.truncf %104 : vector<8x32xf32> to vector<8x32xbf16>
    %c0_64 = arith.constant 0 : index
    %c0_65 = arith.constant 0 : index
    %c0_66 = arith.constant 0 : index
    %106 = vector.load %arg13[%c0_64, %c0_65, %c0_66] : memref<3x32x32xbf16, #tpu.memory_space<vmem>>, vector<1x32x32xbf16>
    %107 = vector.shape_cast %106 : vector<1x32x32xbf16> to vector<32x32xbf16>
    %cst_67 = arith.constant dense<0.000000e+00> : vector<8x32xf32>
    %108 = tpu.matmul %101, %107, %cst_67 {dimension_numbers = #tpu.dot_dimension_numbers<[1], [0], [0], [1], [0, 0, 1, 1], [], []>} : vector<8x32xbf16>, vector<32x32xbf16>, vector<8x32xf32> -> vector<8x32xf32>
    %c1_68 = arith.constant 1 : index
    %c0_69 = arith.constant 0 : index
    %c0_70 = arith.constant 0 : index
    %109 = vector.load %arg13[%c1_68, %c0_69, %c0_70] : memref<3x32x32xbf16, #tpu.memory_space<vmem>>, vector<1x32x32xbf16>
    %110 = vector.shape_cast %109 : vector<1x32x32xbf16> to vector<32x32xbf16>
    %cst_71 = arith.constant dense<0.000000e+00> : vector<8x32xf32>
    %111 = tpu.matmul %97, %110, %cst_71 {dimension_numbers = #tpu.dot_dimension_numbers<[1], [0], [0], [1], [0, 0, 1, 1], [], []>} : vector<8x32xbf16>, vector<32x32xbf16>, vector<8x32xf32> -> vector<8x32xf32>
    %112 = arith.addf %108, %111 : vector<8x32xf32>
    %c2_72 = arith.constant 2 : index
    %c0_73 = arith.constant 0 : index
    %c0_74 = arith.constant 0 : index
    %113 = vector.load %arg13[%c2_72, %c0_73, %c0_74] : memref<3x32x32xbf16, #tpu.memory_space<vmem>>, vector<1x32x32xbf16>
    %114 = vector.shape_cast %113 : vector<1x32x32xbf16> to vector<32x32xbf16>
    %cst_75 = arith.constant dense<0.000000e+00> : vector<8x32xf32>
    %115 = tpu.matmul %105, %114, %cst_75 {dimension_numbers = #tpu.dot_dimension_numbers<[1], [0], [0], [1], [0, 0, 1, 1], [], []>} : vector<8x32xbf16>, vector<32x32xbf16>, vector<8x32xf32> -> vector<8x32xf32>
    %116 = arith.addf %112, %115 : vector<8x32xf32>
    %c0_76 = arith.constant 0 : index
    %c0_77 = arith.constant 0 : index
    %117 = vector.load %arg12[%c0_76, %c0_77] : memref<1x32xf32, #tpu.memory_space<vmem>>, vector<1x32xf32>
    %118 = vector.broadcast %117 : vector<1x32xf32> to vector<8x32xf32>
    %119 = arith.addf %116, %118 : vector<8x32xf32>
    %120 = arith.addf %119, %71 : vector<8x32xf32>
    %cst_78 = arith.constant 0.000000e+00 : f32
    %121 = vector.broadcast %cst_78 : f32 to vector<8x32xf32>
    %122 = arith.maximumf %120, %121 : vector<8x32xf32>
    %123 = arith.truncf %122 : vector<8x32xf32> to vector<8x32xbf16>
    %c1_i32_79 = arith.constant 1 : i32
    %124 = tpu.dynamic_rotate %122 by %c1_i32_79 dim 0 : vector<8x32xf32>, i32 -> vector<8x32xf32>
    %125 = vector.broadcast %0 : vector<8x1xf32> to vector<8x32xf32>
    %126 = arith.mulf %124, %125 : vector<8x32xf32>
    %127 = arith.truncf %126 : vector<8x32xf32> to vector<8x32xbf16>
    %c7_i32_80 = arith.constant 7 : i32
    %128 = tpu.dynamic_rotate %122 by %c7_i32_80 dim 0 : vector<8x32xf32>, i32 -> vector<8x32xf32>
    %129 = vector.broadcast %1 : vector<8x1xf32> to vector<8x32xf32>
    %130 = arith.mulf %128, %129 : vector<8x32xf32>
    %131 = arith.truncf %130 : vector<8x32xf32> to vector<8x32xbf16>
    %c0_81 = arith.constant 0 : index
    %c0_82 = arith.constant 0 : index
    %c0_83 = arith.constant 0 : index
    %132 = vector.load %arg15[%c0_81, %c0_82, %c0_83] : memref<3x32x64xbf16, #tpu.memory_space<vmem>>, vector<1x32x64xbf16>
    %133 = vector.shape_cast %132 : vector<1x32x64xbf16> to vector<32x64xbf16>
    %cst_84 = arith.constant dense<0.000000e+00> : vector<8x64xf32>
    %134 = tpu.matmul %127, %133, %cst_84 {dimension_numbers = #tpu.dot_dimension_numbers<[1], [0], [0], [1], [0, 0, 1, 1], [], []>} : vector<8x32xbf16>, vector<32x64xbf16>, vector<8x64xf32> -> vector<8x64xf32>
    %c1_85 = arith.constant 1 : index
    %c0_86 = arith.constant 0 : index
    %c0_87 = arith.constant 0 : index
    %135 = vector.load %arg15[%c1_85, %c0_86, %c0_87] : memref<3x32x64xbf16, #tpu.memory_space<vmem>>, vector<1x32x64xbf16>
    %136 = vector.shape_cast %135 : vector<1x32x64xbf16> to vector<32x64xbf16>
    %cst_88 = arith.constant dense<0.000000e+00> : vector<8x64xf32>
    %137 = tpu.matmul %123, %136, %cst_88 {dimension_numbers = #tpu.dot_dimension_numbers<[1], [0], [0], [1], [0, 0, 1, 1], [], []>} : vector<8x32xbf16>, vector<32x64xbf16>, vector<8x64xf32> -> vector<8x64xf32>
    %138 = arith.addf %134, %137 : vector<8x64xf32>
    %c2_89 = arith.constant 2 : index
    %c0_90 = arith.constant 0 : index
    %c0_91 = arith.constant 0 : index
    %139 = vector.load %arg15[%c2_89, %c0_90, %c0_91] : memref<3x32x64xbf16, #tpu.memory_space<vmem>>, vector<1x32x64xbf16>
    %140 = vector.shape_cast %139 : vector<1x32x64xbf16> to vector<32x64xbf16>
    %cst_92 = arith.constant dense<0.000000e+00> : vector<8x64xf32>
    %141 = tpu.matmul %131, %140, %cst_92 {dimension_numbers = #tpu.dot_dimension_numbers<[1], [0], [0], [1], [0, 0, 1, 1], [], []>} : vector<8x32xbf16>, vector<32x64xbf16>, vector<8x64xf32> -> vector<8x64xf32>
    %142 = arith.addf %138, %141 : vector<8x64xf32>
    %c0_93 = arith.constant 0 : index
    %c0_94 = arith.constant 0 : index
    %143 = vector.load %arg14[%c0_93, %c0_94] : memref<1x64xf32, #tpu.memory_space<vmem>>, vector<1x64xf32>
    %144 = vector.broadcast %143 : vector<1x64xf32> to vector<8x64xf32>
    %145 = arith.addf %142, %144 : vector<8x64xf32>
    %cst_95 = arith.constant 0.000000e+00 : f32
    %146 = vector.broadcast %cst_95 : f32 to vector<8x64xf32>
    %147 = arith.maximumf %145, %146 : vector<8x64xf32>
    %148 = arith.truncf %122 : vector<8x32xf32> to vector<8x32xbf16>
    %c0_96 = arith.constant 0 : index
    %c0_97 = arith.constant 0 : index
    %149 = vector.load %arg19[%c0_96, %c0_97] : memref<32x64xbf16, #tpu.memory_space<vmem>>, vector<32x64xbf16>
    %cst_98 = arith.constant dense<0.000000e+00> : vector<8x64xf32>
    %150 = tpu.matmul %148, %149, %cst_98 {dimension_numbers = #tpu.dot_dimension_numbers<[1], [0], [0], [1], [0, 0, 1, 1], [], []>} : vector<8x32xbf16>, vector<32x64xbf16>, vector<8x64xf32> -> vector<8x64xf32>
    %c0_99 = arith.constant 0 : index
    %c0_100 = arith.constant 0 : index
    %151 = vector.load %arg18[%c0_99, %c0_100] : memref<1x64xf32, #tpu.memory_space<vmem>>, vector<1x64xf32>
    %152 = vector.broadcast %151 : vector<1x64xf32> to vector<8x64xf32>
    %153 = arith.addf %150, %152 : vector<8x64xf32>
    %154 = arith.truncf %147 : vector<8x64xf32> to vector<8x64xbf16>
    %c1_i32_101 = arith.constant 1 : i32
    %155 = tpu.dynamic_rotate %147 by %c1_i32_101 dim 0 : vector<8x64xf32>, i32 -> vector<8x64xf32>
    %156 = vector.broadcast %0 : vector<8x1xf32> to vector<8x64xf32>
    %157 = arith.mulf %155, %156 : vector<8x64xf32>
    %158 = arith.truncf %157 : vector<8x64xf32> to vector<8x64xbf16>
    %c7_i32_102 = arith.constant 7 : i32
    %159 = tpu.dynamic_rotate %147 by %c7_i32_102 dim 0 : vector<8x64xf32>, i32 -> vector<8x64xf32>
    %160 = vector.broadcast %1 : vector<8x1xf32> to vector<8x64xf32>
    %161 = arith.mulf %159, %160 : vector<8x64xf32>
    %162 = arith.truncf %161 : vector<8x64xf32> to vector<8x64xbf16>
    %c0_103 = arith.constant 0 : index
    %c0_104 = arith.constant 0 : index
    %c0_105 = arith.constant 0 : index
    %163 = vector.load %arg17[%c0_103, %c0_104, %c0_105] : memref<3x64x64xbf16, #tpu.memory_space<vmem>>, vector<1x64x64xbf16>
    %164 = vector.shape_cast %163 : vector<1x64x64xbf16> to vector<64x64xbf16>
    %cst_106 = arith.constant dense<0.000000e+00> : vector<8x64xf32>
    %165 = tpu.matmul %158, %164, %cst_106 {dimension_numbers = #tpu.dot_dimension_numbers<[1], [0], [0], [1], [0, 0, 1, 1], [], []>} : vector<8x64xbf16>, vector<64x64xbf16>, vector<8x64xf32> -> vector<8x64xf32>
    %c1_107 = arith.constant 1 : index
    %c0_108 = arith.constant 0 : index
    %c0_109 = arith.constant 0 : index
    %166 = vector.load %arg17[%c1_107, %c0_108, %c0_109] : memref<3x64x64xbf16, #tpu.memory_space<vmem>>, vector<1x64x64xbf16>
    %167 = vector.shape_cast %166 : vector<1x64x64xbf16> to vector<64x64xbf16>
    %cst_110 = arith.constant dense<0.000000e+00> : vector<8x64xf32>
    %168 = tpu.matmul %154, %167, %cst_110 {dimension_numbers = #tpu.dot_dimension_numbers<[1], [0], [0], [1], [0, 0, 1, 1], [], []>} : vector<8x64xbf16>, vector<64x64xbf16>, vector<8x64xf32> -> vector<8x64xf32>
    %169 = arith.addf %165, %168 : vector<8x64xf32>
    %c2_111 = arith.constant 2 : index
    %c0_112 = arith.constant 0 : index
    %c0_113 = arith.constant 0 : index
    %170 = vector.load %arg17[%c2_111, %c0_112, %c0_113] : memref<3x64x64xbf16, #tpu.memory_space<vmem>>, vector<1x64x64xbf16>
    %171 = vector.shape_cast %170 : vector<1x64x64xbf16> to vector<64x64xbf16>
    %cst_114 = arith.constant dense<0.000000e+00> : vector<8x64xf32>
    %172 = tpu.matmul %162, %171, %cst_114 {dimension_numbers = #tpu.dot_dimension_numbers<[1], [0], [0], [1], [0, 0, 1, 1], [], []>} : vector<8x64xbf16>, vector<64x64xbf16>, vector<8x64xf32> -> vector<8x64xf32>
    %173 = arith.addf %169, %172 : vector<8x64xf32>
    %c0_115 = arith.constant 0 : index
    %c0_116 = arith.constant 0 : index
    %174 = vector.load %arg16[%c0_115, %c0_116] : memref<1x64xf32, #tpu.memory_space<vmem>>, vector<1x64xf32>
    %175 = vector.broadcast %174 : vector<1x64xf32> to vector<8x64xf32>
    %176 = arith.addf %173, %175 : vector<8x64xf32>
    %177 = arith.addf %176, %153 : vector<8x64xf32>
    %cst_117 = arith.constant 0.000000e+00 : f32
    %178 = vector.broadcast %cst_117 : f32 to vector<8x64xf32>
    %179 = arith.maximumf %177, %178 : vector<8x64xf32>
    %180 = arith.truncf %179 : vector<8x64xf32> to vector<8x64xbf16>
    %c1_i32_118 = arith.constant 1 : i32
    %181 = tpu.dynamic_rotate %179 by %c1_i32_118 dim 0 : vector<8x64xf32>, i32 -> vector<8x64xf32>
    %182 = vector.broadcast %0 : vector<8x1xf32> to vector<8x64xf32>
    %183 = arith.mulf %181, %182 : vector<8x64xf32>
    %184 = arith.truncf %183 : vector<8x64xf32> to vector<8x64xbf16>
    %c7_i32_119 = arith.constant 7 : i32
    %185 = tpu.dynamic_rotate %179 by %c7_i32_119 dim 0 : vector<8x64xf32>, i32 -> vector<8x64xf32>
    %186 = vector.broadcast %1 : vector<8x1xf32> to vector<8x64xf32>
    %187 = arith.mulf %185, %186 : vector<8x64xf32>
    %188 = arith.truncf %187 : vector<8x64xf32> to vector<8x64xbf16>
    %c0_120 = arith.constant 0 : index
    %c0_121 = arith.constant 0 : index
    %c0_122 = arith.constant 0 : index
    %189 = vector.load %arg21[%c0_120, %c0_121, %c0_122] : memref<3x64x64xbf16, #tpu.memory_space<vmem>>, vector<1x64x64xbf16>
    %190 = vector.shape_cast %189 : vector<1x64x64xbf16> to vector<64x64xbf16>
    %cst_123 = arith.constant dense<0.000000e+00> : vector<8x64xf32>
    %191 = tpu.matmul %184, %190, %cst_123 {dimension_numbers = #tpu.dot_dimension_numbers<[1], [0], [0], [1], [0, 0, 1, 1], [], []>} : vector<8x64xbf16>, vector<64x64xbf16>, vector<8x64xf32> -> vector<8x64xf32>
    %c1_124 = arith.constant 1 : index
    %c0_125 = arith.constant 0 : index
    %c0_126 = arith.constant 0 : index
    %192 = vector.load %arg21[%c1_124, %c0_125, %c0_126] : memref<3x64x64xbf16, #tpu.memory_space<vmem>>, vector<1x64x64xbf16>
    %193 = vector.shape_cast %192 : vector<1x64x64xbf16> to vector<64x64xbf16>
    %cst_127 = arith.constant dense<0.000000e+00> : vector<8x64xf32>
    %194 = tpu.matmul %180, %193, %cst_127 {dimension_numbers = #tpu.dot_dimension_numbers<[1], [0], [0], [1], [0, 0, 1, 1], [], []>} : vector<8x64xbf16>, vector<64x64xbf16>, vector<8x64xf32> -> vector<8x64xf32>
    %195 = arith.addf %191, %194 : vector<8x64xf32>
    %c2_128 = arith.constant 2 : index
    %c0_129 = arith.constant 0 : index
    %c0_130 = arith.constant 0 : index
    %196 = vector.load %arg21[%c2_128, %c0_129, %c0_130] : memref<3x64x64xbf16, #tpu.memory_space<vmem>>, vector<1x64x64xbf16>
    %197 = vector.shape_cast %196 : vector<1x64x64xbf16> to vector<64x64xbf16>
    %cst_131 = arith.constant dense<0.000000e+00> : vector<8x64xf32>
    %198 = tpu.matmul %188, %197, %cst_131 {dimension_numbers = #tpu.dot_dimension_numbers<[1], [0], [0], [1], [0, 0, 1, 1], [], []>} : vector<8x64xbf16>, vector<64x64xbf16>, vector<8x64xf32> -> vector<8x64xf32>
    %199 = arith.addf %195, %198 : vector<8x64xf32>
    %c0_132 = arith.constant 0 : index
    %c0_133 = arith.constant 0 : index
    %200 = vector.load %arg20[%c0_132, %c0_133] : memref<1x64xf32, #tpu.memory_space<vmem>>, vector<1x64xf32>
    %201 = vector.broadcast %200 : vector<1x64xf32> to vector<8x64xf32>
    %202 = arith.addf %199, %201 : vector<8x64xf32>
    %cst_134 = arith.constant 0.000000e+00 : f32
    %203 = vector.broadcast %cst_134 : f32 to vector<8x64xf32>
    %204 = arith.maximumf %202, %203 : vector<8x64xf32>
    %205 = arith.truncf %204 : vector<8x64xf32> to vector<8x64xbf16>
    %c1_i32_135 = arith.constant 1 : i32
    %206 = tpu.dynamic_rotate %204 by %c1_i32_135 dim 0 : vector<8x64xf32>, i32 -> vector<8x64xf32>
    %207 = vector.broadcast %0 : vector<8x1xf32> to vector<8x64xf32>
    %208 = arith.mulf %206, %207 : vector<8x64xf32>
    %209 = arith.truncf %208 : vector<8x64xf32> to vector<8x64xbf16>
    %c7_i32_136 = arith.constant 7 : i32
    %210 = tpu.dynamic_rotate %204 by %c7_i32_136 dim 0 : vector<8x64xf32>, i32 -> vector<8x64xf32>
    %211 = vector.broadcast %1 : vector<8x1xf32> to vector<8x64xf32>
    %212 = arith.mulf %210, %211 : vector<8x64xf32>
    %213 = arith.truncf %212 : vector<8x64xf32> to vector<8x64xbf16>
    %c0_137 = arith.constant 0 : index
    %c0_138 = arith.constant 0 : index
    %c0_139 = arith.constant 0 : index
    %214 = vector.load %arg23[%c0_137, %c0_138, %c0_139] : memref<3x64x64xbf16, #tpu.memory_space<vmem>>, vector<1x64x64xbf16>
    %215 = vector.shape_cast %214 : vector<1x64x64xbf16> to vector<64x64xbf16>
    %cst_140 = arith.constant dense<0.000000e+00> : vector<8x64xf32>
    %216 = tpu.matmul %209, %215, %cst_140 {dimension_numbers = #tpu.dot_dimension_numbers<[1], [0], [0], [1], [0, 0, 1, 1], [], []>} : vector<8x64xbf16>, vector<64x64xbf16>, vector<8x64xf32> -> vector<8x64xf32>
    %c1_141 = arith.constant 1 : index
    %c0_142 = arith.constant 0 : index
    %c0_143 = arith.constant 0 : index
    %217 = vector.load %arg23[%c1_141, %c0_142, %c0_143] : memref<3x64x64xbf16, #tpu.memory_space<vmem>>, vector<1x64x64xbf16>
    %218 = vector.shape_cast %217 : vector<1x64x64xbf16> to vector<64x64xbf16>
    %cst_144 = arith.constant dense<0.000000e+00> : vector<8x64xf32>
    %219 = tpu.matmul %205, %218, %cst_144 {dimension_numbers = #tpu.dot_dimension_numbers<[1], [0], [0], [1], [0, 0, 1, 1], [], []>} : vector<8x64xbf16>, vector<64x64xbf16>, vector<8x64xf32> -> vector<8x64xf32>
    %220 = arith.addf %216, %219 : vector<8x64xf32>
    %c2_145 = arith.constant 2 : index
    %c0_146 = arith.constant 0 : index
    %c0_147 = arith.constant 0 : index
    %221 = vector.load %arg23[%c2_145, %c0_146, %c0_147] : memref<3x64x64xbf16, #tpu.memory_space<vmem>>, vector<1x64x64xbf16>
    %222 = vector.shape_cast %221 : vector<1x64x64xbf16> to vector<64x64xbf16>
    %cst_148 = arith.constant dense<0.000000e+00> : vector<8x64xf32>
    %223 = tpu.matmul %213, %222, %cst_148 {dimension_numbers = #tpu.dot_dimension_numbers<[1], [0], [0], [1], [0, 0, 1, 1], [], []>} : vector<8x64xbf16>, vector<64x64xbf16>, vector<8x64xf32> -> vector<8x64xf32>
    %224 = arith.addf %220, %223 : vector<8x64xf32>
    %c0_149 = arith.constant 0 : index
    %c0_150 = arith.constant 0 : index
    %225 = vector.load %arg22[%c0_149, %c0_150] : memref<1x64xf32, #tpu.memory_space<vmem>>, vector<1x64xf32>
    %226 = vector.broadcast %225 : vector<1x64xf32> to vector<8x64xf32>
    %227 = arith.addf %224, %226 : vector<8x64xf32>
    %228 = arith.addf %227, %179 : vector<8x64xf32>
    %cst_151 = arith.constant 0.000000e+00 : f32
    %229 = vector.broadcast %cst_151 : f32 to vector<8x64xf32>
    %230 = arith.maximumf %228, %229 : vector<8x64xf32>
    %231 = arith.truncf %230 : vector<8x64xf32> to vector<8x64xbf16>
    %c1_i32_152 = arith.constant 1 : i32
    %232 = tpu.dynamic_rotate %230 by %c1_i32_152 dim 0 : vector<8x64xf32>, i32 -> vector<8x64xf32>
    %233 = vector.broadcast %0 : vector<8x1xf32> to vector<8x64xf32>
    %234 = arith.mulf %232, %233 : vector<8x64xf32>
    %235 = arith.truncf %234 : vector<8x64xf32> to vector<8x64xbf16>
    %c7_i32_153 = arith.constant 7 : i32
    %236 = tpu.dynamic_rotate %230 by %c7_i32_153 dim 0 : vector<8x64xf32>, i32 -> vector<8x64xf32>
    %237 = vector.broadcast %1 : vector<8x1xf32> to vector<8x64xf32>
    %238 = arith.mulf %236, %237 : vector<8x64xf32>
    %239 = arith.truncf %238 : vector<8x64xf32> to vector<8x64xbf16>
    %c0_154 = arith.constant 0 : index
    %c0_155 = arith.constant 0 : index
    %c0_156 = arith.constant 0 : index
    %240 = vector.load %arg25[%c0_154, %c0_155, %c0_156] : memref<3x64x64xbf16, #tpu.memory_space<vmem>>, vector<1x64x64xbf16>
    %241 = vector.shape_cast %240 : vector<1x64x64xbf16> to vector<64x64xbf16>
    %cst_157 = arith.constant dense<0.000000e+00> : vector<8x64xf32>
    %242 = tpu.matmul %235, %241, %cst_157 {dimension_numbers = #tpu.dot_dimension_numbers<[1], [0], [0], [1], [0, 0, 1, 1], [], []>} : vector<8x64xbf16>, vector<64x64xbf16>, vector<8x64xf32> -> vector<8x64xf32>
    %c1_158 = arith.constant 1 : index
    %c0_159 = arith.constant 0 : index
    %c0_160 = arith.constant 0 : index
    %243 = vector.load %arg25[%c1_158, %c0_159, %c0_160] : memref<3x64x64xbf16, #tpu.memory_space<vmem>>, vector<1x64x64xbf16>
    %244 = vector.shape_cast %243 : vector<1x64x64xbf16> to vector<64x64xbf16>
    %cst_161 = arith.constant dense<0.000000e+00> : vector<8x64xf32>
    %245 = tpu.matmul %231, %244, %cst_161 {dimension_numbers = #tpu.dot_dimension_numbers<[1], [0], [0], [1], [0, 0, 1, 1], [], []>} : vector<8x64xbf16>, vector<64x64xbf16>, vector<8x64xf32> -> vector<8x64xf32>
    %246 = arith.addf %242, %245 : vector<8x64xf32>
    %c2_162 = arith.constant 2 : index
    %c0_163 = arith.constant 0 : index
    %c0_164 = arith.constant 0 : index
    %247 = vector.load %arg25[%c2_162, %c0_163, %c0_164] : memref<3x64x64xbf16, #tpu.memory_space<vmem>>, vector<1x64x64xbf16>
    %248 = vector.shape_cast %247 : vector<1x64x64xbf16> to vector<64x64xbf16>
    %cst_165 = arith.constant dense<0.000000e+00> : vector<8x64xf32>
    %249 = tpu.matmul %239, %248, %cst_165 {dimension_numbers = #tpu.dot_dimension_numbers<[1], [0], [0], [1], [0, 0, 1, 1], [], []>} : vector<8x64xbf16>, vector<64x64xbf16>, vector<8x64xf32> -> vector<8x64xf32>
    %250 = arith.addf %246, %249 : vector<8x64xf32>
    %c0_166 = arith.constant 0 : index
    %c0_167 = arith.constant 0 : index
    %251 = vector.load %arg24[%c0_166, %c0_167] : memref<1x64xf32, #tpu.memory_space<vmem>>, vector<1x64xf32>
    %252 = vector.broadcast %251 : vector<1x64xf32> to vector<8x64xf32>
    %253 = arith.addf %250, %252 : vector<8x64xf32>
    %cst_168 = arith.constant 0.000000e+00 : f32
    %254 = vector.broadcast %cst_168 : f32 to vector<8x64xf32>
    %255 = arith.maximumf %253, %254 : vector<8x64xf32>
    %256 = arith.truncf %255 : vector<8x64xf32> to vector<8x64xbf16>
    %c1_i32_169 = arith.constant 1 : i32
    %257 = tpu.dynamic_rotate %255 by %c1_i32_169 dim 0 : vector<8x64xf32>, i32 -> vector<8x64xf32>
    %258 = vector.broadcast %0 : vector<8x1xf32> to vector<8x64xf32>
    %259 = arith.mulf %257, %258 : vector<8x64xf32>
    %260 = arith.truncf %259 : vector<8x64xf32> to vector<8x64xbf16>
    %c7_i32_170 = arith.constant 7 : i32
    %261 = tpu.dynamic_rotate %255 by %c7_i32_170 dim 0 : vector<8x64xf32>, i32 -> vector<8x64xf32>
    %262 = vector.broadcast %1 : vector<8x1xf32> to vector<8x64xf32>
    %263 = arith.mulf %261, %262 : vector<8x64xf32>
    %264 = arith.truncf %263 : vector<8x64xf32> to vector<8x64xbf16>
    %c0_171 = arith.constant 0 : index
    %c0_172 = arith.constant 0 : index
    %c0_173 = arith.constant 0 : index
    %265 = vector.load %arg27[%c0_171, %c0_172, %c0_173] : memref<3x64x64xbf16, #tpu.memory_space<vmem>>, vector<1x64x64xbf16>
    %266 = vector.shape_cast %265 : vector<1x64x64xbf16> to vector<64x64xbf16>
    %cst_174 = arith.constant dense<0.000000e+00> : vector<8x64xf32>
    %267 = tpu.matmul %260, %266, %cst_174 {dimension_numbers = #tpu.dot_dimension_numbers<[1], [0], [0], [1], [0, 0, 1, 1], [], []>} : vector<8x64xbf16>, vector<64x64xbf16>, vector<8x64xf32> -> vector<8x64xf32>
    %c1_175 = arith.constant 1 : index
    %c0_176 = arith.constant 0 : index
    %c0_177 = arith.constant 0 : index
    %268 = vector.load %arg27[%c1_175, %c0_176, %c0_177] : memref<3x64x64xbf16, #tpu.memory_space<vmem>>, vector<1x64x64xbf16>
    %269 = vector.shape_cast %268 : vector<1x64x64xbf16> to vector<64x64xbf16>
    %cst_178 = arith.constant dense<0.000000e+00> : vector<8x64xf32>
    %270 = tpu.matmul %256, %269, %cst_178 {dimension_numbers = #tpu.dot_dimension_numbers<[1], [0], [0], [1], [0, 0, 1, 1], [], []>} : vector<8x64xbf16>, vector<64x64xbf16>, vector<8x64xf32> -> vector<8x64xf32>
    %271 = arith.addf %267, %270 : vector<8x64xf32>
    %c2_179 = arith.constant 2 : index
    %c0_180 = arith.constant 0 : index
    %c0_181 = arith.constant 0 : index
    %272 = vector.load %arg27[%c2_179, %c0_180, %c0_181] : memref<3x64x64xbf16, #tpu.memory_space<vmem>>, vector<1x64x64xbf16>
    %273 = vector.shape_cast %272 : vector<1x64x64xbf16> to vector<64x64xbf16>
    %cst_182 = arith.constant dense<0.000000e+00> : vector<8x64xf32>
    %274 = tpu.matmul %264, %273, %cst_182 {dimension_numbers = #tpu.dot_dimension_numbers<[1], [0], [0], [1], [0, 0, 1, 1], [], []>} : vector<8x64xbf16>, vector<64x64xbf16>, vector<8x64xf32> -> vector<8x64xf32>
    %275 = arith.addf %271, %274 : vector<8x64xf32>
    %c0_183 = arith.constant 0 : index
    %c0_184 = arith.constant 0 : index
    %276 = vector.load %arg26[%c0_183, %c0_184] : memref<1x64xf32, #tpu.memory_space<vmem>>, vector<1x64xf32>
    %277 = vector.broadcast %276 : vector<1x64xf32> to vector<8x64xf32>
    %278 = arith.addf %275, %277 : vector<8x64xf32>
    %279 = arith.addf %278, %230 : vector<8x64xf32>
    %cst_185 = arith.constant 0.000000e+00 : f32
    %280 = vector.broadcast %cst_185 : f32 to vector<8x64xf32>
    %281 = arith.maximumf %279, %280 : vector<8x64xf32>
    %282 = arith.truncf %281 : vector<8x64xf32> to vector<8x64xbf16>
    %c1_i32_186 = arith.constant 1 : i32
    %283 = tpu.dynamic_rotate %281 by %c1_i32_186 dim 0 : vector<8x64xf32>, i32 -> vector<8x64xf32>
    %284 = vector.broadcast %0 : vector<8x1xf32> to vector<8x64xf32>
    %285 = arith.mulf %283, %284 : vector<8x64xf32>
    %286 = arith.truncf %285 : vector<8x64xf32> to vector<8x64xbf16>
    %c7_i32_187 = arith.constant 7 : i32
    %287 = tpu.dynamic_rotate %281 by %c7_i32_187 dim 0 : vector<8x64xf32>, i32 -> vector<8x64xf32>
    %288 = vector.broadcast %1 : vector<8x1xf32> to vector<8x64xf32>
    %289 = arith.mulf %287, %288 : vector<8x64xf32>
    %290 = arith.truncf %289 : vector<8x64xf32> to vector<8x64xbf16>
    %c0_188 = arith.constant 0 : index
    %c0_189 = arith.constant 0 : index
    %c0_190 = arith.constant 0 : index
    %291 = vector.load %arg29[%c0_188, %c0_189, %c0_190] : memref<3x64x128xbf16, #tpu.memory_space<vmem>>, vector<1x64x128xbf16>
    %292 = vector.shape_cast %291 : vector<1x64x128xbf16> to vector<64x128xbf16>
    %cst_191 = arith.constant dense<0.000000e+00> : vector<8x128xf32>
    %293 = tpu.matmul %286, %292, %cst_191 {dimension_numbers = #tpu.dot_dimension_numbers<[1], [0], [0], [1], [0, 0, 1, 1], [], []>} : vector<8x64xbf16>, vector<64x128xbf16>, vector<8x128xf32> -> vector<8x128xf32>
    %c1_192 = arith.constant 1 : index
    %c0_193 = arith.constant 0 : index
    %c0_194 = arith.constant 0 : index
    %294 = vector.load %arg29[%c1_192, %c0_193, %c0_194] : memref<3x64x128xbf16, #tpu.memory_space<vmem>>, vector<1x64x128xbf16>
    %295 = vector.shape_cast %294 : vector<1x64x128xbf16> to vector<64x128xbf16>
    %cst_195 = arith.constant dense<0.000000e+00> : vector<8x128xf32>
    %296 = tpu.matmul %282, %295, %cst_195 {dimension_numbers = #tpu.dot_dimension_numbers<[1], [0], [0], [1], [0, 0, 1, 1], [], []>} : vector<8x64xbf16>, vector<64x128xbf16>, vector<8x128xf32> -> vector<8x128xf32>
    %297 = arith.addf %293, %296 : vector<8x128xf32>
    %c2_196 = arith.constant 2 : index
    %c0_197 = arith.constant 0 : index
    %c0_198 = arith.constant 0 : index
    %298 = vector.load %arg29[%c2_196, %c0_197, %c0_198] : memref<3x64x128xbf16, #tpu.memory_space<vmem>>, vector<1x64x128xbf16>
    %299 = vector.shape_cast %298 : vector<1x64x128xbf16> to vector<64x128xbf16>
    %cst_199 = arith.constant dense<0.000000e+00> : vector<8x128xf32>
    %300 = tpu.matmul %290, %299, %cst_199 {dimension_numbers = #tpu.dot_dimension_numbers<[1], [0], [0], [1], [0, 0, 1, 1], [], []>} : vector<8x64xbf16>, vector<64x128xbf16>, vector<8x128xf32> -> vector<8x128xf32>
    %301 = arith.addf %297, %300 : vector<8x128xf32>
    %c0_200 = arith.constant 0 : index
    %c0_201 = arith.constant 0 : index
    %302 = vector.load %arg28[%c0_200, %c0_201] : memref<1x128xf32, #tpu.memory_space<vmem>>, vector<1x128xf32>
    %303 = vector.broadcast %302 : vector<1x128xf32> to vector<8x128xf32>
    %304 = arith.addf %301, %303 : vector<8x128xf32>
    %cst_202 = arith.constant 0.000000e+00 : f32
    %305 = vector.broadcast %cst_202 : f32 to vector<8x128xf32>
    %306 = arith.maximumf %304, %305 : vector<8x128xf32>
    %307 = arith.truncf %281 : vector<8x64xf32> to vector<8x64xbf16>
    %c0_203 = arith.constant 0 : index
    %c0_204 = arith.constant 0 : index
    %308 = vector.load %arg33[%c0_203, %c0_204] : memref<64x128xbf16, #tpu.memory_space<vmem>>, vector<64x128xbf16>
    %cst_205 = arith.constant dense<0.000000e+00> : vector<8x128xf32>
    %309 = tpu.matmul %307, %308, %cst_205 {dimension_numbers = #tpu.dot_dimension_numbers<[1], [0], [0], [1], [0, 0, 1, 1], [], []>} : vector<8x64xbf16>, vector<64x128xbf16>, vector<8x128xf32> -> vector<8x128xf32>
    %c0_206 = arith.constant 0 : index
    %c0_207 = arith.constant 0 : index
    %310 = vector.load %arg32[%c0_206, %c0_207] : memref<1x128xf32, #tpu.memory_space<vmem>>, vector<1x128xf32>
    %311 = vector.broadcast %310 : vector<1x128xf32> to vector<8x128xf32>
    %312 = arith.addf %309, %311 : vector<8x128xf32>
    %313 = arith.truncf %306 : vector<8x128xf32> to vector<8x128xbf16>
    %c1_i32_208 = arith.constant 1 : i32
    %314 = tpu.dynamic_rotate %306 by %c1_i32_208 dim 0 : vector<8x128xf32>, i32 -> vector<8x128xf32>
    %315 = vector.broadcast %0 : vector<8x1xf32> to vector<8x128xf32>
    %316 = arith.mulf %314, %315 : vector<8x128xf32>
    %317 = arith.truncf %316 : vector<8x128xf32> to vector<8x128xbf16>
    %c7_i32_209 = arith.constant 7 : i32
    %318 = tpu.dynamic_rotate %306 by %c7_i32_209 dim 0 : vector<8x128xf32>, i32 -> vector<8x128xf32>
    %319 = vector.broadcast %1 : vector<8x1xf32> to vector<8x128xf32>
    %320 = arith.mulf %318, %319 : vector<8x128xf32>
    %321 = arith.truncf %320 : vector<8x128xf32> to vector<8x128xbf16>
    %c0_210 = arith.constant 0 : index
    %c0_211 = arith.constant 0 : index
    %c0_212 = arith.constant 0 : index
    %322 = vector.load %arg31[%c0_210, %c0_211, %c0_212] : memref<3x128x128xbf16, #tpu.memory_space<vmem>>, vector<1x128x128xbf16>
    %323 = vector.shape_cast %322 : vector<1x128x128xbf16> to vector<128x128xbf16>
    %cst_213 = arith.constant dense<0.000000e+00> : vector<8x128xf32>
    %324 = tpu.matmul %317, %323, %cst_213 {dimension_numbers = #tpu.dot_dimension_numbers<[1], [0], [0], [1], [0, 0, 1, 1], [], []>} : vector<8x128xbf16>, vector<128x128xbf16>, vector<8x128xf32> -> vector<8x128xf32>
    %c1_214 = arith.constant 1 : index
    %c0_215 = arith.constant 0 : index
    %c0_216 = arith.constant 0 : index
    %325 = vector.load %arg31[%c1_214, %c0_215, %c0_216] : memref<3x128x128xbf16, #tpu.memory_space<vmem>>, vector<1x128x128xbf16>
    %326 = vector.shape_cast %325 : vector<1x128x128xbf16> to vector<128x128xbf16>
    %cst_217 = arith.constant dense<0.000000e+00> : vector<8x128xf32>
    %327 = tpu.matmul %313, %326, %cst_217 {dimension_numbers = #tpu.dot_dimension_numbers<[1], [0], [0], [1], [0, 0, 1, 1], [], []>} : vector<8x128xbf16>, vector<128x128xbf16>, vector<8x128xf32> -> vector<8x128xf32>
    %328 = arith.addf %324, %327 : vector<8x128xf32>
    %c2_218 = arith.constant 2 : index
    %c0_219 = arith.constant 0 : index
    %c0_220 = arith.constant 0 : index
    %329 = vector.load %arg31[%c2_218, %c0_219, %c0_220] : memref<3x128x128xbf16, #tpu.memory_space<vmem>>, vector<1x128x128xbf16>
    %330 = vector.shape_cast %329 : vector<1x128x128xbf16> to vector<128x128xbf16>
    %cst_221 = arith.constant dense<0.000000e+00> : vector<8x128xf32>
    %331 = tpu.matmul %321, %330, %cst_221 {dimension_numbers = #tpu.dot_dimension_numbers<[1], [0], [0], [1], [0, 0, 1, 1], [], []>} : vector<8x128xbf16>, vector<128x128xbf16>, vector<8x128xf32> -> vector<8x128xf32>
    %332 = arith.addf %328, %331 : vector<8x128xf32>
    %c0_222 = arith.constant 0 : index
    %c0_223 = arith.constant 0 : index
    %333 = vector.load %arg30[%c0_222, %c0_223] : memref<1x128xf32, #tpu.memory_space<vmem>>, vector<1x128xf32>
    %334 = vector.broadcast %333 : vector<1x128xf32> to vector<8x128xf32>
    %335 = arith.addf %332, %334 : vector<8x128xf32>
    %336 = arith.addf %335, %312 : vector<8x128xf32>
    %cst_224 = arith.constant 0.000000e+00 : f32
    %337 = vector.broadcast %cst_224 : f32 to vector<8x128xf32>
    %338 = arith.maximumf %336, %337 : vector<8x128xf32>
    %339 = arith.truncf %338 : vector<8x128xf32> to vector<8x128xbf16>
    %c1_i32_225 = arith.constant 1 : i32
    %340 = tpu.dynamic_rotate %338 by %c1_i32_225 dim 0 : vector<8x128xf32>, i32 -> vector<8x128xf32>
    %341 = vector.broadcast %0 : vector<8x1xf32> to vector<8x128xf32>
    %342 = arith.mulf %340, %341 : vector<8x128xf32>
    %343 = arith.truncf %342 : vector<8x128xf32> to vector<8x128xbf16>
    %c7_i32_226 = arith.constant 7 : i32
    %344 = tpu.dynamic_rotate %338 by %c7_i32_226 dim 0 : vector<8x128xf32>, i32 -> vector<8x128xf32>
    %345 = vector.broadcast %1 : vector<8x1xf32> to vector<8x128xf32>
    %346 = arith.mulf %344, %345 : vector<8x128xf32>
    %347 = arith.truncf %346 : vector<8x128xf32> to vector<8x128xbf16>
    %c0_227 = arith.constant 0 : index
    %c0_228 = arith.constant 0 : index
    %c0_229 = arith.constant 0 : index
    %348 = vector.load %arg35[%c0_227, %c0_228, %c0_229] : memref<3x128x128xbf16, #tpu.memory_space<vmem>>, vector<1x128x128xbf16>
    %349 = vector.shape_cast %348 : vector<1x128x128xbf16> to vector<128x128xbf16>
    %cst_230 = arith.constant dense<0.000000e+00> : vector<8x128xf32>
    %350 = tpu.matmul %343, %349, %cst_230 {dimension_numbers = #tpu.dot_dimension_numbers<[1], [0], [0], [1], [0, 0, 1, 1], [], []>} : vector<8x128xbf16>, vector<128x128xbf16>, vector<8x128xf32> -> vector<8x128xf32>
    %c1_231 = arith.constant 1 : index
    %c0_232 = arith.constant 0 : index
    %c0_233 = arith.constant 0 : index
    %351 = vector.load %arg35[%c1_231, %c0_232, %c0_233] : memref<3x128x128xbf16, #tpu.memory_space<vmem>>, vector<1x128x128xbf16>
    %352 = vector.shape_cast %351 : vector<1x128x128xbf16> to vector<128x128xbf16>
    %cst_234 = arith.constant dense<0.000000e+00> : vector<8x128xf32>
    %353 = tpu.matmul %339, %352, %cst_234 {dimension_numbers = #tpu.dot_dimension_numbers<[1], [0], [0], [1], [0, 0, 1, 1], [], []>} : vector<8x128xbf16>, vector<128x128xbf16>, vector<8x128xf32> -> vector<8x128xf32>
    %354 = arith.addf %350, %353 : vector<8x128xf32>
    %c2_235 = arith.constant 2 : index
    %c0_236 = arith.constant 0 : index
    %c0_237 = arith.constant 0 : index
    %355 = vector.load %arg35[%c2_235, %c0_236, %c0_237] : memref<3x128x128xbf16, #tpu.memory_space<vmem>>, vector<1x128x128xbf16>
    %356 = vector.shape_cast %355 : vector<1x128x128xbf16> to vector<128x128xbf16>
    %cst_238 = arith.constant dense<0.000000e+00> : vector<8x128xf32>
    %357 = tpu.matmul %347, %356, %cst_238 {dimension_numbers = #tpu.dot_dimension_numbers<[1], [0], [0], [1], [0, 0, 1, 1], [], []>} : vector<8x128xbf16>, vector<128x128xbf16>, vector<8x128xf32> -> vector<8x128xf32>
    %358 = arith.addf %354, %357 : vector<8x128xf32>
    %c0_239 = arith.constant 0 : index
    %c0_240 = arith.constant 0 : index
    %359 = vector.load %arg34[%c0_239, %c0_240] : memref<1x128xf32, #tpu.memory_space<vmem>>, vector<1x128xf32>
    %360 = vector.broadcast %359 : vector<1x128xf32> to vector<8x128xf32>
    %361 = arith.addf %358, %360 : vector<8x128xf32>
    %cst_241 = arith.constant 0.000000e+00 : f32
    %362 = vector.broadcast %cst_241 : f32 to vector<8x128xf32>
    %363 = arith.maximumf %361, %362 : vector<8x128xf32>
    %364 = arith.truncf %363 : vector<8x128xf32> to vector<8x128xbf16>
    %c1_i32_242 = arith.constant 1 : i32
    %365 = tpu.dynamic_rotate %363 by %c1_i32_242 dim 0 : vector<8x128xf32>, i32 -> vector<8x128xf32>
    %366 = vector.broadcast %0 : vector<8x1xf32> to vector<8x128xf32>
    %367 = arith.mulf %365, %366 : vector<8x128xf32>
    %368 = arith.truncf %367 : vector<8x128xf32> to vector<8x128xbf16>
    %c7_i32_243 = arith.constant 7 : i32
    %369 = tpu.dynamic_rotate %363 by %c7_i32_243 dim 0 : vector<8x128xf32>, i32 -> vector<8x128xf32>
    %370 = vector.broadcast %1 : vector<8x1xf32> to vector<8x128xf32>
    %371 = arith.mulf %369, %370 : vector<8x128xf32>
    %372 = arith.truncf %371 : vector<8x128xf32> to vector<8x128xbf16>
    %c0_244 = arith.constant 0 : index
    %c0_245 = arith.constant 0 : index
    %c0_246 = arith.constant 0 : index
    %373 = vector.load %arg37[%c0_244, %c0_245, %c0_246] : memref<3x128x128xbf16, #tpu.memory_space<vmem>>, vector<1x128x128xbf16>
    %374 = vector.shape_cast %373 : vector<1x128x128xbf16> to vector<128x128xbf16>
    %cst_247 = arith.constant dense<0.000000e+00> : vector<8x128xf32>
    %375 = tpu.matmul %368, %374, %cst_247 {dimension_numbers = #tpu.dot_dimension_numbers<[1], [0], [0], [1], [0, 0, 1, 1], [], []>} : vector<8x128xbf16>, vector<128x128xbf16>, vector<8x128xf32> -> vector<8x128xf32>
    %c1_248 = arith.constant 1 : index
    %c0_249 = arith.constant 0 : index
    %c0_250 = arith.constant 0 : index
    %376 = vector.load %arg37[%c1_248, %c0_249, %c0_250] : memref<3x128x128xbf16, #tpu.memory_space<vmem>>, vector<1x128x128xbf16>
    %377 = vector.shape_cast %376 : vector<1x128x128xbf16> to vector<128x128xbf16>
    %cst_251 = arith.constant dense<0.000000e+00> : vector<8x128xf32>
    %378 = tpu.matmul %364, %377, %cst_251 {dimension_numbers = #tpu.dot_dimension_numbers<[1], [0], [0], [1], [0, 0, 1, 1], [], []>} : vector<8x128xbf16>, vector<128x128xbf16>, vector<8x128xf32> -> vector<8x128xf32>
    %379 = arith.addf %375, %378 : vector<8x128xf32>
    %c2_252 = arith.constant 2 : index
    %c0_253 = arith.constant 0 : index
    %c0_254 = arith.constant 0 : index
    %380 = vector.load %arg37[%c2_252, %c0_253, %c0_254] : memref<3x128x128xbf16, #tpu.memory_space<vmem>>, vector<1x128x128xbf16>
    %381 = vector.shape_cast %380 : vector<1x128x128xbf16> to vector<128x128xbf16>
    %cst_255 = arith.constant dense<0.000000e+00> : vector<8x128xf32>
    %382 = tpu.matmul %372, %381, %cst_255 {dimension_numbers = #tpu.dot_dimension_numbers<[1], [0], [0], [1], [0, 0, 1, 1], [], []>} : vector<8x128xbf16>, vector<128x128xbf16>, vector<8x128xf32> -> vector<8x128xf32>
    %383 = arith.addf %379, %382 : vector<8x128xf32>
    %c0_256 = arith.constant 0 : index
    %c0_257 = arith.constant 0 : index
    %384 = vector.load %arg36[%c0_256, %c0_257] : memref<1x128xf32, #tpu.memory_space<vmem>>, vector<1x128xf32>
    %385 = vector.broadcast %384 : vector<1x128xf32> to vector<8x128xf32>
    %386 = arith.addf %383, %385 : vector<8x128xf32>
    %387 = arith.addf %386, %338 : vector<8x128xf32>
    %cst_258 = arith.constant 0.000000e+00 : f32
    %388 = vector.broadcast %cst_258 : f32 to vector<8x128xf32>
    %389 = arith.maximumf %387, %388 : vector<8x128xf32>
    %390 = arith.truncf %389 : vector<8x128xf32> to vector<8x128xbf16>
    %c1_i32_259 = arith.constant 1 : i32
    %391 = tpu.dynamic_rotate %389 by %c1_i32_259 dim 0 : vector<8x128xf32>, i32 -> vector<8x128xf32>
    %392 = vector.broadcast %0 : vector<8x1xf32> to vector<8x128xf32>
    %393 = arith.mulf %391, %392 : vector<8x128xf32>
    %394 = arith.truncf %393 : vector<8x128xf32> to vector<8x128xbf16>
    %c7_i32_260 = arith.constant 7 : i32
    %395 = tpu.dynamic_rotate %389 by %c7_i32_260 dim 0 : vector<8x128xf32>, i32 -> vector<8x128xf32>
    %396 = vector.broadcast %1 : vector<8x1xf32> to vector<8x128xf32>
    %397 = arith.mulf %395, %396 : vector<8x128xf32>
    %398 = arith.truncf %397 : vector<8x128xf32> to vector<8x128xbf16>
    %c0_261 = arith.constant 0 : index
    %c0_262 = arith.constant 0 : index
    %c0_263 = arith.constant 0 : index
    %399 = vector.load %arg39[%c0_261, %c0_262, %c0_263] : memref<3x128x128xbf16, #tpu.memory_space<vmem>>, vector<1x128x128xbf16>
    %400 = vector.shape_cast %399 : vector<1x128x128xbf16> to vector<128x128xbf16>
    %cst_264 = arith.constant dense<0.000000e+00> : vector<8x128xf32>
    %401 = tpu.matmul %394, %400, %cst_264 {dimension_numbers = #tpu.dot_dimension_numbers<[1], [0], [0], [1], [0, 0, 1, 1], [], []>} : vector<8x128xbf16>, vector<128x128xbf16>, vector<8x128xf32> -> vector<8x128xf32>
    %c1_265 = arith.constant 1 : index
    %c0_266 = arith.constant 0 : index
    %c0_267 = arith.constant 0 : index
    %402 = vector.load %arg39[%c1_265, %c0_266, %c0_267] : memref<3x128x128xbf16, #tpu.memory_space<vmem>>, vector<1x128x128xbf16>
    %403 = vector.shape_cast %402 : vector<1x128x128xbf16> to vector<128x128xbf16>
    %cst_268 = arith.constant dense<0.000000e+00> : vector<8x128xf32>
    %404 = tpu.matmul %390, %403, %cst_268 {dimension_numbers = #tpu.dot_dimension_numbers<[1], [0], [0], [1], [0, 0, 1, 1], [], []>} : vector<8x128xbf16>, vector<128x128xbf16>, vector<8x128xf32> -> vector<8x128xf32>
    %405 = arith.addf %401, %404 : vector<8x128xf32>
    %c2_269 = arith.constant 2 : index
    %c0_270 = arith.constant 0 : index
    %c0_271 = arith.constant 0 : index
    %406 = vector.load %arg39[%c2_269, %c0_270, %c0_271] : memref<3x128x128xbf16, #tpu.memory_space<vmem>>, vector<1x128x128xbf16>
    %407 = vector.shape_cast %406 : vector<1x128x128xbf16> to vector<128x128xbf16>
    %cst_272 = arith.constant dense<0.000000e+00> : vector<8x128xf32>
    %408 = tpu.matmul %398, %407, %cst_272 {dimension_numbers = #tpu.dot_dimension_numbers<[1], [0], [0], [1], [0, 0, 1, 1], [], []>} : vector<8x128xbf16>, vector<128x128xbf16>, vector<8x128xf32> -> vector<8x128xf32>
    %409 = arith.addf %405, %408 : vector<8x128xf32>
    %c0_273 = arith.constant 0 : index
    %c0_274 = arith.constant 0 : index
    %410 = vector.load %arg38[%c0_273, %c0_274] : memref<1x128xf32, #tpu.memory_space<vmem>>, vector<1x128xf32>
    %411 = vector.broadcast %410 : vector<1x128xf32> to vector<8x128xf32>
    %412 = arith.addf %409, %411 : vector<8x128xf32>
    %cst_275 = arith.constant 0.000000e+00 : f32
    %413 = vector.broadcast %cst_275 : f32 to vector<8x128xf32>
    %414 = arith.maximumf %412, %413 : vector<8x128xf32>
    %415 = arith.truncf %414 : vector<8x128xf32> to vector<8x128xbf16>
    %c1_i32_276 = arith.constant 1 : i32
    %416 = tpu.dynamic_rotate %414 by %c1_i32_276 dim 0 : vector<8x128xf32>, i32 -> vector<8x128xf32>
    %417 = vector.broadcast %0 : vector<8x1xf32> to vector<8x128xf32>
    %418 = arith.mulf %416, %417 : vector<8x128xf32>
    %419 = arith.truncf %418 : vector<8x128xf32> to vector<8x128xbf16>
    %c7_i32_277 = arith.constant 7 : i32
    %420 = tpu.dynamic_rotate %414 by %c7_i32_277 dim 0 : vector<8x128xf32>, i32 -> vector<8x128xf32>
    %421 = vector.broadcast %1 : vector<8x1xf32> to vector<8x128xf32>
    %422 = arith.mulf %420, %421 : vector<8x128xf32>
    %423 = arith.truncf %422 : vector<8x128xf32> to vector<8x128xbf16>
    %c0_278 = arith.constant 0 : index
    %c0_279 = arith.constant 0 : index
    %c0_280 = arith.constant 0 : index
    %424 = vector.load %arg41[%c0_278, %c0_279, %c0_280] : memref<3x128x128xbf16, #tpu.memory_space<vmem>>, vector<1x128x128xbf16>
    %425 = vector.shape_cast %424 : vector<1x128x128xbf16> to vector<128x128xbf16>
    %cst_281 = arith.constant dense<0.000000e+00> : vector<8x128xf32>
    %426 = tpu.matmul %419, %425, %cst_281 {dimension_numbers = #tpu.dot_dimension_numbers<[1], [0], [0], [1], [0, 0, 1, 1], [], []>} : vector<8x128xbf16>, vector<128x128xbf16>, vector<8x128xf32> -> vector<8x128xf32>
    %c1_282 = arith.constant 1 : index
    %c0_283 = arith.constant 0 : index
    %c0_284 = arith.constant 0 : index
    %427 = vector.load %arg41[%c1_282, %c0_283, %c0_284] : memref<3x128x128xbf16, #tpu.memory_space<vmem>>, vector<1x128x128xbf16>
    %428 = vector.shape_cast %427 : vector<1x128x128xbf16> to vector<128x128xbf16>
    %cst_285 = arith.constant dense<0.000000e+00> : vector<8x128xf32>
    %429 = tpu.matmul %415, %428, %cst_285 {dimension_numbers = #tpu.dot_dimension_numbers<[1], [0], [0], [1], [0, 0, 1, 1], [], []>} : vector<8x128xbf16>, vector<128x128xbf16>, vector<8x128xf32> -> vector<8x128xf32>
    %430 = arith.addf %426, %429 : vector<8x128xf32>
    %c2_286 = arith.constant 2 : index
    %c0_287 = arith.constant 0 : index
    %c0_288 = arith.constant 0 : index
    %431 = vector.load %arg41[%c2_286, %c0_287, %c0_288] : memref<3x128x128xbf16, #tpu.memory_space<vmem>>, vector<1x128x128xbf16>
    %432 = vector.shape_cast %431 : vector<1x128x128xbf16> to vector<128x128xbf16>
    %cst_289 = arith.constant dense<0.000000e+00> : vector<8x128xf32>
    %433 = tpu.matmul %423, %432, %cst_289 {dimension_numbers = #tpu.dot_dimension_numbers<[1], [0], [0], [1], [0, 0, 1, 1], [], []>} : vector<8x128xbf16>, vector<128x128xbf16>, vector<8x128xf32> -> vector<8x128xf32>
    %434 = arith.addf %430, %433 : vector<8x128xf32>
    %c0_290 = arith.constant 0 : index
    %c0_291 = arith.constant 0 : index
    %435 = vector.load %arg40[%c0_290, %c0_291] : memref<1x128xf32, #tpu.memory_space<vmem>>, vector<1x128xf32>
    %436 = vector.broadcast %435 : vector<1x128xf32> to vector<8x128xf32>
    %437 = arith.addf %434, %436 : vector<8x128xf32>
    %438 = arith.addf %437, %389 : vector<8x128xf32>
    %cst_292 = arith.constant 0.000000e+00 : f32
    %439 = vector.broadcast %cst_292 : f32 to vector<8x128xf32>
    %440 = arith.maximumf %438, %439 : vector<8x128xf32>
    %441 = arith.truncf %440 : vector<8x128xf32> to vector<8x128xbf16>
    %c1_i32_293 = arith.constant 1 : i32
    %442 = tpu.dynamic_rotate %440 by %c1_i32_293 dim 0 : vector<8x128xf32>, i32 -> vector<8x128xf32>
    %443 = vector.broadcast %0 : vector<8x1xf32> to vector<8x128xf32>
    %444 = arith.mulf %442, %443 : vector<8x128xf32>
    %445 = arith.truncf %444 : vector<8x128xf32> to vector<8x128xbf16>
    %c7_i32_294 = arith.constant 7 : i32
    %446 = tpu.dynamic_rotate %440 by %c7_i32_294 dim 0 : vector<8x128xf32>, i32 -> vector<8x128xf32>
    %447 = vector.broadcast %1 : vector<8x1xf32> to vector<8x128xf32>
    %448 = arith.mulf %446, %447 : vector<8x128xf32>
    %449 = arith.truncf %448 : vector<8x128xf32> to vector<8x128xbf16>
    %c0_295 = arith.constant 0 : index
    %c0_296 = arith.constant 0 : index
    %c0_297 = arith.constant 0 : index
    %450 = vector.load %arg43[%c0_295, %c0_296, %c0_297] : memref<3x128x128xbf16, #tpu.memory_space<vmem>>, vector<1x128x128xbf16>
    %451 = vector.shape_cast %450 : vector<1x128x128xbf16> to vector<128x128xbf16>
    %cst_298 = arith.constant dense<0.000000e+00> : vector<8x128xf32>
    %452 = tpu.matmul %445, %451, %cst_298 {dimension_numbers = #tpu.dot_dimension_numbers<[1], [0], [0], [1], [0, 0, 1, 1], [], []>} : vector<8x128xbf16>, vector<128x128xbf16>, vector<8x128xf32> -> vector<8x128xf32>
    %c1_299 = arith.constant 1 : index
    %c0_300 = arith.constant 0 : index
    %c0_301 = arith.constant 0 : index
    %453 = vector.load %arg43[%c1_299, %c0_300, %c0_301] : memref<3x128x128xbf16, #tpu.memory_space<vmem>>, vector<1x128x128xbf16>
    %454 = vector.shape_cast %453 : vector<1x128x128xbf16> to vector<128x128xbf16>
    %cst_302 = arith.constant dense<0.000000e+00> : vector<8x128xf32>
    %455 = tpu.matmul %441, %454, %cst_302 {dimension_numbers = #tpu.dot_dimension_numbers<[1], [0], [0], [1], [0, 0, 1, 1], [], []>} : vector<8x128xbf16>, vector<128x128xbf16>, vector<8x128xf32> -> vector<8x128xf32>
    %456 = arith.addf %452, %455 : vector<8x128xf32>
    %c2_303 = arith.constant 2 : index
    %c0_304 = arith.constant 0 : index
    %c0_305 = arith.constant 0 : index
    %457 = vector.load %arg43[%c2_303, %c0_304, %c0_305] : memref<3x128x128xbf16, #tpu.memory_space<vmem>>, vector<1x128x128xbf16>
    %458 = vector.shape_cast %457 : vector<1x128x128xbf16> to vector<128x128xbf16>
    %cst_306 = arith.constant dense<0.000000e+00> : vector<8x128xf32>
    %459 = tpu.matmul %449, %458, %cst_306 {dimension_numbers = #tpu.dot_dimension_numbers<[1], [0], [0], [1], [0, 0, 1, 1], [], []>} : vector<8x128xbf16>, vector<128x128xbf16>, vector<8x128xf32> -> vector<8x128xf32>
    %460 = arith.addf %456, %459 : vector<8x128xf32>
    %c0_307 = arith.constant 0 : index
    %c0_308 = arith.constant 0 : index
    %461 = vector.load %arg42[%c0_307, %c0_308] : memref<1x128xf32, #tpu.memory_space<vmem>>, vector<1x128xf32>
    %462 = vector.broadcast %461 : vector<1x128xf32> to vector<8x128xf32>
    %463 = arith.addf %460, %462 : vector<8x128xf32>
    %cst_309 = arith.constant 0.000000e+00 : f32
    %464 = vector.broadcast %cst_309 : f32 to vector<8x128xf32>
    %465 = arith.maximumf %463, %464 : vector<8x128xf32>
    %466 = arith.truncf %465 : vector<8x128xf32> to vector<8x128xbf16>
    %c1_i32_310 = arith.constant 1 : i32
    %467 = tpu.dynamic_rotate %465 by %c1_i32_310 dim 0 : vector<8x128xf32>, i32 -> vector<8x128xf32>
    %468 = vector.broadcast %0 : vector<8x1xf32> to vector<8x128xf32>
    %469 = arith.mulf %467, %468 : vector<8x128xf32>
    %470 = arith.truncf %469 : vector<8x128xf32> to vector<8x128xbf16>
    %c7_i32_311 = arith.constant 7 : i32
    %471 = tpu.dynamic_rotate %465 by %c7_i32_311 dim 0 : vector<8x128xf32>, i32 -> vector<8x128xf32>
    %472 = vector.broadcast %1 : vector<8x1xf32> to vector<8x128xf32>
    %473 = arith.mulf %471, %472 : vector<8x128xf32>
    %474 = arith.truncf %473 : vector<8x128xf32> to vector<8x128xbf16>
    %c0_312 = arith.constant 0 : index
    %c0_313 = arith.constant 0 : index
    %c0_314 = arith.constant 0 : index
    %475 = vector.load %arg45[%c0_312, %c0_313, %c0_314] : memref<3x128x128xbf16, #tpu.memory_space<vmem>>, vector<1x128x128xbf16>
    %476 = vector.shape_cast %475 : vector<1x128x128xbf16> to vector<128x128xbf16>
    %cst_315 = arith.constant dense<0.000000e+00> : vector<8x128xf32>
    %477 = tpu.matmul %470, %476, %cst_315 {dimension_numbers = #tpu.dot_dimension_numbers<[1], [0], [0], [1], [0, 0, 1, 1], [], []>} : vector<8x128xbf16>, vector<128x128xbf16>, vector<8x128xf32> -> vector<8x128xf32>
    %c1_316 = arith.constant 1 : index
    %c0_317 = arith.constant 0 : index
    %c0_318 = arith.constant 0 : index
    %478 = vector.load %arg45[%c1_316, %c0_317, %c0_318] : memref<3x128x128xbf16, #tpu.memory_space<vmem>>, vector<1x128x128xbf16>
    %479 = vector.shape_cast %478 : vector<1x128x128xbf16> to vector<128x128xbf16>
    %cst_319 = arith.constant dense<0.000000e+00> : vector<8x128xf32>
    %480 = tpu.matmul %466, %479, %cst_319 {dimension_numbers = #tpu.dot_dimension_numbers<[1], [0], [0], [1], [0, 0, 1, 1], [], []>} : vector<8x128xbf16>, vector<128x128xbf16>, vector<8x128xf32> -> vector<8x128xf32>
    %481 = arith.addf %477, %480 : vector<8x128xf32>
    %c2_320 = arith.constant 2 : index
    %c0_321 = arith.constant 0 : index
    %c0_322 = arith.constant 0 : index
    %482 = vector.load %arg45[%c2_320, %c0_321, %c0_322] : memref<3x128x128xbf16, #tpu.memory_space<vmem>>, vector<1x128x128xbf16>
    %483 = vector.shape_cast %482 : vector<1x128x128xbf16> to vector<128x128xbf16>
    %cst_323 = arith.constant dense<0.000000e+00> : vector<8x128xf32>
    %484 = tpu.matmul %474, %483, %cst_323 {dimension_numbers = #tpu.dot_dimension_numbers<[1], [0], [0], [1], [0, 0, 1, 1], [], []>} : vector<8x128xbf16>, vector<128x128xbf16>, vector<8x128xf32> -> vector<8x128xf32>
    %485 = arith.addf %481, %484 : vector<8x128xf32>
    %c0_324 = arith.constant 0 : index
    %c0_325 = arith.constant 0 : index
    %486 = vector.load %arg44[%c0_324, %c0_325] : memref<1x128xf32, #tpu.memory_space<vmem>>, vector<1x128xf32>
    %487 = vector.broadcast %486 : vector<1x128xf32> to vector<8x128xf32>
    %488 = arith.addf %485, %487 : vector<8x128xf32>
    %489 = arith.addf %488, %440 : vector<8x128xf32>
    %cst_326 = arith.constant 0.000000e+00 : f32
    %490 = vector.broadcast %cst_326 : f32 to vector<8x128xf32>
    %491 = arith.maximumf %489, %490 : vector<8x128xf32>
    %c0_327 = arith.constant 0 : index
    %c0_328 = arith.constant 0 : index
    %492 = vector.load %arg5[%c0_327, %c0_328] : memref<2x8xbf16, #tpu.memory_space<vmem>>, vector<2x8xbf16>
    %493 = arith.truncf %491 : vector<8x128xf32> to vector<8x128xbf16>
    %cst_329 = arith.constant dense<0.000000e+00> : vector<2x128xf32>
    %494 = tpu.matmul %492, %493, %cst_329 {dimension_numbers = #tpu.dot_dimension_numbers<[1], [0], [0], [1], [0, 0, 1, 1], [], []>} : vector<2x8xbf16>, vector<8x128xbf16>, vector<2x128xf32> -> vector<2x128xf32>
    %cst_330 = arith.constant 2.500000e-01 : f32
    %495 = vector.broadcast %cst_330 : f32 to vector<2x128xf32>
    %496 = arith.mulf %494, %495 : vector<2x128xf32>
    %497 = arith.truncf %496 : vector<2x128xf32> to vector<2x128xbf16>
    %c0_331 = arith.constant 0 : index
    %c0_332 = arith.constant 0 : index
    %498 = vector.load %arg50[%c0_331, %c0_332] : memref<128x128xbf16, #tpu.memory_space<vmem>>, vector<128x128xbf16>
    %cst_333 = arith.constant dense<0.000000e+00> : vector<2x128xf32>
    %499 = tpu.matmul %497, %498, %cst_333 {dimension_numbers = #tpu.dot_dimension_numbers<[1], [0], [0], [1], [0, 0, 1, 1], [], []>} : vector<2x128xbf16>, vector<128x128xbf16>, vector<2x128xf32> -> vector<2x128xf32>
    %c0_334 = arith.constant 0 : index
    %c0_335 = arith.constant 0 : index
    %500 = vector.load %arg49[%c0_334, %c0_335] : memref<1x128xf32, #tpu.memory_space<vmem>>, vector<1x128xf32>
    %501 = vector.broadcast %500 : vector<1x128xf32> to vector<2x128xf32>
    %502 = arith.addf %499, %501 : vector<2x128xf32>
    %cst_336 = arith.constant 0.000000e+00 : f32
    %503 = vector.broadcast %cst_336 : f32 to vector<2x128xf32>
    %504 = arith.maximumf %502, %503 : vector<2x128xf32>
    %505 = arith.truncf %504 : vector<2x128xf32> to vector<2x128xbf16>
    %c0_337 = arith.constant 0 : index
    %c0_338 = arith.constant 0 : index
    %506 = vector.load %arg51[%c0_337, %c0_338] : memref<128x128xbf16, #tpu.memory_space<vmem>>, vector<128x128xbf16>
    %cst_339 = arith.constant dense<0.000000e+00> : vector<2x128xf32>
    %507 = tpu.matmul %505, %506, %cst_339 {dimension_numbers = #tpu.dot_dimension_numbers<[1], [0], [0], [1], [0, 0, 1, 1], [], []>} : vector<2x128xbf16>, vector<128x128xbf16>, vector<2x128xf32> -> vector<2x128xf32>
    %c0_340 = arith.constant 0 : index
    %c0_341 = arith.constant 0 : index
    %508 = vector.load %arg48[%c0_340, %c0_341] : memref<1x128xf32, #tpu.memory_space<vmem>>, vector<1x128xf32>
    %509 = vector.broadcast %508 : vector<1x128xf32> to vector<2x128xf32>
    %510 = arith.addf %507, %509 : vector<2x128xf32>
    %c0_342 = arith.constant 0 : index
    %c0_343 = arith.constant 0 : index
    %511 = vector.load %arg52[%c0_342, %c0_343] : memref<2x128xf32, #tpu.memory_space<vmem>>, vector<2x128xf32>
    tpu.vector_store %arg52[%c0_342, %c0_343], %510 {strides = array<i32>} : memref<2x128xf32, #tpu.memory_space<vmem>>, vector<2x128xf32>,
    return
  }
  func.func @transform_0(%arg0: i32) -> (i32, i32) {
    %c0_i32 = arith.constant 0 : i32
    %c0_i32_0 = arith.constant 0 : i32
    return %arg0, %c0_i32 : i32, i32
  }
  func.func @transform_1(%arg0: i32) -> (i32, i32) {
    %c0_i32 = arith.constant 0 : i32
    %c0_i32_0 = arith.constant 0 : i32
    return %arg0, %c0_i32 : i32, i32
  }
  func.func @transform_2(%arg0: i32) -> (i32, i32) {
    %c0_i32 = arith.constant 0 : i32
    %c0_i32_0 = arith.constant 0 : i32
    %c0_i32_1 = arith.constant 0 : i32
    return %c0_i32, %c0_i32_0 : i32, i32
  }
  func.func @transform_3(%arg0: i32) -> (i32, i32) {
    %c0_i32 = arith.constant 0 : i32
    %c0_i32_0 = arith.constant 0 : i32
    %c0_i32_1 = arith.constant 0 : i32
    return %c0_i32, %c0_i32_0 : i32, i32
  }
  func.func @transform_4(%arg0: i32) -> (i32, i32) {
    %c0_i32 = arith.constant 0 : i32
    %c0_i32_0 = arith.constant 0 : i32
    %c0_i32_1 = arith.constant 0 : i32
    return %c0_i32, %c0_i32_0 : i32, i32
  }
  func.func @transform_5(%arg0: i32) -> (i32, i32) {
    %c0_i32 = arith.constant 0 : i32
    %c0_i32_0 = arith.constant 0 : i32
    %c0_i32_1 = arith.constant 0 : i32
    return %c0_i32, %c0_i32_0 : i32, i32
  }
  func.func @transform_6(%arg0: i32) -> (i32, i32, i32) {
    %c0_i32 = arith.constant 0 : i32
    %c0_i32_0 = arith.constant 0 : i32
    %c0_i32_1 = arith.constant 0 : i32
    %c0_i32_2 = arith.constant 0 : i32
    return %c0_i32, %c0_i32_0, %c0_i32_1 : i32, i32, i32
  }
  func.func @transform_7(%arg0: i32) -> (i32, i32) {
    %c0_i32 = arith.constant 0 : i32
    %c0_i32_0 = arith.constant 0 : i32
    %c0_i32_1 = arith.constant 0 : i32
    return %c0_i32, %c0_i32_0 : i32, i32
  }
  func.func @transform_8(%arg0: i32) -> (i32, i32, i32) {
    %c0_i32 = arith.constant 0 : i32
    %c0_i32_0 = arith.constant 0 : i32
    %c0_i32_1 = arith.constant 0 : i32
    %c0_i32_2 = arith.constant 0 : i32
    return %c0_i32, %c0_i32_0, %c0_i32_1 : i32, i32, i32
  }
  func.func @transform_9(%arg0: i32) -> (i32, i32) {
    %c0_i32 = arith.constant 0 : i32
    %c0_i32_0 = arith.constant 0 : i32
    %c0_i32_1 = arith.constant 0 : i32
    return %c0_i32, %c0_i32_0 : i32, i32
  }
  func.func @transform_10(%arg0: i32) -> (i32, i32, i32) {
    %c0_i32 = arith.constant 0 : i32
    %c0_i32_0 = arith.constant 0 : i32
    %c0_i32_1 = arith.constant 0 : i32
    %c0_i32_2 = arith.constant 0 : i32
    return %c0_i32, %c0_i32_0, %c0_i32_1 : i32, i32, i32
  }
  func.func @transform_11(%arg0: i32) -> (i32, i32) {
    %c0_i32 = arith.constant 0 : i32
    %c0_i32_0 = arith.constant 0 : i32
    %c0_i32_1 = arith.constant 0 : i32
    return %c0_i32, %c0_i32_0 : i32, i32
  }
  func.func @transform_12(%arg0: i32) -> (i32, i32, i32) {
    %c0_i32 = arith.constant 0 : i32
    %c0_i32_0 = arith.constant 0 : i32
    %c0_i32_1 = arith.constant 0 : i32
    %c0_i32_2 = arith.constant 0 : i32
    return %c0_i32, %c0_i32_0, %c0_i32_1 : i32, i32, i32
  }
  func.func @transform_13(%arg0: i32) -> (i32, i32) {
    %c0_i32 = arith.constant 0 : i32
    %c0_i32_0 = arith.constant 0 : i32
    %c0_i32_1 = arith.constant 0 : i32
    return %c0_i32, %c0_i32_0 : i32, i32
  }
  func.func @transform_14(%arg0: i32) -> (i32, i32, i32) {
    %c0_i32 = arith.constant 0 : i32
    %c0_i32_0 = arith.constant 0 : i32
    %c0_i32_1 = arith.constant 0 : i32
    %c0_i32_2 = arith.constant 0 : i32
    return %c0_i32, %c0_i32_0, %c0_i32_1 : i32, i32, i32
  }
  func.func @transform_15(%arg0: i32) -> (i32, i32) {
    %c0_i32 = arith.constant 0 : i32
    %c0_i32_0 = arith.constant 0 : i32
    %c0_i32_1 = arith.constant 0 : i32
    return %c0_i32, %c0_i32_0 : i32, i32
  }
  func.func @transform_16(%arg0: i32) -> (i32, i32, i32) {
    %c0_i32 = arith.constant 0 : i32
    %c0_i32_0 = arith.constant 0 : i32
    %c0_i32_1 = arith.constant 0 : i32
    %c0_i32_2 = arith.constant 0 : i32
    return %c0_i32, %c0_i32_0, %c0_i32_1 : i32, i32, i32
  }
  func.func @transform_17(%arg0: i32) -> (i32, i32) {
    %c0_i32 = arith.constant 0 : i32
    %c0_i32_0 = arith.constant 0 : i32
    %c0_i32_1 = arith.constant 0 : i32
    return %c0_i32, %c0_i32_0 : i32, i32
  }
  func.func @transform_18(%arg0: i32) -> (i32, i32) {
    %c0_i32 = arith.constant 0 : i32
    %c0_i32_0 = arith.constant 0 : i32
    %c0_i32_1 = arith.constant 0 : i32
    return %c0_i32, %c0_i32_0 : i32, i32
  }
  func.func @transform_19(%arg0: i32) -> (i32, i32) {
    %c0_i32 = arith.constant 0 : i32
    %c0_i32_0 = arith.constant 0 : i32
    %c0_i32_1 = arith.constant 0 : i32
    return %c0_i32, %c0_i32_0 : i32, i32
  }
  func.func @transform_20(%arg0: i32) -> (i32, i32, i32) {
    %c0_i32 = arith.constant 0 : i32
    %c0_i32_0 = arith.constant 0 : i32
    %c0_i32_1 = arith.constant 0 : i32
    %c0_i32_2 = arith.constant 0 : i32
    return %c0_i32, %c0_i32_0, %c0_i32_1 : i32, i32, i32
  }
  func.func @transform_21(%arg0: i32) -> (i32, i32) {
    %c0_i32 = arith.constant 0 : i32
    %c0_i32_0 = arith.constant 0 : i32
    %c0_i32_1 = arith.constant 0 : i32
    return %c0_i32, %c0_i32_0 : i32, i32
  }
  func.func @transform_22(%arg0: i32) -> (i32, i32, i32) {
    %c0_i32 = arith.constant 0 : i32
    %c0_i32_0 = arith.constant 0 : i32
    %c0_i32_1 = arith.constant 0 : i32
    %c0_i32_2 = arith.constant 0 : i32
    return %c0_i32, %c0_i32_0, %c0_i32_1 : i32, i32, i32
  }
  func.func @transform_23(%arg0: i32) -> (i32, i32) {
    %c0_i32 = arith.constant 0 : i32
    %c0_i32_0 = arith.constant 0 : i32
    %c0_i32_1 = arith.constant 0 : i32
    return %c0_i32, %c0_i32_0 : i32, i32
  }
  func.func @transform_24(%arg0: i32) -> (i32, i32, i32) {
    %c0_i32 = arith.constant 0 : i32
    %c0_i32_0 = arith.constant 0 : i32
    %c0_i32_1 = arith.constant 0 : i32
    %c0_i32_2 = arith.constant 0 : i32
    return %c0_i32, %c0_i32_0, %c0_i32_1 : i32, i32, i32
  }
  func.func @transform_25(%arg0: i32) -> (i32, i32) {
    %c0_i32 = arith.constant 0 : i32
    %c0_i32_0 = arith.constant 0 : i32
    %c0_i32_1 = arith.constant 0 : i32
    return %c0_i32, %c0_i32_0 : i32, i32
  }
  func.func @transform_26(%arg0: i32) -> (i32, i32, i32) {
    %c0_i32 = arith.constant 0 : i32
    %c0_i32_0 = arith.constant 0 : i32
    %c0_i32_1 = arith.constant 0 : i32
    %c0_i32_2 = arith.constant 0 : i32
    return %c0_i32, %c0_i32_0, %c0_i32_1 : i32, i32, i32
  }
  func.func @transform_27(%arg0: i32) -> (i32, i32) {
    %c0_i32 = arith.constant 0 : i32
    %c0_i32_0 = arith.constant 0 : i32
    %c0_i32_1 = arith.constant 0 : i32
    return %c0_i32, %c0_i32_0 : i32, i32
  }
  func.func @transform_28(%arg0: i32) -> (i32, i32, i32) {
    %c0_i32 = arith.constant 0 : i32
    %c0_i32_0 = arith.constant 0 : i32
    %c0_i32_1 = arith.constant 0 : i32
    %c0_i32_2 = arith.constant 0 : i32
    return %c0_i32, %c0_i32_0, %c0_i32_1 : i32, i32, i32
  }
  func.func @transform_29(%arg0: i32) -> (i32, i32) {
    %c0_i32 = arith.constant 0 : i32
    %c0_i32_0 = arith.constant 0 : i32
    %c0_i32_1 = arith.constant 0 : i32
    return %c0_i32, %c0_i32_0 : i32, i32
  }
  func.func @transform_30(%arg0: i32) -> (i32, i32, i32) {
    %c0_i32 = arith.constant 0 : i32
    %c0_i32_0 = arith.constant 0 : i32
    %c0_i32_1 = arith.constant 0 : i32
    %c0_i32_2 = arith.constant 0 : i32
    return %c0_i32, %c0_i32_0, %c0_i32_1 : i32, i32, i32
  }
  func.func @transform_31(%arg0: i32) -> (i32, i32) {
    %c0_i32 = arith.constant 0 : i32
    %c0_i32_0 = arith.constant 0 : i32
    %c0_i32_1 = arith.constant 0 : i32
    return %c0_i32, %c0_i32_0 : i32, i32
  }
  func.func @transform_32(%arg0: i32) -> (i32, i32) {
    %c0_i32 = arith.constant 0 : i32
    %c0_i32_0 = arith.constant 0 : i32
    %c0_i32_1 = arith.constant 0 : i32
    return %c0_i32, %c0_i32_0 : i32, i32
  }
  func.func @transform_33(%arg0: i32) -> (i32, i32) {
    %c0_i32 = arith.constant 0 : i32
    %c0_i32_0 = arith.constant 0 : i32
    %c0_i32_1 = arith.constant 0 : i32
    return %c0_i32, %c0_i32_0 : i32, i32
  }
  func.func @transform_34(%arg0: i32) -> (i32, i32, i32) {
    %c0_i32 = arith.constant 0 : i32
    %c0_i32_0 = arith.constant 0 : i32
    %c0_i32_1 = arith.constant 0 : i32
    %c0_i32_2 = arith.constant 0 : i32
    return %c0_i32, %c0_i32_0, %c0_i32_1 : i32, i32, i32
  }
  func.func @transform_35(%arg0: i32) -> (i32, i32) {
    %c0_i32 = arith.constant 0 : i32
    %c0_i32_0 = arith.constant 0 : i32
    %c0_i32_1 = arith.constant 0 : i32
    return %c0_i32, %c0_i32_0 : i32, i32
  }
  func.func @transform_36(%arg0: i32) -> (i32, i32, i32) {
    %c0_i32 = arith.constant 0 : i32
    %c0_i32_0 = arith.constant 0 : i32
    %c0_i32_1 = arith.constant 0 : i32
    %c0_i32_2 = arith.constant 0 : i32
    return %c0_i32, %c0_i32_0, %c0_i32_1 : i32, i32, i32
  }
  func.func @transform_37(%arg0: i32) -> (i32, i32) {
    %c0_i32 = arith.constant 0 : i32
    %c0_i32_0 = arith.constant 0 : i32
    %c0_i32_1 = arith.constant 0 : i32
    return %c0_i32, %c0_i32_0 : i32, i32
  }
  func.func @transform_38(%arg0: i32) -> (i32, i32, i32) {
    %c0_i32 = arith.constant 0 : i32
    %c0_i32_0 = arith.constant 0 : i32
    %c0_i32_1 = arith.constant 0 : i32
    %c0_i32_2 = arith.constant 0 : i32
    return %c0_i32, %c0_i32_0, %c0_i32_1 : i32, i32, i32
  }
  func.func @transform_39(%arg0: i32) -> (i32, i32) {
    %c0_i32 = arith.constant 0 : i32
    %c0_i32_0 = arith.constant 0 : i32
    %c0_i32_1 = arith.constant 0 : i32
    return %c0_i32, %c0_i32_0 : i32, i32
  }
  func.func @transform_40(%arg0: i32) -> (i32, i32, i32) {
    %c0_i32 = arith.constant 0 : i32
    %c0_i32_0 = arith.constant 0 : i32
    %c0_i32_1 = arith.constant 0 : i32
    %c0_i32_2 = arith.constant 0 : i32
    return %c0_i32, %c0_i32_0, %c0_i32_1 : i32, i32, i32
  }
  func.func @transform_41(%arg0: i32) -> (i32, i32) {
    %c0_i32 = arith.constant 0 : i32
    %c0_i32_0 = arith.constant 0 : i32
    %c0_i32_1 = arith.constant 0 : i32
    return %c0_i32, %c0_i32_0 : i32, i32
  }
  func.func @transform_42(%arg0: i32) -> (i32, i32, i32) {
    %c0_i32 = arith.constant 0 : i32
    %c0_i32_0 = arith.constant 0 : i32
    %c0_i32_1 = arith.constant 0 : i32
    %c0_i32_2 = arith.constant 0 : i32
    return %c0_i32, %c0_i32_0, %c0_i32_1 : i32, i32, i32
  }
  func.func @transform_43(%arg0: i32) -> (i32, i32) {
    %c0_i32 = arith.constant 0 : i32
    %c0_i32_0 = arith.constant 0 : i32
    %c0_i32_1 = arith.constant 0 : i32
    return %c0_i32, %c0_i32_0 : i32, i32
  }
  func.func @transform_44(%arg0: i32) -> (i32, i32, i32) {
    %c0_i32 = arith.constant 0 : i32
    %c0_i32_0 = arith.constant 0 : i32
    %c0_i32_1 = arith.constant 0 : i32
    %c0_i32_2 = arith.constant 0 : i32
    return %c0_i32, %c0_i32_0, %c0_i32_1 : i32, i32, i32
  }
  func.func @transform_45(%arg0: i32) -> (i32, i32) {
    %c0_i32 = arith.constant 0 : i32
    %c0_i32_0 = arith.constant 0 : i32
    %c0_i32_1 = arith.constant 0 : i32
    return %c0_i32, %c0_i32_0 : i32, i32
  }
  func.func @transform_46(%arg0: i32) -> (i32, i32) {
    %c0_i32 = arith.constant 0 : i32
    %c0_i32_0 = arith.constant 0 : i32
    %c0_i32_1 = arith.constant 0 : i32
    return %c0_i32, %c0_i32_0 : i32, i32
  }
  func.func @transform_47(%arg0: i32) -> (i32, i32) {
    %c0_i32 = arith.constant 0 : i32
    %c0_i32_0 = arith.constant 0 : i32
    %c0_i32_1 = arith.constant 0 : i32
    return %c0_i32, %c0_i32_0 : i32, i32
  }
  func.func @transform_48(%arg0: i32) -> (i32, i32) {
    %c0_i32 = arith.constant 0 : i32
    %c0_i32_0 = arith.constant 0 : i32
    %c0_i32_1 = arith.constant 0 : i32
    return %c0_i32, %c0_i32_0 : i32, i32
  }
  func.func @transform_49(%arg0: i32) -> (i32, i32) {
    %c0_i32 = arith.constant 0 : i32
    %c0_i32_0 = arith.constant 0 : i32
    %c0_i32_1 = arith.constant 0 : i32
    return %c0_i32, %c0_i32_0 : i32, i32
  }
  func.func @transform_50(%arg0: i32) -> (i32, i32) {
    %c0_i32 = arith.constant 0 : i32
    %c0_i32_0 = arith.constant 0 : i32
    %c0_i32_1 = arith.constant 0 : i32
    return %c0_i32, %c0_i32_0 : i32, i32
  }
  func.func @transform_51(%arg0: i32) -> (i32, i32) {
    %c0_i32 = arith.constant 0 : i32
    %c0_i32_0 = arith.constant 0 : i32
    return %arg0, %c0_i32 : i32, i32
  }
}

</mosaic_0001>

<bundles_post_ra>
// kernel: resnet1dcnn_forward.1
= control target key start
LH: loop header
LB: loop body
LE: loop exit
PB: predicated region body
PF: predicated region fallthrough
CT: control target
= control target key end

     0   :  { %s7910_s6 = smov 1   ;;  %s7911_s10 = smov 2   ;;  %s9098_s0 = inlined_call_operand.smem [shape: u32[52], index: -1, kind: input, shape index: {}] }
   0x1   :  { %s7973_s5 = sld [smem:[%s9098_s0]]   ;;  %s7912_s14 = smov 3  }
   0x2   :  { %s7978_s9 = sld [smem:[%s9098_s0 + %s7910_s6]]   ;;  %s7913_s18 = smov 4  }
   0x3   :  { %s7983_s13 = sld [smem:[%s9098_s0 + %s7911_s10]]   ;;  %s7914_s22 = smov 5  }
   0x4   :  { %s7988_s17 = sld [smem:[%s9098_s0 + %s7912_s14]]   ;;  %s7915_s26 = smov 6  }
   0x5   :  { %s7993_s21 = sld [smem:[%s9098_s0 + %s7913_s18]]   ;;  %s7916_s30 = smov 7  }
   0x6   :  { %s7998_s25 = sld [smem:[%s9098_s0 + %s7914_s22]]   ;;  %s7917_s4 = smov 8  }
   0x7   :  { %s8003_s29 = sld [smem:[%s9098_s0 + %s7915_s26]]   ;;  %s7918_s10 = smov 9  }
   0x8   :  { %s8008_s3 = sld [smem:[%s9098_s0 + %s7916_s30]]   ;;  %s7919_s15 = smov 10  }
   0x9   :  { %s8013_s8 = sld [smem:[%s9098_s0 + %s7917_s4]]   ;;  %s7920_s20 = smov 11  }
   0xa   :  { %s8018_s14 = sld [smem:[%s9098_s0 + %s7918_s10]]   ;;  %s7921_s26 = smov 12  }
   0xb   :  { %9114 = sst [smem:[#allocation5_spill]] %s7993_s21  ;;  %s7922_s1 = smov 13  }
   0xc   :  { %s8023_s19 = sld [smem:[%s9098_s0 + %s7919_s15]]   ;;  %s7923_s7 = smov 14  }
   0xd   :  { %s8028_s24 = sld [smem:[%s9098_s0 + %s7920_s20]]   ;;  %s7924_s15 = smov 15  }
   0xe   :  { %s8033_s30 = sld [smem:[%s9098_s0 + %s7921_s26]]   ;;  %s7925_s22 = smov 16  }
   0xf   :  { %s8038_s6 = sld [smem:[%s9098_s0 + %s7922_s1]]   ;;  %s7926_s28 = smov 17  }
  0x10   :  { %s8043_s12 = sld [smem:[%s9098_s0 + %s7923_s7]]   ;;  %s7927_s7 = smov 18  }
  0x11   :  { %s8048_s20 = sld [smem:[%s9098_s0 + %s7924_s15]]   ;;  %s7928_s15 = smov 19  }
  0x12   :  { %s8053_s27 = sld [smem:[%s9098_s0 + %s7925_s22]]   ;;  %s7929_s22 = smov 20  }
  0x13   :  { %9115 = sst [smem:[#allocation6_spill]] %s8028_s24  ;;  %s7956_s16 = smov 47  }
  0x14   :  { %s8058_s4 = sld [smem:[%s9098_s0 + %s7926_s28]]   ;;  %s7930_s28 = smov 21  }
  0x15   :  { %9116 = sst [smem:[#allocation7_spill]] %s8038_s6  ;;  %s7957_s23 = smov 48  }
  0x16   :  { %s8063_s21 = sld [smem:[%s9098_s0 + %s7927_s7]]   ;;  %s7931_s7 = smov 22  }
  0x17   :  { %9117 = sst [smem:[#allocation8_spill]] %s8048_s20  ;;  %s7958_s1 = smov 49  }
  0x18   :  { %9118 = sst [smem:[#allocation9_spill]] %s8053_s27  ;;  %s7959_s10 = smov 50  }
  0x19   :  { %s8068_s20 = sld [smem:[%s9098_s0 + %s7928_s15]]   ;;  %s7932_s15 = smov 23  }
  0x1a   :  { %9119 = sst [smem:[#allocation10_spill]] %s8058_s4 }
  0x1b   :  { %s8073_s6 = sld [smem:[%s9098_s0 + %s7929_s22]]   ;;  %s7933_s22 = smov 24  }
  0x1c   :  { %9120 = sst [smem:[#allocation11_spill]] %s8063_s21 }
  0x1d   :  { %s8078_s4 = sld [smem:[%s9098_s0 + %s7930_s28]]   ;;  %s7934_s28 = smov 25  }
  0x1e   :  { %s8083_s27 = sld [smem:[%s9098_s0 + %s7931_s7]]   ;;  %s7935_s7 = smov 26  }
  0x1f   :  { %9121 = sst [smem:[#allocation12_spill]] %s8068_s20 }
  0x20   :  { %s8088_s20 = sld [smem:[%s9098_s0 + %s7932_s15]]   ;;  %s7936_s15 = smov 27  }
  0x21   :  { %9122 = sst [smem:[#allocation13_spill]] %s8073_s6 }
  0x22   :  { %s8093_s6 = sld [smem:[%s9098_s0 + %s7933_s22]]   ;;  %s7937_s22 = smov 28  }
  0x23   :  { %9123 = sst [smem:[#allocation14_spill]] %s8078_s4 }
  0x24   :  { %9124 = sst [smem:[#allocation15_spill]] %s8083_s27 }
  0x25   :  { %s8098_s4 = sld [smem:[%s9098_s0 + %s7934_s28]]   ;;  %s7938_s28 = smov 29  }
  0x26   :  { %9125 = sst [smem:[#allocation16_spill]] %s8088_s20 }
  0x27   :  { %s8103_s27 = sld [smem:[%s9098_s0 + %s7935_s7]]   ;;  %s7939_s7 = smov 30  }
  0x28   :  { %9126 = sst [smem:[#allocation17_spill]] %s8093_s6 }
  0x29   :  { %s8108_s20 = sld [smem:[%s9098_s0 + %s7936_s15]]   ;;  %s7940_s15 = smov 31  }
  0x2a   :  { %s8113_s6 = sld [smem:[%s9098_s0 + %s7937_s22]]   ;;  %s7941_s22 = smov 32  }
  0x2b   :  { %9127 = sst [smem:[#allocation18_spill]] %s8098_s4 }
  0x2c   :  { %s8118_s4 = sld [smem:[%s9098_s0 + %s7938_s28]]   ;;  %s7942_s28 = smov 33  }
  0x2d   :  { %9128 = sst [smem:[#allocation19_spill]] %s8103_s27 }
  0x2e   :  { %s8123_s27 = sld [smem:[%s9098_s0 + %s7939_s7]]   ;;  %s7943_s7 = smov 34  }
  0x2f   :  { %9129 = sst [smem:[#allocation20_spill]] %s8108_s20 }
  0x30   :  { %9130 = sst [smem:[#allocation21_spill]] %s8113_s6 }
  0x31   :  { %s8128_s20 = sld [smem:[%s9098_s0 + %s7940_s15]]   ;;  %s7944_s15 = smov 35  }
  0x32   :  { %9131 = sst [smem:[#allocation22_spill]] %s8118_s4 }
  0x33   :  { %s8133_s6 = sld [smem:[%s9098_s0 + %s7941_s22]]   ;;  %s7945_s22 = smov 36  }
  0x34   :  { %9132 = sst [smem:[#allocation23_spill]] %s8123_s27 }
  0x35   :  { %s8138_s4 = sld [smem:[%s9098_s0 + %s7942_s28]]   ;;  %s7946_s28 = smov 37  }
  0x36   :  { %s8143_s27 = sld [smem:[%s9098_s0 + %s7943_s7]]   ;;  %s7947_s7 = smov 38  }
  0x37   :  { %9133 = sst [smem:[#allocation24_spill]] %s8128_s20 }
  0x38   :  { %s8148_s20 = sld [smem:[%s9098_s0 + %s7944_s15]]   ;;  %s7948_s15 = smov 39  }
  0x39   :  { %9134 = sst [smem:[#allocation25_spill]] %s8133_s6 }
  0x3a   :  { %s8153_s6 = sld [smem:[%s9098_s0 + %s7945_s22]]   ;;  %s7949_s22 = smov 40  }
  0x3b   :  { %9135 = sst [smem:[#allocation26_spill]] %s8138_s4 }
  0x3c   :  { %9136 = sst [smem:[#allocation27_spill]] %s8143_s27 }
  0x3d   :  { %s8158_s4 = sld [smem:[%s9098_s0 + %s7946_s28]]   ;;  %s7950_s28 = smov 41  }
  0x3e   :  { %9137 = sst [smem:[#allocation28_spill]] %s8148_s20 }
  0x3f   :  { %s8163_s27 = sld [smem:[%s9098_s0 + %s7947_s7]]   ;;  %s7951_s7 = smov 42  }
  0x40   :  { %9138 = sst [smem:[#allocation29_spill]] %s8153_s6 }
  0x41   :  { %s8168_s20 = sld [smem:[%s9098_s0 + %s7948_s15]]   ;;  %s7952_s15 = smov 43  }
  0x42   :  { %s8173_s6 = sld [smem:[%s9098_s0 + %s7949_s22]]   ;;  %s7953_s22 = smov 44  }
  0x43   :  { %9139 = sst [smem:[#allocation30_spill]] %s8158_s4 }
  0x44   :  { %s8178_s4 = sld [smem:[%s9098_s0 + %s7950_s28]]   ;;  %s7954_s28 = smov 45  }
  0x45   :  { %9140 = sst [smem:[#allocation31_spill]] %s8163_s27 }
  0x46   :  { %s8183_s27 = sld [smem:[%s9098_s0 + %s7951_s7]]   ;;  %s7955_s7 = smov 46  }
  0x47   :  { %9141 = sst [smem:[#allocation32_spill]] %s8168_s20 }
  0x48   :  { %9142 = sst [smem:[#allocation33_spill]] %s8173_s6 }
  0x49   :  { %s8188_s20 = sld [smem:[%s9098_s0 + %s7952_s15]]  }
  0x4a   :  { %9143 = sst [smem:[#allocation34_spill]] %s8178_s4 }
  0x4b   :  { %s8193_s6 = sld [smem:[%s9098_s0 + %s7953_s22]]  }
  0x4c   :  { %9144 = sst [smem:[#allocation35_spill]] %s8183_s27 }
  0x4d   :  { %s8198_s4 = sld [smem:[%s9098_s0 + %s7954_s28]]  }
  0x4e   :  { %s5591_s27 = sld [smem:[%s9098_s0 + %s7955_s7]]  }
  0x4f   :  { %9145 = sst [smem:[#allocation36_spill]] %s8188_s20 }
  0x50   :  { %s8206_s20 = sld [smem:[%s9098_s0 + %s7956_s16]]   ;;  %s7960_s16 = smov 51  }
  0x51   :  { %9146 = sst [smem:[#allocation37_spill]] %s8193_s6 }
  0x52   :  { %s8211_s6 = sld [smem:[%s9098_s0 + %s7957_s23]]  }
  0x53   :  { %s8216_s21 = sld [smem:[%s9098_s0 + %s7958_s1]]  }
  0x54   :  { %s8221_s24 = sld [smem:[%s9098_s0 + %s7959_s10]]  }
  0x56   :  { %9147 = sst [smem:[#allocation38_spill]] %s8206_s20 }
  0x57   :  { %s8226_s20 = sld [smem:[%s9098_s0 + %s7960_s16]]  }
  0x58   :  { %v7592_v0 = vld [vmem:[%s5591_s27] sm:$0xff]   ;;  %v7961_v1 = vmov 0.0   ;;  %v7593_v2 = vld [vmem:[%s5591_s27 + $0x8] sm:$0xff]   ;;  %vm238_vm0 = vcmask 261120   ;;  %vm7962_vm1 = vmmov 0   ;;  %v7963_v6 = vmov 0  }
  0x59   :  { %6670 = vmatprep.subr.bf16.mxu0 %v7961_v1  ;;  %6678 = vmatprep.subr.bf16.mxu1 %v7961_v1  ;;  %v212_v3 = vld [vmem:[%s7983_s13] sm:$0xff]  ;;  %v7594_v8 = vld [vmem:[%s8003_s29 + $0x10] sm:$0xff]   ;;  %v7595_v9 = vld [vmem:[%s8003_s29 + $0x18] sm:$0xff]  }
  0x5a   :  { %6671 = vmatpush3.bf16.msra.mxu0 %v7592_v0  ;;  %6679 = vmatpush3.bf16.msra.mxu1 %v7592_v0  ;;  %v219_v4 = vld [vmem:[%s7973_s5] sm:$0xf]  ;;  %v7597_v11 = vld [vmem:[%s8003_s29 + $0x8] sm:$0xff]  }
  0x5b   :  { %6672 = vmatprep.subr.bf16.mxu0 %v7961_v1  ;;  %6680 = vmatprep.subr.bf16.mxu1 %v7961_v1  ;;  %v283_v5 = vld [vmem:[%s7978_s9] sm:$0xf] }
  0x5c   :  { %6674 = vmatprep.mubr.msk.bf16.mxu0 %vm7962_vm1, %v7961_v1  ;;  %6682 = vmatprep.mubr.msk.bf16.mxu1 %vm7962_vm1, %v7961_v1  ;;  %v213_v7 = vld [vmem:[%s7988_s17] sm:$0xff] }
  0x5d   :  { %7591 = vset.pattern.permute.xlu0 %v7963_v6  ;;  %v7596_v10 = vld [vmem:[%s8003_s29] sm:$0xff]  }
  0x5e   :  { %6673 = vmatpush3.bf16.msra.mxu0 %v7593_v2  ;;  %6681 = vmatpush3.bf16.msra.mxu1 %v7593_v2 }
  0x5f   :  { %332 = vperm.xlu0 %7591, %v212_v3   ;;  %6686 = vmatprep.subr.bf16.mxu0 %v7961_v1 }
  0x60   :  { %6694 = vmatprep.subr.bf16.mxu1 %v7961_v1 }
  0x61   :  { %6675 = vmatmul.mubr.msk.bf16.vlgmr.msra.gmra.mrb[0].mxu0 %vm238_vm0, %v219_v4  ;;  %6683 = vmatmul.mubr.msk.bf16.vlgmr.msra.gmra.mrb[0].mxu1 %vm238_vm0, %v283_v5 }
  0x62   :  { %6690 = vmatprep.mubr.msk.bf16.mxu0 %vm7962_vm1, %v7961_v1  ;;  %6698 = vmatprep.mubr.msk.bf16.mxu1 %vm7962_vm1, %v7961_v1 }
  0x63   :  { %344 = vperm.xlu0 %7591, %v213_v7   ;;  %6687 = vmatpush3.bf16.msra.mxu0 %v7594_v8 }
  0x64   :  { %6688 = vmatprep.subr.bf16.mxu0 %v7961_v1  ;;  %6695 = vmatpush3.bf16.msra.mxu1 %v7596_v10 }
  0x65   :  { %6696 = vmatprep.subr.bf16.mxu1 %v7961_v1 }
  0x67   :  { %6689 = vmatpush3.bf16.msra.mxu0 %v7595_v9 }
  0x68   :  { %6702 = vmatprep.subr.bf16.mxu0 %v7961_v1  ;;  %6697 = vmatpush3.bf16.msra.mxu1 %v7597_v11 }
  0x69   :  { %6710 = vmatprep.subr.bf16.mxu1 %v7961_v1 }
  0x6a   :  { %108 = vsyncpa [#allocation3], 0  ;;  %v5597_v12 = vld [vmem:[%s8198_s4] ss:$0 sm:$0xff]  ;;  %v7599_v36 = vld [vmem:[%s8003_s29 + $0x28] sm:$0xff]   ;;  %s9148_s0 = sld [smem:[#allocation6_spill]] }
  0x6b   :  { %v7598_v30 = vld [vmem:[%s8003_s29 + $0x20] sm:$0xff]   ;;  %v7600_v40 = vld [vmem:[%s8013_s8 + $0x10] sm:$0xff]   ;;  %v7601_v41 = vld [vmem:[%s8013_s8 + $0x18] sm:$0xff]   ;;  %s9149_s5 = sld [smem:[#allocation11_spill]]  ;;  %s9150_s9 = sld [smem:[#allocation9_spill]]  ;;  %vm1435_vm2 = vcmask 523264  }
  0x6c   :  { %v7602_v42 = vld [vmem:[%s8013_s8] sm:$0xff]   ;;  %v7603_v43 = vld [vmem:[%s8013_s8 + $0x8] sm:$0xff]   ;;  %v7606_v7 = vld [vmem:[%s8023_s19 + $0x10] sm:$0xff]   ;;  %s9151_s13 = sld [smem:[#allocation13_spill]]  ;;  %s9152_s17 = sld [smem:[#allocation7_spill]]  ;;  %vm5261_vm3 = vcmask 1043456  }
  0x6d   :  { %v5619_v54 = vld [vmem:[%s7998_s25] ss:$0 sm:$0xff]  ;;  %v7605_v3 = vld [vmem:[%s8013_s8 + $0x28] sm:$0xff]   ;;  %v7607_v8 = vld [vmem:[%s8023_s19 + $0x18] sm:$0xff]   ;;  %s9153_s25 = sld [smem:[#allocation10_spill]]  ;;  %s9154_s29 = sld [smem:[#allocation8_spill]] }
  0x6e   :  { %v7604_v61 = vld [vmem:[%s8013_s8 + $0x20] sm:$0xff]   ;;  %v7609_v10 = vld [vmem:[%s8023_s19 + $0x8] sm:$0xff]   ;;  %s9156_s8 = sld [smem:[#allocation12_spill]]  ;;  %s9161_s27 = sld [smem:[#allocation21_spill]]  ;;  %vm5257_vm4 = vcmask 64512  }
  0x6f   :  { %v7608_v9 = vld [vmem:[%s8023_s19] sm:$0xff]   ;;  %s9162_s4 = sld [smem:[#allocation18_spill]]  ;;  %s9163_s23 = sld [smem:[#allocation25_spill]] }
  0x70   :  { %s9164_s22 = sld [smem:[#allocation23_spill]]  ;;  %s9165_s26 = sld [smem:[#allocation27_spill]] }
  0x71   :  { %s9166_s1 = sld [smem:[#allocation20_spill]]  ;;  %s9167_s28 = sld [smem:[#allocation24_spill]] }
  0x72   :  { %s9168_s2 = sld [smem:[#allocation22_spill]]  ;;  %s9169_s10 = sld [smem:[#allocation29_spill]] }
  0x73   :  { %s9170_s7 = sld [smem:[#allocation26_spill]]  ;;  %s9171_s11 = sld [smem:[#allocation31_spill]] }
  0x74   :  { %s9172_s16 = sld [smem:[#allocation28_spill]]  ;;  %s9173_s15 = sld [smem:[#allocation33_spill]] }
  0x75   :  { %s9174_s18 = sld [smem:[#allocation30_spill]] }
  0xde   :  { %v8257_v27 = vpop.permute.xlu0 %332 }
  0xe2   :  { %v8269_v35 = vpop.permute.xlu0 %344 }
 0x134   :  { %v276_v13 = vpop.f32.mrb[0].mxu0  ;;  %v321_v14 = vpop.f32.mrb[0].mxu1 }
 0x135   :  { %v277_v15 = vadd.f32 %v5597_v12, %v276_v13  ;;  %v322_v16 = vadd.f32 %v5597_v12, %v321_v14  ;;  %v6676_v17 = vpop.f32.mrb[1].mxu0  ;;  %v6684_v18 = vpop.f32.mrb[1].mxu1 }
 0x136   :  { %v279_v19 = vpop.f32.mrb[2].mxu0  ;;  %v324_v20 = vpop.f32.mrb[2].mxu1 }
 0x137   :  { %v282_v21 = vmax.f32 %v277_v15, 0.0  ;;  %v327_v22 = vmax.f32 %v322_v16, 0.0  ;;  %v6677_v23 = vpop.f32.mrb[3].mxu0  ;;  %v6685_v24 = vpop.f32.mrb[3].mxu1 }
 0x139   :  { %v328_v25 = vmax.f32 %v282_v21, %v327_v22  ;;  %v329_v26 = vrot.slane %v327_v22, 7  ;;  %v5637_v21 = vld [vmem:[%s8008_s3] ss:$0 sm:$0xff]  ;;  %s9155_s3 = sld [smem:[#allocation15_spill]] }
 0x13b   :  { %v335_v28 = vmul.f32 %v8257_v27, %v329_v26 }
 0x13d   :  { %v8260_v29 = vmax.f32 %v328_v25, %v335_v28 }
 0x13f   :  { %v337_v31 = vpack.c.bf16 %v8260_v29, %v8260_v29  ;;  %v338_v32 = vrot.slane %v8260_v29, 7  ;;  %v341_v33 = vrot.slane %v8260_v29, 1 }
 0x141   :  { %6691 = vmatmul.mubr.msk.bf16.vlgmr.msra.gmra.mrb[4].mxu0 %vm238_vm0, %v337_v31  ;;  %v339_v34 = vmul.f32 %v338_v32, %v8257_v27  ;;  %v347_v38 = vmul.f32 %v8269_v35, %v341_v33  ;;  %v7610_v31 = vld [vmem:[%s8023_s19 + $0x20] sm:$0xff]  }
 0x142   :  { %6703 = vmatpush3.bf16.msra.mxu0 %v7598_v30  ;;  %6706 = vmatprep.mubr.msk.bf16.mxu0 %vm7962_vm1, %v7961_v1 }
 0x143   :  { %v340_v37 = vpack.c.bf16 %v339_v34, %v339_v34  ;;  %6704 = vmatprep.subr.bf16.mxu0 %v7961_v1  ;;  %v348_v39 = vpack.c.bf16 %v347_v38, %v347_v38 }
 0x145   :  { %6699 = vmatmul.mubr.msk.bf16.vlgmr.msra.gmra.mrb[4].mxu1 %vm238_vm0, %v340_v37  ;;  %v7611_v37 = vld [vmem:[%s8023_s19 + $0x28] sm:$0xff]   ;;  %s9158_s19 = sld [smem:[#allocation14_spill]] }
 0x146   :  { %6705 = vmatpush3.bf16.msra.mxu0 %v7599_v36  ;;  %6714 = vmatprep.mubr.msk.bf16.mxu1 %vm7962_vm1, %v7961_v1 }
 0x147   :  { %6718 = vmatprep.subr.bf16.mxu0 %v7961_v1  ;;  %6711 = vmatpush3.bf16.msra.mxu1 %v7600_v40  ;;  %v7612_v40 = vld [vmem:[%s8033_s30 + $0x10] sm:$0xff]  }
 0x148   :  { %6712 = vmatprep.subr.bf16.mxu1 %v7961_v1 }
 0x149   :  { %6707 = vmatmul.mubr.msk.bf16.vlgmr.msra.gmra.mrb[8].mxu0 %vm238_vm0, %v348_v39 }
 0x14a   :  { %6722 = vmatprep.mubr.msk.bf16.mxu0 %vm7962_vm1, %v7961_v1  ;;  %6719 = vmatpush3.bf16.msra.mxu0 %v7602_v42  ;;  %v7614_v42 = vld [vmem:[%s8033_s30] sm:$0xff]  }
 0x14b   :  { %6713 = vmatpush3.bf16.msra.mxu1 %v7601_v41  ;;  %6720 = vmatprep.subr.bf16.mxu0 %v7961_v1  ;;  %v7613_v41 = vld [vmem:[%s8033_s30 + $0x18] sm:$0xff]  }
 0x14c   :  { %6726 = vmatprep.subr.bf16.mxu1 %v7961_v1 }
 0x14e   :  { %6721 = vmatpush3.bf16.msra.mxu0 %v7603_v43  ;;  %v7615_v43 = vld [vmem:[%s8033_s30 + $0x8] sm:$0xff]  }
 0x14f   :  { %6734 = vmatprep.subr.bf16.mxu0 %v7961_v1 }
 0x214   :  { %v407_v44 = vpop.f32.mrb[4].mxu0 }
 0x215   :  { %v6692_v45 = vpop.f32.mrb[5].mxu0 }
 0x216   :  { %v410_v46 = vpop.f32.mrb[6].mxu0 }
 0x217   :  { %v6693_v47 = vpop.f32.mrb[7].mxu0 }
 0x218   :  { %v462_v48 = vpop.f32.mrb[4].mxu1 }
 0x219   :  { %v463_v49 = vadd.f32 %v462_v48, %v407_v44  ;;  %v6700_v50 = vpop.f32.mrb[5].mxu1 }
 0x21a   :  { %v465_v51 = vpop.f32.mrb[6].mxu1 }
 0x21b   :  { %v6701_v52 = vpop.f32.mrb[7].mxu1 }
 0x21c   :  { %v522_v53 = vpop.f32.mrb[8].mxu0 }
 0x21d   :  { %v528_v55 = vadd.f32 %v522_v53, %v463_v49  ;;  %v6708_v56 = vpop.f32.mrb[9].mxu0 }
 0x21e   :  { %v525_v57 = vpop.f32.mrb[10].mxu0 }
 0x21f   :  { %v536_v58 = vadd.f32 %v5619_v54, %v528_v55  ;;  %v6709_v59 = vpop.f32.mrb[11].mxu0  ;;  %v5655_v54 = vld [vmem:[%s8018_s14] ss:$0 sm:$0xff]  ;;  %s9157_s14 = sld [smem:[#allocation17_spill]] }
 0x221   :  { %v537_v60 = vmax.f32 %v536_v58, 0.0 }
 0x223   :  { %v538_v62 = vpack.c.bf16 %v537_v60, %v537_v60  ;;  %v539_v63 = vrot.slane %v537_v60, 7  ;;  %v542_v0 = vrot.slane %v537_v60, 1 }
 0x225   :  { %v540_v2 = vmul.f32 %v539_v63, %v8257_v27  ;;  %6715 = vmatmul.mubr.msk.bf16.vlgmr.msra.gmra.mrb[8].mxu1 %vm238_vm0, %v538_v62  ;;  %v543_v5 = vmul.f32 %v542_v0, %v8269_v35 }
 0x226   :  { %6727 = vmatpush3.bf16.msra.mxu1 %v7604_v61  ;;  %6730 = vmatprep.mubr.msk.bf16.mxu1 %vm7962_vm1, %v7961_v1  ;;  %v7616_v61 = vld [vmem:[%s8033_s30 + $0x20] sm:$0xff]  }
 0x227   :  { %v541_v4 = vpack.c.bf16 %v540_v2, %v540_v2  ;;  %6728 = vmatprep.subr.bf16.mxu1 %v7961_v1  ;;  %v544_v6 = vpack.c.bf16 %v543_v5, %v543_v5 }
 0x229   :  { %6723 = vmatmul.mubr.msk.bf16.vlgmr.msra.gmra.mrb[12].mxu0 %vm238_vm0, %v541_v4 }
 0x22a   :  { %6729 = vmatpush3.bf16.msra.mxu1 %v7605_v3  ;;  %6738 = vmatprep.mubr.msk.bf16.mxu0 %vm7962_vm1, %v7961_v1  ;;  %v7617_v3 = vld [vmem:[%s8033_s30 + $0x28] sm:$0xff]   ;;  %s9159_s30 = sld [smem:[#allocation19_spill]] }
 0x22b   :  { %6742 = vmatprep.subr.bf16.mxu1 %v7961_v1  ;;  %6735 = vmatpush3.bf16.msra.mxu0 %v7606_v7  ;;  %v7618_v7 = vld [vmem:[%s8043_s12 + $0x10] sm:$0xff]  }
 0x22c   :  { %6736 = vmatprep.subr.bf16.mxu0 %v7961_v1 }
 0x22d   :  { %6731 = vmatmul.mubr.msk.bf16.vlgmr.msra.gmra.mrb[12].mxu1 %vm238_vm0, %v544_v6 }
 0x22e   :  { %6746 = vmatprep.mubr.msk.bf16.mxu1 %vm7962_vm1, %v7961_v1  ;;  %6743 = vmatpush3.bf16.msra.mxu1 %v7608_v9  ;;  %v7620_v9 = vld [vmem:[%s8043_s12] sm:$0xff]  }
 0x22f   :  { %6737 = vmatpush3.bf16.msra.mxu0 %v7607_v8  ;;  %6744 = vmatprep.subr.bf16.mxu1 %v7961_v1  ;;  %v7619_v8 = vld [vmem:[%s8043_s12 + $0x18] sm:$0xff]  }
 0x230   :  { %6750 = vmatprep.subr.bf16.mxu0 %v7961_v1 }
 0x232   :  { %6745 = vmatpush3.bf16.msra.mxu1 %v7609_v10  ;;  %v7621_v10 = vld [vmem:[%s8043_s12 + $0x8] sm:$0xff]  }
 0x233   :  { %6758 = vmatprep.subr.bf16.mxu1 %v7961_v1 }
 0x2f8   :  { %v603_v11 = vpop.f32.mrb[8].mxu1 }
 0x2f9   :  { %v6716_v12 = vpop.f32.mrb[9].mxu1 }
 0x2fa   :  { %v606_v13 = vpop.f32.mrb[10].mxu1 }
 0x2fb   :  { %v6717_v14 = vpop.f32.mrb[11].mxu1 }
 0x2fc   :  { %v658_v15 = vpop.f32.mrb[12].mxu0 }
 0x2fd   :  { %v659_v16 = vadd.f32 %v658_v15, %v603_v11  ;;  %v6724_v17 = vpop.f32.mrb[13].mxu0 }
 0x2fe   :  { %v661_v18 = vpop.f32.mrb[14].mxu0 }
 0x2ff   :  { %v6725_v19 = vpop.f32.mrb[15].mxu0 }
 0x300   :  { %v718_v20 = vpop.f32.mrb[12].mxu1 }
 0x301   :  { %v724_v22 = vadd.f32 %v718_v20, %v659_v16  ;;  %v6732_v23 = vpop.f32.mrb[13].mxu1 }
 0x302   :  { %v721_v24 = vpop.f32.mrb[14].mxu1 }
 0x303   :  { %v732_v25 = vadd.f32 %v5637_v21, %v724_v22  ;;  %v6733_v26 = vpop.f32.mrb[15].mxu1  ;;  %v5673_v21 = vld [vmem:[%s9148_s0] ss:$0 sm:$0xff]  ;;  %s9175_s0 = sld [smem:[#allocation35_spill]] }
 0x305   :  { %v733_v28 = vadd.f32 %v732_v25, %v8260_v29 }
 0x307   :  { %v8317_v30 = vmax.f32 %v733_v28, 0.0 }
 0x309   :  { %v736_v32 = vrot.slane %v8317_v30, 7  ;;  %v739_v33 = vrot.slane %v8317_v30, 1  ;;  %v735_v34 = vpack.c.bf16 %v8317_v30, %v8317_v30 }
 0x30b   :  { %6739 = vmatmul.mubr.msk.bf16.vlgmr.msra.gmra.mrb[16].mxu0 %vm238_vm0, %v735_v34  ;;  %v737_v36 = vmul.f32 %v736_v32, %v8257_v27  ;;  %v740_v38 = vmul.f32 %v739_v33, %v8269_v35  ;;  %v7622_v32 = vld [vmem:[%s8043_s12 + $0x20] sm:$0xff]  }
 0x30c   :  { %6751 = vmatpush3.bf16.msra.mxu0 %v7610_v31  ;;  %6754 = vmatprep.mubr.msk.bf16.mxu0 %vm7962_vm1, %v7961_v1 }
 0x30d   :  { %v738_v29 = vpack.c.bf16 %v737_v36, %v737_v36  ;;  %6752 = vmatprep.subr.bf16.mxu0 %v7961_v1  ;;  %v741_v39 = vpack.c.bf16 %v740_v38, %v740_v38  ;;  %v7624_v38 = vld [vmem:[%s9149_s5] sm:$0xff]  }
 0x30f   :  { %6747 = vmatmul.mubr.msk.bf16.vlgmr.msra.gmra.mrb[16].mxu1 %vm238_vm0, %v738_v29  ;;  %v7623_v29 = vld [vmem:[%s8043_s12 + $0x28] sm:$0xff]   ;;  %s9160_s12 = sld [smem:[#allocation16_spill]] }
 0x310   :  { %6753 = vmatpush3.bf16.msra.mxu0 %v7611_v37  ;;  %6762 = vmatprep.mubr.msk.bf16.mxu1 %vm7962_vm1, %v7961_v1 }
 0x311   :  { %6766 = vmatprep.subr.bf16.mxu0 %v7961_v1  ;;  %6759 = vmatpush3.bf16.msra.mxu1 %v7612_v40 }
 0x312   :  { %6760 = vmatprep.subr.bf16.mxu1 %v7961_v1 }
 0x313   :  { %6755 = vmatmul.mubr.msk.bf16.vlgmr.msra.gmra.mrb[20].mxu0 %vm238_vm0, %v741_v39 }
 0x314   :  { %6770 = vmatprep.mubr.msk.bf16.mxu0 %vm7962_vm1, %v7961_v1  ;;  %6767 = vmatpush3.bf16.msra.mxu0 %v7614_v42  ;;  %v7626_v42 = vld [vmem:[%s9150_s9 + $0x20] sm:$0xff]  }
 0x315   :  { %6761 = vmatpush3.bf16.msra.mxu1 %v7613_v41  ;;  %6768 = vmatprep.subr.bf16.mxu0 %v7961_v1 }
 0x316   :  { %6774 = vmatprep.subr.bf16.mxu1 %v7961_v1 }
 0x318   :  { %6769 = vmatpush3.bf16.msra.mxu0 %v7615_v43  ;;  %v7627_v43 = vld [vmem:[%s9150_s9 + $0x28] sm:$0xff]  }
 0x319   :  { %6782 = vmatprep.subr.bf16.mxu0 %v7961_v1 }
 0x3de   :  { %v800_v44 = vpop.f32.mrb[16].mxu0 }
 0x3df   :  { %v6740_v45 = vpop.f32.mrb[17].mxu0 }
 0x3e0   :  { %v803_v46 = vpop.f32.mrb[18].mxu0  ;;  %v7629_v45 = vld [vmem:[%s9150_s9 + $0x38] sm:$0xff]  }
 0x3e1   :  { %v6741_v47 = vpop.f32.mrb[19].mxu0  ;;  %v7638_v46 = vld [vmem:[%s9151_s13 + $0x20] sm:$0xff]  }
 0x3e2   :  { %v855_v48 = vpop.f32.mrb[16].mxu1  ;;  %v7639_v47 = vld [vmem:[%s9151_s13 + $0x28] sm:$0xff]  }
 0x3e3   :  { %v856_v49 = vadd.f32 %v855_v48, %v800_v44  ;;  %v6748_v50 = vpop.f32.mrb[17].mxu1  ;;  %v7628_v44 = vld [vmem:[%s9150_s9 + $0x30] sm:$0xff]  }
 0x3e4   :  { %v858_v51 = vpop.f32.mrb[18].mxu1 }
 0x3e5   :  { %v6749_v52 = vpop.f32.mrb[19].mxu1 }
 0x3e6   :  { %v915_v53 = vpop.f32.mrb[20].mxu0 }
 0x3e7   :  { %v921_v55 = vadd.f32 %v915_v53, %v856_v49  ;;  %v6756_v56 = vpop.f32.mrb[21].mxu0 }
 0x3e8   :  { %v918_v57 = vpop.f32.mrb[22].mxu0 }
 0x3e9   :  { %v929_v58 = vadd.f32 %v5655_v54, %v921_v55  ;;  %v6757_v59 = vpop.f32.mrb[23].mxu0 }
 0x3eb   :  { %v930_v60 = vmax.f32 %v929_v58, 0.0  ;;  %v5691_v58 = vld [vmem:[%s9152_s17] ss:$0 sm:$0xff]  ;;  %s9179_s17 = sld [smem:[#allocation36_spill]] }
 0x3ed   :  { %v931_v62 = vpack.c.bf16 %v930_v60, %v930_v60  ;;  %v932_v63 = vrot.slane %v930_v60, 7  ;;  %v935_v0 = vrot.slane %v930_v60, 1 }
 0x3ef   :  { %v933_v2 = vmul.f32 %v932_v63, %v8257_v27  ;;  %6763 = vmatmul.mubr.msk.bf16.vlgmr.msra.gmra.mrb[20].mxu1 %vm238_vm0, %v931_v62  ;;  %v936_v5 = vmul.f32 %v935_v0, %v8269_v35 }
 0x3f0   :  { %6775 = vmatpush3.bf16.msra.mxu1 %v7616_v61  ;;  %6778 = vmatprep.mubr.msk.bf16.mxu1 %vm7962_vm1, %v7961_v1 }
 0x3f1   :  { %v934_v4 = vpack.c.bf16 %v933_v2, %v933_v2  ;;  %6776 = vmatprep.subr.bf16.mxu1 %v7961_v1  ;;  %v937_v6 = vpack.c.bf16 %v936_v5, %v936_v5  ;;  %v7630_v2 = vld [vmem:[%s9150_s9] sm:$0xff]   ;;  %v7632_v5 = vld [vmem:[%s9150_s9 + $0x10] sm:$0xff]  }
 0x3f3   :  { %6771 = vmatmul.mubr.msk.bf16.vlgmr.msra.gmra.mrb[24].mxu0 %vm238_vm0, %v934_v4  ;;  %v7631_v4 = vld [vmem:[%s9150_s9 + $0x8] sm:$0xff]  }
 0x3f4   :  { %6777 = vmatpush3.bf16.msra.mxu1 %v7617_v3  ;;  %6786 = vmatprep.mubr.msk.bf16.mxu0 %vm7962_vm1, %v7961_v1 }
 0x3f5   :  { %6790 = vmatprep.subr.bf16.mxu1 %v7961_v1  ;;  %6783 = vmatpush3.bf16.msra.mxu0 %v7618_v7  ;;  %v7633_v7 = vld [vmem:[%s9150_s9 + $0x18] sm:$0xff]  }
 0x3f6   :  { %6784 = vmatprep.subr.bf16.mxu0 %v7961_v1 }
 0x3f7   :  { %6779 = vmatmul.mubr.msk.bf16.vlgmr.msra.gmra.mrb[24].mxu1 %vm238_vm0, %v937_v6 }
 0x3f8   :  { %6794 = vmatprep.mubr.msk.bf16.mxu1 %vm7962_vm1, %v7961_v1  ;;  %6791 = vmatpush3.bf16.msra.mxu1 %v7620_v9  ;;  %v7634_v9 = vld [vmem:[%s9150_s9 + $0x40] sm:$0xff]  }
 0x3f9   :  { %6785 = vmatpush3.bf16.msra.mxu0 %v7619_v8  ;;  %6792 = vmatprep.subr.bf16.mxu1 %v7961_v1 }
 0x3fa   :  { %6798 = vmatprep.subr.bf16.mxu0 %v7961_v1 }
 0x3fc   :  { %6793 = vmatpush3.bf16.msra.mxu1 %v7621_v10 }
 0x3fd   :  { %6806 = vmatprep.subr.bf16.mxu1 %v7961_v1 }
 0x4c2   :  { %v996_v11 = vpop.f32.mrb[20].mxu1 }
 0x4c3   :  { %v6764_v12 = vpop.f32.mrb[21].mxu1 }
 0x4c4   :  { %v999_v13 = vpop.f32.mrb[22].mxu1  ;;  %v7636_v12 = vld [vmem:[%s9150_s9 + $0x50] sm:$0xff]  }
 0x4c5   :  { %v6765_v14 = vpop.f32.mrb[23].mxu1 }
 0x4c6   :  { %v1051_v15 = vpop.f32.mrb[24].mxu0  ;;  %v7637_v14 = vld [vmem:[%s9150_s9 + $0x58] sm:$0xff]  }
 0x4c7   :  { %v1052_v16 = vadd.f32 %v1051_v15, %v996_v11  ;;  %v6772_v17 = vpop.f32.mrb[25].mxu0  ;;  %v7635_v11 = vld [vmem:[%s9150_s9 + $0x48] sm:$0xff]   ;;  %s9177_s9 = sld [smem:[#allocation37_spill]] }
 0x4c8   :  { %v1054_v18 = vpop.f32.mrb[26].mxu0  ;;  %v7640_v17 = vld [vmem:[%s9151_s13 + $0x30] sm:$0xff]  }
 0x4c9   :  { %v6773_v19 = vpop.f32.mrb[27].mxu0  ;;  %v7641_v18 = vld [vmem:[%s9151_s13 + $0x38] sm:$0xff]  }
 0x4ca   :  { %v1111_v20 = vpop.f32.mrb[24].mxu1  ;;  %v5692_v19 = vld [vmem:[%s9153_s25] ss:$0 sm:$0xff]  ;;  %s9180_s25 = sld [smem:[#allocation5_spill]] }
 0x4cb   :  { %v1117_v22 = vadd.f32 %v1111_v20, %v1052_v16  ;;  %v6780_v23 = vpop.f32.mrb[25].mxu1 }
 0x4cc   :  { %v1114_v24 = vpop.f32.mrb[26].mxu1 }
 0x4cd   :  { %v1125_v25 = vadd.f32 %v5673_v21, %v1117_v22  ;;  %v6781_v26 = vpop.f32.mrb[27].mxu1  ;;  %v5727_v21 = vld [vmem:[%s9154_s29] ss:$0 sm:$0xff]  ;;  %s7964_s29 = smov [#allocation2]  }
 0x4cf   :  { %v1126_v28 = vadd.f32 %v1125_v25, %v8317_v30  ;;  %v7625_v30 = vld [vmem:[%s9149_s5 + $0x8] sm:$0xff]   ;;  %s9176_s5 = sld [smem:[#allocation32_spill]] }
 0x4d1   :  { %v1127_v31 = vmax.f32 %v1126_v28, 0.0 }
 0x4d3   :  { %v1128_v33 = vpack.c.bf16 %v1127_v31, %v1127_v31  ;;  %v1129_v34 = vrot.slane %v1127_v31, 7  ;;  %v1132_v36 = vrot.slane %v1127_v31, 1  ;;  %v7642_v31 = vld [vmem:[%s9151_s13] sm:$0xff]  }
 0x4d5   :  { %v1130_v37 = vmul.f32 %v1129_v34, %v8257_v27  ;;  %6787 = vmatmul.mubr.msk.bf16.vlgmr.msra.gmra.mrb[28].mxu0 %vm238_vm0, %v1128_v33  ;;  %v1133_v39 = vmul.f32 %v1132_v36, %v8269_v35  ;;  %v7644_v34 = vld [vmem:[%s9151_s13 + $0x10] sm:$0xff]  }
 0x4d6   :  { %6799 = vmatpush3.bf16.msra.mxu0 %v7622_v32  ;;  %6802 = vmatprep.mubr.msk.bf16.mxu0 %vm7962_vm1, %v7961_v1 }
 0x4d7   :  { %v1131_v40 = vpack.c.bf16 %v1130_v37, %v1130_v37  ;;  %6800 = vmatprep.subr.bf16.mxu0 %v7961_v1  ;;  %v1134_v41 = vpack.c.bf16 %v1133_v39, %v1133_v39  ;;  %v7645_v37 = vld [vmem:[%s9151_s13 + $0x18] sm:$0xff]  }
 0x4d9   :  { %6795 = vmatmul.mubr.msk.bf16.vlgmr.msra.gmra.mrb[28].mxu1 %vm238_vm0, %v1131_v40  ;;  %v7647_v40 = vld [vmem:[%s9151_s13 + $0x48] sm:$0xff]  }
 0x4da   :  { %6801 = vmatpush3.bf16.msra.mxu0 %v7623_v29  ;;  %6807 = vmatpush3.bf16.msra.mxu1 %v7624_v38  ;;  %v7646_v38 = vld [vmem:[%s9151_s13 + $0x40] sm:$0xff]  }
 0x4db   :  { %6808 = vmatprep.subr.bf16.mxu1 %v7961_v1  ;;  %6810 = vmatprep.mubr.msk.bf16.mxu1 %vm7962_vm1, %v7961_v1 }
 0x4dc   :  { %6850 = vmatprep.subr.bf16.mxu0 %v7961_v1 }
 0x4dd   :  { %6803 = vmatmul.mubr.msk.bf16.vlgmr.msra.gmra.mrb[32].mxu0 %vm238_vm0, %v1134_v41 }
 0x4de   :  { %6809 = vmatpush3.bf16.msra.mxu1 %v7625_v30  ;;  %6858 = vmatprep.mubr.msk.bf16.mxu0 %vm7962_vm1, %v7961_v1  ;;  %v7648_v30 = vld [vmem:[%s9151_s13 + $0x50] sm:$0xff]  }
 0x4df   :  { %6814 = vmatprep.subr.bf16.mxu1 %v7961_v1  ;;  %6851 = vmatpush3.bf16.msra.mxu0 %v7638_v46  ;;  %v7652_v46 = vld [vmem:[%s9155_s3] sm:$0xff]  }
 0x4e0   :  { %6852 = vmatprep.subr.bf16.mxu0 %v7961_v1 }
 0x4e1   :  { %6811 = vmatmul.mubr.msk.bf16.vlgmr.msra.gmra.mrb[32].mxu1 %vm238_vm0, %v1128_v33  ;;  %v7643_v33 = vld [vmem:[%s9151_s13 + $0x8] sm:$0xff]  }
 0x4e2   :  { %6822 = vmatprep.mubr.msk.bf16.mxu1 %vm7962_vm1, %v7961_v1  ;;  %6815 = vmatpush3.bf16.msra.mxu1 %v7626_v42  ;;  %v7649_v42 = vld [vmem:[%s9151_s13 + $0x58] sm:$0xff]   ;;  %s9178_s13 = sld [smem:[#allocation34_spill]] }
 0x4e3   :  { %6816 = vmatprep.subr.bf16.mxu1 %v7961_v1  ;;  %6853 = vmatpush3.bf16.msra.mxu0 %v7639_v47  ;;  %v7651_v47 = vld [vmem:[%s9155_s3 + $0x28] sm:$0xff]  }
 0x4e4   :  { %6854 = vmatprep.subr.bf16.mxu0 %v7961_v1 }
 0x4e6   :  { %6817 = vmatpush3.bf16.msra.mxu1 %v7627_v43 }
 0x4e7   :  { %6818 = vmatprep.subr.bf16.mxu1 %v7961_v1  ;;  %6855 = vmatpush3.bf16.msra.mxu0 %v7640_v17 }
 0x4e8   :  { %6856 = vmatprep.subr.bf16.mxu0 %v7961_v1 }
 0x4ea   :  { %6819 = vmatpush3.bf16.msra.mxu1 %v7628_v44 }
 0x4eb   :  { %6820 = vmatprep.subr.bf16.mxu1 %v7961_v1  ;;  %6857 = vmatpush3.bf16.msra.mxu0 %v7641_v18  ;;  %v7662_v18 = vld [vmem:[%s9157_s14 + $0x20] sm:$0xff]  }
 0x4ec   :  { %6862 = vmatprep.subr.bf16.mxu0 %v7961_v1 }
 0x4ee   :  { %6821 = vmatpush3.bf16.msra.mxu1 %v7629_v45  ;;  %v7650_v45 = vld [vmem:[%s9155_s3 + $0x20] sm:$0xff]  }
 0x4ef   :  { %6826 = vmatprep.subr.bf16.mxu1 %v7961_v1 }
 0x5a8   :  { %v1193_v48 = vpop.f32.mrb[28].mxu0 }
 0x5a9   :  { %v6788_v49 = vpop.f32.mrb[29].mxu0 }
 0x5aa   :  { %v1196_v50 = vpop.f32.mrb[30].mxu0  ;;  %v7654_v49 = vld [vmem:[%s9155_s3 + $0x8] sm:$0xff]  }
 0x5ab   :  { %v6789_v51 = vpop.f32.mrb[31].mxu0  ;;  %v7655_v50 = vld [vmem:[%s9155_s3 + $0x38] sm:$0xff]  }
 0x5ac   :  { %v1248_v52 = vpop.f32.mrb[28].mxu1  ;;  %v7656_v51 = vld [vmem:[%s9155_s3 + $0x10] sm:$0xff]  }
 0x5ad   :  { %v1249_v53 = vadd.f32 %v1248_v52, %v1193_v48  ;;  %v6796_v54 = vpop.f32.mrb[29].mxu1  ;;  %v7653_v48 = vld [vmem:[%s9155_s3 + $0x30] sm:$0xff]   ;;  %v7658_v52 = vld [vmem:[%s9155_s3 + $0x18] sm:$0xff]  }
 0x5ae   :  { %v1251_v55 = vpop.f32.mrb[30].mxu1 }
 0x5af   :  { %v6797_v56 = vpop.f32.mrb[31].mxu1 }
 0x5b0   :  { %v1308_v57 = vpop.f32.mrb[32].mxu0 }
 0x5b1   :  { %v1314_v59 = vadd.f32 %v1308_v57, %v1249_v53  ;;  %v6804_v60 = vpop.f32.mrb[33].mxu0 }
 0x5b2   :  { %v1311_v61 = vpop.f32.mrb[34].mxu0 }
 0x5b3   :  { %v1322_v62 = vadd.f32 %v5691_v58, %v1314_v59  ;;  %v6805_v63 = vpop.f32.mrb[35].mxu0 }
 0x5b4   :  { %v5759_v63 = vld [vmem:[%s9156_s8] ss:$0 sm:$0xff] }
 0x5b5   :  { %v1323_v0 = vmax.f32 %v1322_v62, 0.0 }
 0x5b7   :  { %v1387_v3 = vpack.c.bf16 %v1323_v0, %v1323_v0  ;;  %v1388_v6 = vrot.slane %v1323_v0, 7  ;;  %v1391_v13 = vrot.slane %v1323_v0, 1 }
 0x5b9   :  { %6823 = vmatmul.mubr.msk.bf16.vlgmr.msra.gmra.mrb[32].mxu1 %vm1435_vm2, %v1387_v3  ;;  %v1389_v8 = vmul.f32 %v1388_v6, %v8257_v27  ;;  %v1392_v15 = vmul.f32 %v1391_v13, %v8269_v35  ;;  %v7660_v13 = vld [vmem:[%s9155_s3 + $0x50] sm:$0xff]  }
 0x5ba   :  { %6827 = vmatpush3.bf16.msra.mxu1 %v7630_v2  ;;  %6834 = vmatprep.mubr.msk.bf16.mxu1 %vm7962_vm1, %v7961_v1 }
 0x5bb   :  { %6828 = vmatprep.subr.bf16.mxu1 %v7961_v1  ;;  %v1390_v10 = vpack.c.bf16 %v1389_v8, %v1389_v8  ;;  %v1393_v16 = vpack.c.bf16 %v1392_v15, %v1392_v15  ;;  %v7661_v15 = vld [vmem:[%s9155_s3 + $0x58] sm:$0xff]  }
 0x5be   :  { %6829 = vmatpush3.bf16.msra.mxu1 %v7631_v4 }
 0x5bf   :  { %6830 = vmatprep.subr.bf16.mxu1 %v7961_v1 }
 0x5c2   :  { %6831 = vmatpush3.bf16.msra.mxu1 %v7632_v5 }
 0x5c3   :  { %6832 = vmatprep.subr.bf16.mxu1 %v7961_v1 }
 0x5c6   :  { %6833 = vmatpush3.bf16.msra.mxu1 %v7633_v7  ;;  %v7657_v7 = vld [vmem:[%s9155_s3 + $0x40] sm:$0xff]  }
 0x5c7   :  { %6838 = vmatprep.subr.bf16.mxu1 %v7961_v1 }
 0x5c9   :  { %6835 = vmatmul.mubr.msk.bf16.vlgmr.msra.gmra.mrb[32].mxu1 %vm1435_vm2, %v1390_v10 }
 0x5ca   :  { %6839 = vmatpush3.bf16.msra.mxu1 %v7634_v9  ;;  %6846 = vmatprep.mubr.msk.bf16.mxu1 %vm7962_vm1, %v7961_v1 }
 0x5cb   :  { %6840 = vmatprep.subr.bf16.mxu1 %v7961_v1 }
 0x5ce   :  { %6841 = vmatpush3.bf16.msra.mxu1 %v7635_v11  ;;  %v7659_v11 = vld [vmem:[%s9155_s3 + $0x48] sm:$0xff]   ;;  %s5538_s3 = sshll.u32 %s7964_s29, 4  ;;  %s5539_s3 = int_to_ptr.vmem [resolvable:$true] %s5538_s3 }
 0x5cf   :  { %6842 = vmatprep.subr.bf16.mxu1 %v7961_v1  ;;  %p7891_p1 = scmp.lt.s32.totalorder %s5539_s3, %s5539_s3 }
 0x5d2   :  { %6843 = vmatpush3.bf16.msra.mxu1 %v7636_v12 }
 0x5d3   :  { %6844 = vmatprep.subr.bf16.mxu1 %v7961_v1 }
 0x5d6   :  { %6845 = vmatpush3.bf16.msra.mxu1 %v7637_v14 }
 0x5d7   :  { %6898 = vmatprep.subr.bf16.mxu1 %v7961_v1 }
 0x5d9   :  { %6847 = vmatmul.mubr.msk.bf16.vlgmr.msra.gmra.mrb[32].mxu1 %vm1435_vm2, %v1393_v16 }
 0x5da   :  { %6906 = vmatprep.mubr.msk.bf16.mxu1 %vm7962_vm1, %v7961_v1  ;;  %6899 = vmatpush3.bf16.msra.mxu1 %v7652_v46 }
 0x5db   :  { %6900 = vmatprep.subr.bf16.mxu1 %v7961_v1 }
 0x5de   :  { %6901 = vmatpush3.bf16.msra.mxu1 %v7654_v49 }
 0x5df   :  { %6902 = vmatprep.subr.bf16.mxu1 %v7961_v1 }
 0x5e2   :  { %6903 = vmatpush3.bf16.msra.mxu1 %v7656_v51  ;;  %v7671_v51 = vld [vmem:[%s9157_s14 + $0x48] sm:$0xff]  }
 0x5e3   :  { %6904 = vmatprep.subr.bf16.mxu1 %v7961_v1 }
 0x5e6   :  { %6905 = vmatpush3.bf16.msra.mxu1 %v7658_v52  ;;  %v7672_v52 = vld [vmem:[%s9157_s14 + $0x50] sm:$0xff]  }
 0x5e7   :  { %6922 = vmatprep.subr.bf16.mxu1 %v7961_v1 }
 0x6ac   :  { %v1616_v20 = vpop.f32.mrb[32].mxu1 }
 0x6ad   :  { %v7508_v22 = vadd.f32 %v5692_v19, %v1616_v20  ;;  %v6848_v23 = vpop.f32.mrb[33].mxu1  ;;  %v7663_v19 = vld [vmem:[%s9157_s14 + $0x28] sm:$0xff]   ;;  %v7664_v20 = vld [vmem:[%s9157_s14] sm:$0xff]  }
 0x6ae   :  { %v1619_v24 = vpop.f32.mrb[34].mxu1  ;;  %v7667_v23 = vld [vmem:[%s9157_s14 + $0x38] sm:$0xff]  }
 0x6af   :  { %v7509_v25 = vadd.f32 %v7508_v22, %v5727_v21  ;;  %v6849_v26 = vpop.f32.mrb[35].mxu1  ;;  %v7665_v21 = vld [vmem:[%s9157_s14 + $0x30] sm:$0xff]   ;;  %v7666_v22 = vld [vmem:[%s9157_s14 + $0x8] sm:$0xff]  }
 0x6b0   :  { %v7668_v24 = vld [vmem:[%s9157_s14 + $0x10] sm:$0xff]  }
 0x6b1   :  { %v8440_v28 = vmax.f32 %v7509_v25, 0.0  ;;  %v7670_v25 = vld [vmem:[%s9157_s14 + $0x18] sm:$0xff]  }
 0x6b3   :  { %v1633_v32 = vpack.c.bf16 %v8440_v28, %v8440_v28  ;;  %v1634_v36 = vrot.slane %v8440_v28, 7  ;;  %v1637_v41 = vrot.slane %v8440_v28, 1 }
 0x6b5   :  { %6859 = vmatmul.mubr.msk.bf16.vlgmr.msra.gmra.mrb[36].mxu0 %vm1435_vm2, %v1633_v32  ;;  %v1635_v29 = vmul.f32 %v1634_v36, %v8257_v27  ;;  %v1638_v43 = vmul.f32 %v1637_v41, %v8269_v35 }
 0x6b6   :  { %6863 = vmatpush3.bf16.msra.mxu0 %v7642_v31  ;;  %6870 = vmatprep.mubr.msk.bf16.mxu0 %vm7962_vm1, %v7961_v1 }
 0x6b7   :  { %6864 = vmatprep.subr.bf16.mxu0 %v7961_v1  ;;  %v1636_v39 = vpack.c.bf16 %v1635_v29, %v1635_v29  ;;  %v1639_v44 = vpack.c.bf16 %v1638_v43, %v1638_v43 }
 0x6ba   :  { %6865 = vmatpush3.bf16.msra.mxu0 %v7643_v33 }
 0x6bb   :  { %6866 = vmatprep.subr.bf16.mxu0 %v7961_v1 }
 0x6be   :  { %6867 = vmatpush3.bf16.msra.mxu0 %v7644_v34 }
 0x6bf   :  { %6868 = vmatprep.subr.bf16.mxu0 %v7961_v1 }
 0x6c2   :  { %6869 = vmatpush3.bf16.msra.mxu0 %v7645_v37 }
 0x6c3   :  { %6874 = vmatprep.subr.bf16.mxu0 %v7961_v1 }
 0x6c5   :  { %6871 = vmatmul.mubr.msk.bf16.vlgmr.msra.gmra.mrb[40].mxu0 %vm1435_vm2, %v1636_v39 }
 0x6c6   :  { %6875 = vmatpush3.bf16.msra.mxu0 %v7646_v38  ;;  %6882 = vmatprep.mubr.msk.bf16.mxu0 %vm7962_vm1, %v7961_v1 }
 0x6c7   :  { %6876 = vmatprep.subr.bf16.mxu0 %v7961_v1 }
 0x6ca   :  { %6877 = vmatpush3.bf16.msra.mxu0 %v7647_v40  ;;  %v5791_v40 = vld [vmem:[%s9158_s19] ss:$0 sm:$0xff] }
 0x6cb   :  { %6878 = vmatprep.subr.bf16.mxu0 %v7961_v1 }
 0x6ce   :  { %6879 = vmatpush3.bf16.msra.mxu0 %v7648_v30 }
 0x6cf   :  { %6880 = vmatprep.subr.bf16.mxu0 %v7961_v1 }
 0x6d2   :  { %6881 = vmatpush3.bf16.msra.mxu0 %v7649_v42 }
 0x6d3   :  { %6886 = vmatprep.subr.bf16.mxu0 %v7961_v1 }
 0x6d5   :  { %6883 = vmatmul.mubr.msk.bf16.vlgmr.msra.gmra.mrb[44].mxu0 %vm1435_vm2, %v1639_v44 }
 0x6d6   :  { %6894 = vmatprep.mubr.msk.bf16.mxu0 %vm7962_vm1, %v7961_v1  ;;  %6887 = vmatpush3.bf16.msra.mxu0 %v7650_v45 }
 0x6d7   :  { %6888 = vmatprep.subr.bf16.mxu0 %v7961_v1 }
 0x6da   :  { %6889 = vmatpush3.bf16.msra.mxu0 %v7651_v47  ;;  %v7669_v47 = vld [vmem:[%s9157_s14 + $0x40] sm:$0xff]  }
 0x6db   :  { %6890 = vmatprep.subr.bf16.mxu0 %v7961_v1 }
 0x6de   :  { %6891 = vmatpush3.bf16.msra.mxu0 %v7653_v48 }
 0x6df   :  { %6892 = vmatprep.subr.bf16.mxu0 %v7961_v1 }
 0x6e2   :  { %6893 = vmatpush3.bf16.msra.mxu0 %v7655_v50 }
 0x6e3   :  { %6910 = vmatprep.subr.bf16.mxu0 %v7961_v1 }
 0x788   :  { %v1718_v53 = vpop.f32.mrb[36].mxu0 }
 0x789   :  { %v6860_v54 = vpop.f32.mrb[37].mxu0 }
 0x78a   :  { %v1721_v55 = vpop.f32.mrb[38].mxu0  ;;  %v7673_v54 = vld [vmem:[%s9157_s14 + $0x58] sm:$0xff]  }
 0x78b   :  { %v6861_v56 = vpop.f32.mrb[39].mxu0 }
 0x798   :  { %v1785_v57 = vpop.f32.mrb[40].mxu0 }
 0x799   :  { %v1786_v58 = vadd.f32 %v1785_v57, %v1718_v53  ;;  %v6872_v59 = vpop.f32.mrb[41].mxu0  ;;  %v7674_v57 = vld [vmem:[%s9159_s30 + $0x20] sm:$0xff]  }
 0x79a   :  { %v1788_v60 = vpop.f32.mrb[42].mxu0  ;;  %v7675_v59 = vld [vmem:[%s9159_s30 + $0x28] sm:$0xff]  }
 0x79b   :  { %v6873_v61 = vpop.f32.mrb[43].mxu0  ;;  %v7677_v60 = vld [vmem:[%s9159_s30 + $0x30] sm:$0xff]  }
 0x79c   :  { %v7678_v61 = vld [vmem:[%s9159_s30 + $0x8] sm:$0xff]  }
 0x7a8   :  { %v1861_v62 = vpop.f32.mrb[44].mxu0 }
 0x7a9   :  { %v1867_v0 = vadd.f32 %v1861_v62, %v1786_v58  ;;  %v6884_v2 = vpop.f32.mrb[45].mxu0  ;;  %v7676_v58 = vld [vmem:[%s9159_s30] sm:$0xff]   ;;  %v7679_v62 = vld [vmem:[%s9159_s30 + $0x38] sm:$0xff]  }
 0x7aa   :  { %v1864_v3 = vpop.f32.mrb[46].mxu0 }
 0x7ab   :  { %v1875_v4 = vadd.f32 %v5759_v63, %v1867_v0  ;;  %v6885_v5 = vpop.f32.mrb[47].mxu0  ;;  %v7680_v63 = vld [vmem:[%s9159_s30 + $0x10] sm:$0xff]   ;;  %v7682_v0 = vld [vmem:[%s9159_s30 + $0x18] sm:$0xff]  }
 0x7ad   :  { %v1876_v6 = vmax.f32 %v1875_v4, 0.0 }
 0x7af   :  { %v1877_v8 = vpack.c.bf16 %v1876_v6, %v1876_v6  ;;  %v1878_v9 = vrot.slane %v1876_v6, 7  ;;  %v1881_v14 = vrot.slane %v1876_v6, 1 }
 0x7b1   :  { %v1879_v10 = vmul.f32 %v1878_v9, %v8257_v27  ;;  %6895 = vmatmul.mubr.msk.bf16.vlgmr.msra.gmra.mrb[48].mxu0 %vm1435_vm2, %v1877_v8  ;;  %v1882_v16 = vmul.f32 %v1881_v14, %v8269_v35 }
 0x7b2   :  { %6911 = vmatpush3.bf16.msra.mxu0 %v7657_v7  ;;  %6918 = vmatprep.mubr.msk.bf16.mxu0 %vm7962_vm1, %v7961_v1 }
 0x7b3   :  { %v1880_v12 = vpack.c.bf16 %v1879_v10, %v1879_v10  ;;  %6912 = vmatprep.subr.bf16.mxu0 %v7961_v1  ;;  %v1883_v17 = vpack.c.bf16 %v1882_v16, %v1882_v16 }
 0x7b5   :  { %6907 = vmatmul.mubr.msk.bf16.vlgmr.msra.gmra.mrb[36].mxu1 %vm1435_vm2, %v1880_v12  ;;  %v5823_v12 = vld [vmem:[%s9160_s12] ss:$0 sm:$0xff] }
 0x7b6   :  { %6913 = vmatpush3.bf16.msra.mxu0 %v7659_v11  ;;  %6930 = vmatprep.mubr.msk.bf16.mxu1 %vm7962_vm1, %v7961_v1 }
 0x7b7   :  { %6914 = vmatprep.subr.bf16.mxu0 %v7961_v1  ;;  %6923 = vmatpush3.bf16.msra.mxu1 %v7662_v18 }
 0x7b8   :  { %6924 = vmatprep.subr.bf16.mxu1 %v7961_v1 }
 0x7ba   :  { %6915 = vmatpush3.bf16.msra.mxu0 %v7660_v13 }
 0x7bb   :  { %6916 = vmatprep.subr.bf16.mxu0 %v7961_v1  ;;  %6925 = vmatpush3.bf16.msra.mxu1 %v7663_v19  ;;  %v7681_v19 = vld [vmem:[%s9159_s30 + $0x40] sm:$0xff]  }
 0x7bc   :  { %6926 = vmatprep.subr.bf16.mxu1 %v7961_v1 }
 0x7be   :  { %6917 = vmatpush3.bf16.msra.mxu0 %v7661_v15 }
 0x7bf   :  { %6934 = vmatprep.subr.bf16.mxu0 %v7961_v1  ;;  %6927 = vmatpush3.bf16.msra.mxu1 %v7665_v21 }
 0x7c0   :  { %6928 = vmatprep.subr.bf16.mxu1 %v7961_v1 }
 0x7c1   :  { %6919 = vmatmul.mubr.msk.bf16.vlgmr.msra.gmra.mrb[52].mxu0 %vm1435_vm2, %v1883_v17 }
 0x7c2   :  { %6942 = vmatprep.mubr.msk.bf16.mxu0 %vm7962_vm1, %v7961_v1  ;;  %6935 = vmatpush3.bf16.msra.mxu0 %v7664_v20 }
 0x7c3   :  { %6936 = vmatprep.subr.bf16.mxu0 %v7961_v1  ;;  %6929 = vmatpush3.bf16.msra.mxu1 %v7667_v23  ;;  %v7683_v23 = vld [vmem:[%s9159_s30 + $0x48] sm:$0xff]  }
 0x7c4   :  { %6946 = vmatprep.subr.bf16.mxu1 %v7961_v1 }
 0x7c6   :  { %6937 = vmatpush3.bf16.msra.mxu0 %v7666_v22 }
 0x7c7   :  { %6938 = vmatprep.subr.bf16.mxu0 %v7961_v1 }
 0x7ca   :  { %6939 = vmatpush3.bf16.msra.mxu0 %v7668_v24 }
 0x7cb   :  { %6940 = vmatprep.subr.bf16.mxu0 %v7961_v1 }
 0x7ce   :  { %6941 = vmatpush3.bf16.msra.mxu0 %v7670_v25  ;;  %v7684_v25 = vld [vmem:[%s9159_s30 + $0x50] sm:$0xff]  }
 0x7cf   :  { %6958 = vmatprep.subr.bf16.mxu0 %v7961_v1 }
 0x884   :  { %v1962_v26 = vpop.f32.mrb[48].mxu0 }
 0x885   :  { %v6896_v31 = vpop.f32.mrb[49].mxu0 }
 0x886   :  { %v1965_v32 = vpop.f32.mrb[50].mxu0  ;;  %v7685_v31 = vld [vmem:[%s9159_s30 + $0x58] sm:$0xff]  }
 0x887   :  { %v6897_v33 = vpop.f32.mrb[51].mxu0 }
 0x888   :  { %v2029_v34 = vpop.f32.mrb[36].mxu1 }
 0x889   :  { %v2030_v36 = vadd.f32 %v2029_v34, %v1962_v26  ;;  %v6908_v37 = vpop.f32.mrb[37].mxu1  ;;  %v7686_v34 = vld [vmem:[%s9161_s27 + $0x20] sm:$0xff]  }
 0x88a   :  { %v2032_v29 = vpop.f32.mrb[38].mxu1  ;;  %v7687_v37 = vld [vmem:[%s9161_s27 + $0x28] sm:$0xff]  }
 0x88b   :  { %v6909_v38 = vpop.f32.mrb[39].mxu1  ;;  %v7689_v29 = vld [vmem:[%s9161_s27 + $0x30] sm:$0xff]  }
 0x88c   :  { %v7690_v38 = vld [vmem:[%s9161_s27 + $0x8] sm:$0xff]  }
 0x894   :  { %v2105_v39 = vpop.f32.mrb[52].mxu0 }
 0x895   :  { %v2111_v30 = vadd.f32 %v2105_v39, %v2030_v36  ;;  %v6920_v41 = vpop.f32.mrb[53].mxu0  ;;  %v7688_v36 = vld [vmem:[%s9161_s27] sm:$0xff]   ;;  %v7691_v39 = vld [vmem:[%s9161_s27 + $0x38] sm:$0xff]  }
 0x896   :  { %v2108_v42 = vpop.f32.mrb[54].mxu0 }
 0x897   :  { %v2119_v43 = vadd.f32 %v5791_v40, %v2111_v30  ;;  %v6921_v44 = vpop.f32.mrb[55].mxu0  ;;  %v7692_v40 = vld [vmem:[%s9161_s27 + $0x10] sm:$0xff]   ;;  %v7693_v30 = vld [vmem:[%s9161_s27 + $0x18] sm:$0xff]  }
 0x899   :  { %v2120_v45 = vadd.f32 %v2119_v43, %v8440_v28 }
 0x89b   :  { %v8527_v46 = vmax.f32 %v2120_v45, 0.0 }
 0x89d   :  { %v2123_v48 = vrot.slane %v8527_v46, 7  ;;  %v2122_v49 = vpack.c.bf16 %v8527_v46, %v8527_v46  ;;  %v2126_v53 = vrot.slane %v8527_v46, 1 }
 0x89f   :  { %6931 = vmatmul.mubr.msk.bf16.vlgmr.msra.gmra.mrb[40].mxu1 %vm1435_vm2, %v2122_v49  ;;  %v2124_v50 = vmul.f32 %v2123_v48, %v8257_v27  ;;  %v2127_v55 = vmul.f32 %v2126_v53, %v8269_v35 }
 0x8a0   :  { %6947 = vmatpush3.bf16.msra.mxu1 %v7669_v47  ;;  %6954 = vmatprep.mubr.msk.bf16.mxu1 %vm7962_vm1, %v7961_v1 }
 0x8a1   :  { %6948 = vmatprep.subr.bf16.mxu1 %v7961_v1  ;;  %v2125_v28 = vpack.c.bf16 %v2124_v50, %v2124_v50  ;;  %v2128_v56 = vpack.c.bf16 %v2127_v55, %v2127_v55 }
 0x8a3   :  { %6943 = vmatmul.mubr.msk.bf16.vlgmr.msra.gmra.mrb[56].mxu0 %vm1435_vm2, %v2125_v28  ;;  %v5855_v28 = vld [vmem:[%s9162_s4] ss:$0 sm:$0xff] }
 0x8a4   :  { %6949 = vmatpush3.bf16.msra.mxu1 %v7671_v51  ;;  %6966 = vmatprep.mubr.msk.bf16.mxu0 %vm7962_vm1, %v7961_v1 }
 0x8a5   :  { %6950 = vmatprep.subr.bf16.mxu1 %v7961_v1  ;;  %6959 = vmatpush3.bf16.msra.mxu0 %v7674_v57 }
 0x8a6   :  { %6960 = vmatprep.subr.bf16.mxu0 %v7961_v1 }
 0x8a8   :  { %6951 = vmatpush3.bf16.msra.mxu1 %v7672_v52 }
 0x8a9   :  { %6952 = vmatprep.subr.bf16.mxu1 %v7961_v1  ;;  %6961 = vmatpush3.bf16.msra.mxu0 %v7675_v59  ;;  %v7694_v59 = vld [vmem:[%s9161_s27 + $0x40] sm:$0xff]  }
 0x8aa   :  { %6962 = vmatprep.subr.bf16.mxu0 %v7961_v1 }
 0x8ac   :  { %6953 = vmatpush3.bf16.msra.mxu1 %v7673_v54 }
 0x8ad   :  { %6970 = vmatprep.subr.bf16.mxu1 %v7961_v1  ;;  %6963 = vmatpush3.bf16.msra.mxu0 %v7677_v60 }
 0x8ae   :  { %6964 = vmatprep.subr.bf16.mxu0 %v7961_v1 }
 0x8af   :  { %6955 = vmatmul.mubr.msk.bf16.vlgmr.msra.gmra.mrb[44].mxu1 %vm1435_vm2, %v2128_v56 }
 0x8b0   :  { %6978 = vmatprep.mubr.msk.bf16.mxu1 %vm7962_vm1, %v7961_v1  ;;  %6971 = vmatpush3.bf16.msra.mxu1 %v7676_v58 }
 0x8b1   :  { %6972 = vmatprep.subr.bf16.mxu1 %v7961_v1  ;;  %6965 = vmatpush3.bf16.msra.mxu0 %v7679_v62 }
 0x8b2   :  { %6982 = vmatprep.subr.bf16.mxu0 %v7961_v1 }
 0x8b4   :  { %6973 = vmatpush3.bf16.msra.mxu1 %v7678_v61 }
 0x8b5   :  { %6974 = vmatprep.subr.bf16.mxu1 %v7961_v1 }
 0x8b8   :  { %6975 = vmatpush3.bf16.msra.mxu1 %v7680_v63  ;;  %v7695_v63 = vld [vmem:[%s9161_s27 + $0x48] sm:$0xff]  }
 0x8b9   :  { %6976 = vmatprep.subr.bf16.mxu1 %v7961_v1 }
 0x8bc   :  { %6977 = vmatpush3.bf16.msra.mxu1 %v7682_v0  ;;  %v7696_v0 = vld [vmem:[%s9163_s23] sm:$0xff]  }
 0x8bd   :  { %6994 = vmatprep.subr.bf16.mxu1 %v7961_v1 }
 0x972   :  { %v2207_v2 = vpop.f32.mrb[40].mxu1 }
 0x973   :  { %v6932_v3 = vpop.f32.mrb[41].mxu1 }
 0x974   :  { %v2210_v4 = vpop.f32.mrb[42].mxu1  ;;  %v7698_v3 = vld [vmem:[%s9163_s23 + $0x8] sm:$0xff]  }
 0x975   :  { %v6933_v5 = vpop.f32.mrb[43].mxu1 }
 0x976   :  { %v2274_v6 = vpop.f32.mrb[56].mxu0  ;;  %v7699_v5 = vld [vmem:[%s9161_s27 + $0x58] sm:$0xff]  }
 0x977   :  { %v2275_v7 = vadd.f32 %v2274_v6, %v2207_v2  ;;  %v6944_v8 = vpop.f32.mrb[57].mxu0  ;;  %v7697_v2 = vld [vmem:[%s9161_s27 + $0x50] sm:$0xff]  }
 0x978   :  { %v2277_v9 = vpop.f32.mrb[58].mxu0  ;;  %v7700_v6 = vld [vmem:[%s9163_s23 + $0x10] sm:$0xff]   ;;  %v7701_v8 = vld [vmem:[%s9163_s23 + $0x18] sm:$0xff]  }
 0x979   :  { %v6945_v10 = vpop.f32.mrb[59].mxu0 }
 0x97a   :  { %v7702_v10 = vld [vmem:[%s9164_s22 + $0x40] sm:$0xff]  }
 0x982   :  { %v2350_v11 = vpop.f32.mrb[44].mxu1 }
 0x983   :  { %v2356_v13 = vadd.f32 %v2350_v11, %v2275_v7  ;;  %v6956_v14 = vpop.f32.mrb[45].mxu1  ;;  %v7703_v11 = vld [vmem:[%s9164_s22 + $0x48] sm:$0xff]  }
 0x984   :  { %v2353_v15 = vpop.f32.mrb[46].mxu1  ;;  %v7706_v14 = vld [vmem:[%s9164_s22 + $0x60] sm:$0xff]  }
 0x985   :  { %v2364_v16 = vadd.f32 %v5823_v12, %v2356_v13  ;;  %v6957_v17 = vpop.f32.mrb[47].mxu1  ;;  %v7704_v12 = vld [vmem:[%s9164_s22 + $0x50] sm:$0xff]   ;;  %v7705_v13 = vld [vmem:[%s9164_s22 + $0x58] sm:$0xff]   ;;  %v7707_v15 = vld [vmem:[%s9164_s22 + $0x68] sm:$0xff]  }
 0x986   :  { %v7709_v17 = vld [vmem:[%s9164_s22 + $0x78] sm:$0xff]  }
 0x987   :  { %v2365_v18 = vmax.f32 %v2364_v16, 0.0  ;;  %v7708_v16 = vld [vmem:[%s9164_s22 + $0x70] sm:$0xff]  }
 0x989   :  { %v2366_v20 = vpack.c.bf16 %v2365_v18, %v2365_v18  ;;  %v2367_v21 = vrot.slane %v2365_v18, 7  ;;  %v2370_v26 = vrot.slane %v2365_v18, 1  ;;  %v7726_v18 = vld [vmem:[%s9165_s26 + $0x40] sm:$0xff]  }
 0x98b   :  { %v2368_v22 = vmul.f32 %v2367_v21, %v8257_v27  ;;  %6967 = vmatmul.mubr.msk.bf16.vlgmr.msra.gmra.mrb[60].mxu0 %vm1435_vm2, %v2366_v20  ;;  %v2371_v32 = vmul.f32 %v2370_v26, %v8269_v35  ;;  %v7728_v20 = vld [vmem:[%s9165_s26 + $0x50] sm:$0xff]   ;;  %v7729_v21 = vld [vmem:[%s9165_s26 + $0x58] sm:$0xff]  }
 0x98c   :  { %6983 = vmatpush3.bf16.msra.mxu0 %v7681_v19  ;;  %6990 = vmatprep.mubr.msk.bf16.mxu0 %vm7962_vm1, %v7961_v1  ;;  %v7727_v19 = vld [vmem:[%s9165_s26 + $0x48] sm:$0xff]  }
 0x98d   :  { %v2369_v24 = vpack.c.bf16 %v2368_v22, %v2368_v22  ;;  %6984 = vmatprep.subr.bf16.mxu0 %v7961_v1  ;;  %v2372_v33 = vpack.c.bf16 %v2371_v32, %v2371_v32  ;;  %v7730_v22 = vld [vmem:[%s9165_s26 + $0x60] sm:$0xff]  }
 0x98f   :  { %6979 = vmatmul.mubr.msk.bf16.vlgmr.msra.gmra.mrb[48].mxu1 %vm1435_vm2, %v2369_v24 }
 0x990   :  { %6985 = vmatpush3.bf16.msra.mxu0 %v7683_v23  ;;  %7002 = vmatprep.mubr.msk.bf16.mxu1 %vm7962_vm1, %v7961_v1  ;;  %v7731_v23 = vld [vmem:[%s9165_s26 + $0x68] sm:$0xff]  }
 0x991   :  { %6986 = vmatprep.subr.bf16.mxu0 %v7961_v1  ;;  %6995 = vmatpush3.bf16.msra.mxu1 %v7686_v34 }
 0x992   :  { %6996 = vmatprep.subr.bf16.mxu1 %v7961_v1 }
 0x994   :  { %6987 = vmatpush3.bf16.msra.mxu0 %v7684_v25 }
 0x995   :  { %6988 = vmatprep.subr.bf16.mxu0 %v7961_v1  ;;  %6997 = vmatpush3.bf16.msra.mxu1 %v7687_v37 }
 0x996   :  { %6998 = vmatprep.subr.bf16.mxu1 %v7961_v1 }
 0x998   :  { %6989 = vmatpush3.bf16.msra.mxu0 %v7685_v31 }
 0x999   :  { %7006 = vmatprep.subr.bf16.mxu0 %v7961_v1  ;;  %6999 = vmatpush3.bf16.msra.mxu1 %v7689_v29 }
 0x99a   :  { %7000 = vmatprep.subr.bf16.mxu1 %v7961_v1 }
 0x99b   :  { %6991 = vmatmul.mubr.msk.bf16.vlgmr.msra.gmra.mrb[64].mxu0 %vm1435_vm2, %v2372_v33 }
 0x99c   :  { %7014 = vmatprep.mubr.msk.bf16.mxu0 %vm7962_vm1, %v7961_v1  ;;  %7007 = vmatpush3.bf16.msra.mxu0 %v7688_v36 }
 0x99d   :  { %7008 = vmatprep.subr.bf16.mxu0 %v7961_v1  ;;  %7001 = vmatpush3.bf16.msra.mxu1 %v7691_v39 }
 0x99e   :  { %7018 = vmatprep.subr.bf16.mxu1 %v7961_v1 }
 0x9a0   :  { %7009 = vmatpush3.bf16.msra.mxu0 %v7690_v38  ;;  %v5887_v38 = vld [vmem:[%s9166_s1] ss:$0 sm:$0xff] }
 0x9a1   :  { %7010 = vmatprep.subr.bf16.mxu0 %v7961_v1 }
 0x9a4   :  { %7011 = vmatpush3.bf16.msra.mxu0 %v7692_v40 }
 0x9a5   :  { %7012 = vmatprep.subr.bf16.mxu0 %v7961_v1 }
 0x9a8   :  { %7013 = vmatpush3.bf16.msra.mxu0 %v7693_v30 }
 0x9a9   :  { %7030 = vmatprep.subr.bf16.mxu0 %v7961_v1 }
 0xa5e   :  { %v2451_v41 = vpop.f32.mrb[60].mxu0 }
 0xa5f   :  { %v6968_v42 = vpop.f32.mrb[61].mxu0 }
 0xa60   :  { %v2454_v43 = vpop.f32.mrb[62].mxu0 }
 0xa61   :  { %v6969_v44 = vpop.f32.mrb[63].mxu0 }
 0xa62   :  { %v2518_v45 = vpop.f32.mrb[48].mxu1  ;;  %v7710_v44 = vld [vmem:[%s9164_s22] sm:$0xff]  }
 0xa63   :  { %v2519_v47 = vadd.f32 %v2518_v45, %v2451_v41  ;;  %v6980_v48 = vpop.f32.mrb[49].mxu1 }
 0xa64   :  { %v2521_v49 = vpop.f32.mrb[50].mxu1  ;;  %v7712_v48 = vld [vmem:[%s9164_s22 + $0x10] sm:$0xff]  }
 0xa65   :  { %v6981_v50 = vpop.f32.mrb[51].mxu1  ;;  %v7713_v49 = vld [vmem:[%s9164_s22 + $0x18] sm:$0xff]  }
 0xa66   :  { %v7714_v50 = vld [vmem:[%s9164_s22 + $0x20] sm:$0xff]  }
 0xa6e   :  { %v2594_v51 = vpop.f32.mrb[64].mxu0 }
 0xa6f   :  { %v2600_v52 = vadd.f32 %v2594_v51, %v2519_v47  ;;  %v6992_v53 = vpop.f32.mrb[65].mxu0  ;;  %v7711_v47 = vld [vmem:[%s9164_s22 + $0x8] sm:$0xff]  }
 0xa70   :  { %v2597_v54 = vpop.f32.mrb[66].mxu0  ;;  %v7715_v51 = vld [vmem:[%s9164_s22 + $0x28] sm:$0xff]   ;;  %v7717_v53 = vld [vmem:[%s9164_s22 + $0x38] sm:$0xff]  }
 0xa71   :  { %v2608_v55 = vadd.f32 %v5855_v28, %v2600_v52  ;;  %v6993_v56 = vpop.f32.mrb[67].mxu0  ;;  %v7716_v28 = vld [vmem:[%s9164_s22 + $0x30] sm:$0xff]  }
 0xa73   :  { %v2609_v57 = vadd.f32 %v2608_v55, %v8527_v46  ;;  %v7718_v55 = vld [vmem:[%s9164_s22 + $0x80] sm:$0xff]  }
 0xa75   :  { %v2610_v58 = vmax.f32 %v2609_v57, 0.0  ;;  %v7719_v57 = vld [vmem:[%s9164_s22 + $0x88] sm:$0xff]  }
 0xa77   :  { %v2611_v60 = vpack.c.bf16 %v2610_v58, %v2610_v58  ;;  %v2612_v61 = vrot.slane %v2610_v58, 7  ;;  %v2615_v4 = vrot.slane %v2610_v58, 1  ;;  %v7720_v58 = vld [vmem:[%s9164_s22 + $0x90] sm:$0xff]  }
 0xa79   :  { %v2613_v62 = vmul.f32 %v2612_v61, %v8257_v27  ;;  %7003 = vmatmul.mubr.msk.bf16.vlgmr.msra.gmra.mrb[52].mxu1 %vm1435_vm2, %v2611_v60  ;;  %v2616_v7 = vmul.f32 %v2615_v4, %v8269_v35  ;;  %v7723_v61 = vld [vmem:[%s9164_s22 + $0xa8] sm:$0xff]   ;;  %v7733_v4 = vld [vmem:[%s9165_s26 + $0x78] sm:$0xff]  }
 0xa7a   :  { %7019 = vmatpush3.bf16.msra.mxu1 %v7694_v59  ;;  %7026 = vmatprep.mubr.msk.bf16.mxu1 %vm7962_vm1, %v7961_v1  ;;  %v7721_v59 = vld [vmem:[%s9164_s22 + $0x98] sm:$0xff]  }
 0xa7b   :  { %7020 = vmatprep.subr.bf16.mxu1 %v7961_v1  ;;  %v2614_v46 = vpack.c.bf16 %v2613_v62, %v2613_v62  ;;  %v2617_v9 = vpack.c.bf16 %v2616_v7, %v2616_v7  ;;  %v7724_v62 = vld [vmem:[%s9164_s22 + $0xb0] sm:$0xff]   ;;  %v5950_v7 = vld [vmem:[%s9168_s2] ss:$0 sm:$0xff] }
 0xa7d   :  { %7015 = vmatmul.mubr.msk.bf16.vlgmr.msra.gmra.mrb[68].mxu0 %vm1435_vm2, %v2614_v46 }
 0xa7e   :  { %7021 = vmatpush3.bf16.msra.mxu1 %v7695_v63  ;;  %7031 = vmatpush3.bf16.msra.mxu0 %v7696_v0  ;;  %v7725_v0 = vld [vmem:[%s9164_s22 + $0xb8] sm:$0xff]  }
 0xa7f   :  { %7022 = vmatprep.subr.bf16.mxu1 %v7961_v1  ;;  %7032 = vmatprep.subr.bf16.mxu0 %v7961_v1 }
 0xa80   :  { %7038 = vmatprep.mubr.msk.bf16.mxu0 %vm7962_vm1, %v7961_v1 }
 0xa82   :  { %7023 = vmatpush3.bf16.msra.mxu1 %v7697_v2  ;;  %7033 = vmatpush3.bf16.msra.mxu0 %v7698_v3  ;;  %v7732_v3 = vld [vmem:[%s9165_s26 + $0x70] sm:$0xff]  }
 0xa83   :  { %7024 = vmatprep.subr.bf16.mxu1 %v7961_v1  ;;  %7034 = vmatprep.subr.bf16.mxu0 %v7961_v1 }
 0xa86   :  { %7025 = vmatpush3.bf16.msra.mxu1 %v7699_v5  ;;  %7035 = vmatpush3.bf16.msra.mxu0 %v7700_v6  ;;  %v5888_v5 = vld [vmem:[%s9167_s28] ss:$0 sm:$0xff] }
 0xa87   :  { %7036 = vmatprep.subr.bf16.mxu0 %v7961_v1  ;;  %7102 = vmatprep.subr.bf16.mxu1 %v7961_v1 }
 0xa89   :  { %7027 = vmatmul.mubr.msk.bf16.vlgmr.msra.gmra.mrb[56].mxu1 %vm1435_vm2, %v2617_v9 }
 0xa8a   :  { %7037 = vmatpush3.bf16.msra.mxu0 %v7701_v8  ;;  %7118 = vmatprep.mubr.msk.bf16.mxu1 %vm7962_vm1, %v7961_v1 }
 0xa8b   :  { %7042 = vmatprep.subr.bf16.mxu0 %v7961_v1  ;;  %7103 = vmatpush3.bf16.msra.mxu1 %v7726_v18  ;;  %v7737_v18 = vld [vmem:[%s9165_s26 + $0x18] sm:$0xff]  }
 0xa8c   :  { %7104 = vmatprep.subr.bf16.mxu1 %v7961_v1 }
 0xa8d   :  { %7039 = vmatmul.mubr.msk.bf16.vlgmr.msra.gmra.mrb[72].mxu0 %vm1435_vm2, %v2611_v60  ;;  %v7722_v60 = vld [vmem:[%s9164_s22 + $0xa0] sm:$0xff]  }
 0xa8e   :  { %7043 = vmatpush3.bf16.msra.mxu0 %v7702_v10  ;;  %7058 = vmatprep.mubr.msk.bf16.mxu0 %vm7962_vm1, %v7961_v1 }
 0xa8f   :  { %7044 = vmatprep.subr.bf16.mxu0 %v7961_v1  ;;  %7105 = vmatpush3.bf16.msra.mxu1 %v7727_v19  ;;  %v7738_v19 = vld [vmem:[%s9165_s26 + $0x20] sm:$0xff]  }
 0xa90   :  { %7106 = vmatprep.subr.bf16.mxu1 %v7961_v1 }
 0xa92   :  { %7045 = vmatpush3.bf16.msra.mxu0 %v7703_v11 }
 0xa93   :  { %7046 = vmatprep.subr.bf16.mxu0 %v7961_v1  ;;  %7107 = vmatpush3.bf16.msra.mxu1 %v7728_v20  ;;  %v7739_v20 = vld [vmem:[%s9165_s26 + $0x28] sm:$0xff]  }
 0xa94   :  { %7108 = vmatprep.subr.bf16.mxu1 %v7961_v1 }
 0xa96   :  { %7047 = vmatpush3.bf16.msra.mxu0 %v7704_v12 }
 0xa97   :  { %7048 = vmatprep.subr.bf16.mxu0 %v7961_v1  ;;  %7109 = vmatpush3.bf16.msra.mxu1 %v7729_v21  ;;  %v7740_v21 = vld [vmem:[%s9165_s26 + $0x30] sm:$0xff]  }
 0xa98   :  { %7110 = vmatprep.subr.bf16.mxu1 %v7961_v1 }
 0xa9a   :  { %7049 = vmatpush3.bf16.msra.mxu0 %v7705_v13 }
 0xa9b   :  { %7050 = vmatprep.subr.bf16.mxu0 %v7961_v1  ;;  %7111 = vmatpush3.bf16.msra.mxu1 %v7730_v22 }
 0xa9c   :  { %7112 = vmatprep.subr.bf16.mxu1 %v7961_v1 }
 0xa9e   :  { %7051 = vmatpush3.bf16.msra.mxu0 %v7706_v14  ;;  %v7734_v14 = vld [vmem:[%s9165_s26] sm:$0xff]  }
 0xa9f   :  { %7052 = vmatprep.subr.bf16.mxu0 %v7961_v1  ;;  %7113 = vmatpush3.bf16.msra.mxu1 %v7731_v23  ;;  %v7741_v23 = vld [vmem:[%s9165_s26 + $0x38] sm:$0xff]  }
 0xaa0   :  { %7114 = vmatprep.subr.bf16.mxu1 %v7961_v1 }
 0xaa2   :  { %7053 = vmatpush3.bf16.msra.mxu0 %v7707_v15 }
 0xaa3   :  { %7054 = vmatprep.subr.bf16.mxu0 %v7961_v1  ;;  %7115 = vmatpush3.bf16.msra.mxu1 %v7732_v3 }
 0xaa4   :  { %7116 = vmatprep.subr.bf16.mxu1 %v7961_v1 }
 0xaa6   :  { %7055 = vmatpush3.bf16.msra.mxu0 %v7708_v16  ;;  %v7735_v16 = vld [vmem:[%s9165_s26 + $0x8] sm:$0xff]  }
 0xaa7   :  { %7056 = vmatprep.subr.bf16.mxu0 %v7961_v1  ;;  %7117 = vmatpush3.bf16.msra.mxu1 %v7733_v4 }
 0xaa8   :  { %7122 = vmatprep.subr.bf16.mxu1 %v7961_v1 }
 0xaaa   :  { %7057 = vmatpush3.bf16.msra.mxu0 %v7709_v17  ;;  %v7736_v17 = vld [vmem:[%s9165_s26 + $0x10] sm:$0xff]  }
 0xaab   :  { %7062 = vmatprep.subr.bf16.mxu0 %v7961_v1 }
 0xb4c   :  { %v2696_v24 = vpop.f32.mrb[52].mxu1 }
 0xb4d   :  { %v7004_v25 = vpop.f32.mrb[53].mxu1 }
 0xb4e   :  { %v2699_v26 = vpop.f32.mrb[54].mxu1  ;;  %v7742_v25 = vld [vmem:[%s9165_s26 + $0x80] sm:$0xff]  }
 0xb4f   :  { %v7005_v31 = vpop.f32.mrb[55].mxu1 }
 0xb50   :  { %v2763_v32 = vpop.f32.mrb[68].mxu0  ;;  %v7743_v31 = vld [vmem:[%s9165_s26 + $0x88] sm:$0xff]  }
 0xb51   :  { %v2764_v33 = vadd.f32 %v2763_v32, %v2696_v24  ;;  %v7016_v34 = vpop.f32.mrb[69].mxu0  ;;  %v7744_v32 = vld [vmem:[%s9165_s26 + $0x90] sm:$0xff]  }
 0xb52   :  { %v2766_v36 = vpop.f32.mrb[70].mxu0  ;;  %v7746_v34 = vld [vmem:[%s9165_s26 + $0xa0] sm:$0xff]  }
 0xb53   :  { %v7017_v37 = vpop.f32.mrb[71].mxu0  ;;  %v7747_v36 = vld [vmem:[%s9165_s26 + $0xa8] sm:$0xff]  }
 0xb54   :  { %v7748_v37 = vld [vmem:[%s9165_s26 + $0xb0] sm:$0xff]  }
 0xb5c   :  { %v2839_v29 = vpop.f32.mrb[56].mxu1 }
 0xb5d   :  { %v2845_v39 = vadd.f32 %v2839_v29, %v2764_v33  ;;  %v7028_v40 = vpop.f32.mrb[57].mxu1  ;;  %v7745_v33 = vld [vmem:[%s9165_s26 + $0x98] sm:$0xff]  }
 0xb5e   :  { %v2842_v30 = vpop.f32.mrb[58].mxu1 }
 0xb5f   :  { %v2853_v41 = vadd.f32 %v5887_v38, %v2845_v39  ;;  %v7029_v42 = vpop.f32.mrb[59].mxu1  ;;  %v7749_v38 = vld [vmem:[%s9165_s26 + $0xb8] sm:$0xff]   ;;  %v7750_v30 = vld [vmem:[%s9169_s10 + $0x40] sm:$0xff]  }
 0xb60   :  { %v7751_v42 = vld [vmem:[%s9169_s10 + $0x48] sm:$0xff]  }
 0xb61   :  { %v2854_v43 = vmax.f32 %v2853_v41, 0.0  ;;  %v7752_v41 = vld [vmem:[%s9169_s10] sm:$0xff]  }
 0xb63   :  { %v2934_v45 = vpack.c.bf16 %v2854_v43, %v2854_v43  ;;  %v2935_v52 = vrot.slane %v2854_v43, 7  ;;  %v2938_v63 = vrot.slane %v2854_v43, 1  ;;  %v7754_v43 = vld [vmem:[%s9169_s10 + $0x8] sm:$0xff]  }
 0xb65   :  { %7059 = vmatmul.mubr.bf16.vlgmr.msra.gmra.mrb[72].mxu0 %v2934_v45  ;;  %v2936_v54 = vmul.f32 %v2935_v52, %v8257_v27  ;;  %v2939_v46 = vmul.f32 %v2938_v63, %v8269_v35  ;;  %v7756_v45 = vld [vmem:[%s9169_s10 + $0x10] sm:$0xff]   ;;  %v7762_v52 = vld [vmem:[%s9169_s10 + $0x28] sm:$0xff]  }
 0xb66   :  { %7063 = vmatpush3.bf16.msra.mxu0 %v7710_v44  ;;  %7078 = vmatprep.mubr.msk.bf16.mxu0 %vm7962_vm1, %v7961_v1  ;;  %v7753_v44 = vld [vmem:[%s9169_s10 + $0x50] sm:$0xff]  }
 0xb67   :  { %7064 = vmatprep.subr.bf16.mxu0 %v7961_v1  ;;  %v2937_v56 = vpack.c.bf16 %v2936_v54, %v2936_v54  ;;  %v2940_v2 = vpack.c.bf16 %v2939_v46, %v2939_v46  ;;  %v7764_v54 = vld [vmem:[%s9169_s10 + $0x30] sm:$0xff]  }
 0xb6a   :  { %7065 = vmatpush3.bf16.msra.mxu0 %v7711_v47  ;;  %v7755_v47 = vld [vmem:[%s9169_s10 + $0x58] sm:$0xff]  }
 0xb6b   :  { %7066 = vmatprep.subr.bf16.mxu0 %v7961_v1 }
 0xb6e   :  { %7067 = vmatpush3.bf16.msra.mxu0 %v7712_v48  ;;  %v7758_v48 = vld [vmem:[%s9169_s10 + $0x18] sm:$0xff]  }
 0xb6f   :  { %7068 = vmatprep.subr.bf16.mxu0 %v7961_v1 }
 0xb72   :  { %7069 = vmatpush3.bf16.msra.mxu0 %v7713_v49  ;;  %v7757_v49 = vld [vmem:[%s9169_s10 + $0x60] sm:$0xff]  }
 0xb73   :  { %7070 = vmatprep.subr.bf16.mxu0 %v7961_v1 }
 0xb76   :  { %7071 = vmatpush3.bf16.msra.mxu0 %v7714_v50  ;;  %v7760_v50 = vld [vmem:[%s9169_s10 + $0x20] sm:$0xff]  }
 0xb77   :  { %7072 = vmatprep.subr.bf16.mxu0 %v7961_v1 }
 0xb7a   :  { %7073 = vmatpush3.bf16.msra.mxu0 %v7715_v51  ;;  %v7759_v51 = vld [vmem:[%s9169_s10 + $0x68] sm:$0xff]  }
 0xb7b   :  { %7074 = vmatprep.subr.bf16.mxu0 %v7961_v1 }
 0xb7e   :  { %7075 = vmatpush3.bf16.msra.mxu0 %v7716_v28  ;;  %v7761_v28 = vld [vmem:[%s9169_s10 + $0x70] sm:$0xff]  }
 0xb7f   :  { %7076 = vmatprep.subr.bf16.mxu0 %v7961_v1 }
 0xb82   :  { %7077 = vmatpush3.bf16.msra.mxu0 %v7717_v53  ;;  %v7763_v53 = vld [vmem:[%s9169_s10 + $0x78] sm:$0xff]  }
 0xb83   :  { %7082 = vmatprep.subr.bf16.mxu0 %v7961_v1 }
 0xb85   :  { %7079 = vmatmul.mubr.bf16.vlgmr.msra.gmra.mrb[72].mxu0 %v2937_v56 }
 0xb86   :  { %7083 = vmatpush3.bf16.msra.mxu0 %v7718_v55  ;;  %7098 = vmatprep.mubr.msk.bf16.mxu0 %vm7962_vm1, %v7961_v1  ;;  %v7766_v55 = vld [vmem:[%s9169_s10 + $0x38] sm:$0xff]  }
 0xb87   :  { %7084 = vmatprep.subr.bf16.mxu0 %v7961_v1 }
 0xb8a   :  { %7085 = vmatpush3.bf16.msra.mxu0 %v7719_v57 }
 0xb8b   :  { %7086 = vmatprep.subr.bf16.mxu0 %v7961_v1 }
 0xb8e   :  { %7087 = vmatpush3.bf16.msra.mxu0 %v7720_v58 }
 0xb8f   :  { %7088 = vmatprep.subr.bf16.mxu0 %v7961_v1 }
 0xb92   :  { %7089 = vmatpush3.bf16.msra.mxu0 %v7721_v59 }
 0xb93   :  { %7090 = vmatprep.subr.bf16.mxu0 %v7961_v1 }
 0xb96   :  { %7091 = vmatpush3.bf16.msra.mxu0 %v7722_v60 }
 0xb97   :  { %7092 = vmatprep.subr.bf16.mxu0 %v7961_v1 }
 0xb9a   :  { %7093 = vmatpush3.bf16.msra.mxu0 %v7723_v61 }
 0xb9b   :  { %7094 = vmatprep.subr.bf16.mxu0 %v7961_v1 }
 0xb9e   :  { %7095 = vmatpush3.bf16.msra.mxu0 %v7724_v62 }
 0xb9f   :  { %7096 = vmatprep.subr.bf16.mxu0 %v7961_v1 }
 0xba2   :  { %7097 = vmatpush3.bf16.msra.mxu0 %v7725_v0 }
 0xba3   :  { %7182 = vmatprep.subr.bf16.mxu0 %v7961_v1 }
 0xba5   :  { %7099 = vmatmul.mubr.bf16.vlgmr.msra.gmra.mrb[72].mxu0 %v2940_v2  ;;  %v6007_v2 = vld [vmem:[%s9170_s7] ss:$0 sm:$0xff] }
 0xba6   :  { %7198 = vmatprep.mubr.msk.bf16.mxu0 %vm7962_vm1, %v7961_v1  ;;  %7183 = vmatpush3.bf16.msra.mxu0 %v7752_v41  ;;  %v7787_v41 = vld [vmem:[%s9171_s11 + $0x78] sm:$0xff]  }
 0xba7   :  { %7184 = vmatprep.subr.bf16.mxu0 %v7961_v1 }
 0xbaa   :  { %7185 = vmatpush3.bf16.msra.mxu0 %v7754_v43  ;;  %v7790_v43 = vld [vmem:[%s9171_s11 + $0x38] sm:$0xff]  }
 0xbab   :  { %7186 = vmatprep.subr.bf16.mxu0 %v7961_v1 }
 0xbae   :  { %7187 = vmatpush3.bf16.msra.mxu0 %v7756_v45 }
 0xbaf   :  { %7188 = vmatprep.subr.bf16.mxu0 %v7961_v1 }
 0xbb2   :  { %7189 = vmatpush3.bf16.msra.mxu0 %v7758_v48 }
 0xbb3   :  { %7190 = vmatprep.subr.bf16.mxu0 %v7961_v1 }
 0xbb6   :  { %7191 = vmatpush3.bf16.msra.mxu0 %v7760_v50 }
 0xbb7   :  { %7192 = vmatprep.subr.bf16.mxu0 %v7961_v1 }
 0xbba   :  { %7193 = vmatpush3.bf16.msra.mxu0 %v7762_v52 }
 0xbbb   :  { %7194 = vmatprep.subr.bf16.mxu0 %v7961_v1 }
 0xbbe   :  { %7195 = vmatpush3.bf16.msra.mxu0 %v7764_v54  ;;  %v6064_v54 = vld [vmem:[%s9172_s16] ss:$0 sm:$0xff] }
 0xbbf   :  { %7196 = vmatprep.subr.bf16.mxu0 %v7961_v1 }
 0xbc2   :  { %7197 = vmatpush3.bf16.msra.mxu0 %v7766_v55 }
 0xbc3   :  { %7222 = vmatprep.subr.bf16.mxu0 %v7961_v1 }
 0xc78   :  { %v3249_v6 = vpop.f32.mrb[72].mxu0 }
 0xc79   :  { %v7510_v8 = vadd.f32 %v5888_v5, %v3249_v6  ;;  %v7100_v9 = vpop.f32.mrb[73].mxu0 }
 0xc7a   :  { %v3252_v10 = vpop.f32.mrb[74].mxu0  ;;  %v7765_v9 = vld [vmem:[%s9169_s10 + $0x80] sm:$0xff]  }
 0xc7b   :  { %v7511_v11 = vadd.f32 %v7510_v8, %v5950_v7  ;;  %v7101_v12 = vpop.f32.mrb[75].mxu0 }
 0xc7d   :  { %v8711_v13 = vmax.f32 %v7511_v11, 0.0 }
 0xc7f   :  { %v3266_v15 = vpack.c.bf16 %v8711_v13, %v8711_v13  ;;  %v3267_v22 = vrot.slane %v8711_v13, 7  ;;  %v3270_v29 = vrot.slane %v8711_v13, 1 }
 0xc81   :  { %7119 = vmatmul.mubr.bf16.vlgmr.msra.gmra.mrb[60].mxu1 %v3266_v15  ;;  %v3268_v24 = vmul.f32 %v3267_v22, %v8257_v27  ;;  %v3271_v39 = vmul.f32 %v3270_v29, %v8269_v35  ;;  %v7773_v22 = vld [vmem:[%s9169_s10 + $0xb8] sm:$0xff]   ;;  %v7781_v29 = vld [vmem:[%s9171_s11 + $0x60] sm:$0xff]  }
 0xc82   :  { %7123 = vmatpush3.bf16.msra.mxu1 %v7734_v14  ;;  %7138 = vmatprep.mubr.msk.bf16.mxu1 %vm7962_vm1, %v7961_v1  ;;  %v7767_v14 = vld [vmem:[%s9169_s10 + $0x88] sm:$0xff]  }
 0xc83   :  { %7124 = vmatprep.subr.bf16.mxu1 %v7961_v1  ;;  %v3269_v26 = vpack.c.bf16 %v3268_v24, %v3268_v24  ;;  %v3272_v40 = vpack.c.bf16 %v3271_v39, %v3271_v39  ;;  %v7784_v39 = vld [vmem:[%s9171_s11 + $0x20] sm:$0xff]  }
 0xc86   :  { %7125 = vmatpush3.bf16.msra.mxu1 %v7735_v16  ;;  %v7768_v16 = vld [vmem:[%s9169_s10 + $0x90] sm:$0xff]  }
 0xc87   :  { %7126 = vmatprep.subr.bf16.mxu1 %v7961_v1 }
 0xc8a   :  { %7127 = vmatpush3.bf16.msra.mxu1 %v7736_v17  ;;  %v7769_v17 = vld [vmem:[%s9169_s10 + $0x98] sm:$0xff]  }
 0xc8b   :  { %7128 = vmatprep.subr.bf16.mxu1 %v7961_v1 }
 0xc8e   :  { %7129 = vmatpush3.bf16.msra.mxu1 %v7737_v18  ;;  %v7770_v18 = vld [vmem:[%s9169_s10 + $0xa0] sm:$0xff]  }
 0xc8f   :  { %7130 = vmatprep.subr.bf16.mxu1 %v7961_v1 }
 0xc92   :  { %7131 = vmatpush3.bf16.msra.mxu1 %v7738_v19  ;;  %v7771_v19 = vld [vmem:[%s9169_s10 + $0xa8] sm:$0xff]  }
 0xc93   :  { %7132 = vmatprep.subr.bf16.mxu1 %v7961_v1 }
 0xc96   :  { %7133 = vmatpush3.bf16.msra.mxu1 %v7739_v20  ;;  %v7772_v20 = vld [vmem:[%s9169_s10 + $0xb0] sm:$0xff]  }
 0xc97   :  { %7134 = vmatprep.subr.bf16.mxu1 %v7961_v1 }
 0xc9a   :  { %7135 = vmatpush3.bf16.msra.mxu1 %v7740_v21 }
 0xc9b   :  { %7136 = vmatprep.subr.bf16.mxu1 %v7961_v1 }
 0xc9e   :  { %7137 = vmatpush3.bf16.msra.mxu1 %v7741_v23 }
 0xc9f   :  { %7142 = vmatprep.subr.bf16.mxu1 %v7961_v1 }
 0xca1   :  { %7139 = vmatmul.mubr.bf16.vlgmr.msra.gmra.mrb[64].mxu1 %v3269_v26  ;;  %v7776_v26 = vld [vmem:[%s9171_s11] sm:$0xff]  }
 0xca2   :  { %7143 = vmatpush3.bf16.msra.mxu1 %v7742_v25  ;;  %7158 = vmatprep.mubr.msk.bf16.mxu1 %vm7962_vm1, %v7961_v1  ;;  %v7774_v25 = vld [vmem:[%s9171_s11 + $0x40] sm:$0xff]  }
 0xca3   :  { %7144 = vmatprep.subr.bf16.mxu1 %v7961_v1 }
 0xca6   :  { %7145 = vmatpush3.bf16.msra.mxu1 %v7743_v31  ;;  %v7775_v31 = vld [vmem:[%s9171_s11 + $0x48] sm:$0xff]  }
 0xca7   :  { %7146 = vmatprep.subr.bf16.mxu1 %v7961_v1 }
 0xcaa   :  { %7147 = vmatpush3.bf16.msra.mxu1 %v7744_v32  ;;  %v7778_v32 = vld [vmem:[%s9171_s11 + $0x8] sm:$0xff]  }
 0xcab   :  { %7148 = vmatprep.subr.bf16.mxu1 %v7961_v1 }
 0xcae   :  { %7149 = vmatpush3.bf16.msra.mxu1 %v7745_v33  ;;  %v7777_v33 = vld [vmem:[%s9171_s11 + $0x50] sm:$0xff]  }
 0xcaf   :  { %7150 = vmatprep.subr.bf16.mxu1 %v7961_v1 }
 0xcb2   :  { %7151 = vmatpush3.bf16.msra.mxu1 %v7746_v34  ;;  %v7780_v34 = vld [vmem:[%s9171_s11 + $0x10] sm:$0xff]  }
 0xcb3   :  { %7152 = vmatprep.subr.bf16.mxu1 %v7961_v1 }
 0xcb6   :  { %7153 = vmatpush3.bf16.msra.mxu1 %v7747_v36  ;;  %v7779_v36 = vld [vmem:[%s9171_s11 + $0x58] sm:$0xff]  }
 0xcb7   :  { %7154 = vmatprep.subr.bf16.mxu1 %v7961_v1 }
 0xcba   :  { %7155 = vmatpush3.bf16.msra.mxu1 %v7748_v37  ;;  %v7782_v37 = vld [vmem:[%s9171_s11 + $0x18] sm:$0xff]  }
 0xcbb   :  { %7156 = vmatprep.subr.bf16.mxu1 %v7961_v1 }
 0xcbe   :  { %7157 = vmatpush3.bf16.msra.mxu1 %v7749_v38  ;;  %v7783_v38 = vld [vmem:[%s9171_s11 + $0x68] sm:$0xff]  }
 0xcbf   :  { %7162 = vmatprep.subr.bf16.mxu1 %v7961_v1 }
 0xcc1   :  { %7159 = vmatmul.mubr.bf16.vlgmr.msra.gmra.mrb[68].mxu1 %v3272_v40  ;;  %v7785_v40 = vld [vmem:[%s9171_s11 + $0x70] sm:$0xff]  }
 0xcc2   :  { %7178 = vmatprep.mubr.msk.bf16.mxu1 %vm7962_vm1, %v7961_v1  ;;  %7163 = vmatpush3.bf16.msra.mxu1 %v7750_v30  ;;  %v7786_v30 = vld [vmem:[%s9171_s11 + $0x28] sm:$0xff]  }
 0xcc3   :  { %7164 = vmatprep.subr.bf16.mxu1 %v7961_v1 }
 0xcc6   :  { %7165 = vmatpush3.bf16.msra.mxu1 %v7751_v42  ;;  %v7788_v42 = vld [vmem:[%s9171_s11 + $0x30] sm:$0xff]  }
 0xcc7   :  { %7166 = vmatprep.subr.bf16.mxu1 %v7961_v1 }
 0xcca   :  { %7167 = vmatpush3.bf16.msra.mxu1 %v7753_v44 }
 0xccb   :  { %7168 = vmatprep.subr.bf16.mxu1 %v7961_v1 }
 0xcce   :  { %7169 = vmatpush3.bf16.msra.mxu1 %v7755_v47 }
 0xccf   :  { %7170 = vmatprep.subr.bf16.mxu1 %v7961_v1 }
 0xcd2   :  { %7171 = vmatpush3.bf16.msra.mxu1 %v7757_v49 }
 0xcd3   :  { %7172 = vmatprep.subr.bf16.mxu1 %v7961_v1 }
 0xcd6   :  { %7173 = vmatpush3.bf16.msra.mxu1 %v7759_v51 }
 0xcd7   :  { %7174 = vmatprep.subr.bf16.mxu1 %v7961_v1 }
 0xcda   :  { %7175 = vmatpush3.bf16.msra.mxu1 %v7761_v28 }
 0xcdb   :  { %7176 = vmatprep.subr.bf16.mxu1 %v7961_v1 }
 0xcde   :  { %7177 = vmatpush3.bf16.msra.mxu1 %v7763_v53 }
 0xcdf   :  { %7202 = vmatprep.subr.bf16.mxu1 %v7961_v1 }
 0xd54   :  { %v3388_v56 = vpop.f32.mrb[60].mxu1 }
 0xd55   :  { %v7120_v57 = vpop.f32.mrb[61].mxu1 }
 0xd56   :  { %v3391_v58 = vpop.f32.mrb[62].mxu1 }
 0xd57   :  { %v7121_v59 = vpop.f32.mrb[63].mxu1 }
 0xd74   :  { %v3476_v60 = vpop.f32.mrb[64].mxu1 }
 0xd75   :  { %v3477_v61 = vadd.f32 %v3476_v60, %v3388_v56  ;;  %v7140_v62 = vpop.f32.mrb[65].mxu1 }
 0xd76   :  { %v3479_v63 = vpop.f32.mrb[66].mxu1  ;;  %v7789_v62 = vld [vmem:[%s9171_s11 + $0x80] sm:$0xff]  }
 0xd77   :  { %v7141_v0 = vpop.f32.mrb[67].mxu1 }
 0xd94   :  { %v3581_v46 = vpop.f32.mrb[68].mxu1 }
 0xd95   :  { %v3587_v3 = vadd.f32 %v3581_v46, %v3477_v61  ;;  %v7160_v4 = vpop.f32.mrb[69].mxu1 }
 0xd96   :  { %v3584_v5 = vpop.f32.mrb[70].mxu1  ;;  %v7793_v4 = vld [vmem:[%s9171_s11 + $0x98] sm:$0xff]  }
 0xd97   :  { %v3595_v6 = vadd.f32 %v6007_v2, %v3587_v3  ;;  %v7161_v7 = vpop.f32.mrb[71].mxu1  ;;  %v7791_v2 = vld [vmem:[%s9171_s11 + $0x88] sm:$0xff]   ;;  %v7792_v3 = vld [vmem:[%s9171_s11 + $0x90] sm:$0xff]   ;;  %v7794_v5 = vld [vmem:[%s9171_s11 + $0xa0] sm:$0xff]  }
 0xd98   :  { %v7796_v7 = vld [vmem:[%s9171_s11 + $0xb0] sm:$0xff]  }
 0xd99   :  { %v3596_v8 = vmax.f32 %v3595_v6, 0.0  ;;  %v7795_v6 = vld [vmem:[%s9171_s11 + $0xa8] sm:$0xff]  }
 0xd9b   :  { %v3598_v10 = vrot.slane %v3596_v8, 7  ;;  %v3597_v11 = vpack.c.bf16 %v3596_v8, %v3596_v8  ;;  %v3601_v21 = vrot.slane %v3596_v8, 1 }
 0xd9d   :  { %7179 = vmatmul.mubr.bf16.vlgmr.msra.gmra.mrb[72].mxu1 %v3597_v11  ;;  %v3599_v12 = vmul.f32 %v3598_v10, %v8257_v27  ;;  %v3602_v23 = vmul.f32 %v3601_v21, %v8269_v35  ;;  %v7805_v21 = vld [vmem:[%s9173_s15 + $0x60] sm:$0xff]  }
 0xd9e   :  { %7203 = vmatpush3.bf16.msra.mxu1 %v7765_v9  ;;  %7218 = vmatprep.mubr.msk.bf16.mxu1 %vm7962_vm1, %v7961_v1  ;;  %v7797_v9 = vld [vmem:[%s9171_s11 + $0xb8] sm:$0xff]  }
 0xd9f   :  { %7204 = vmatprep.subr.bf16.mxu1 %v7961_v1  ;;  %v3600_v15 = vpack.c.bf16 %v3599_v12, %v3599_v12  ;;  %v3603_v24 = vpack.c.bf16 %v3602_v23, %v3602_v23  ;;  %v7798_v12 = vld [vmem:[%s9173_s15 + $0x40] sm:$0xff]   ;;  %v7807_v23 = vld [vmem:[%s9173_s15 + $0x68] sm:$0xff]  }
 0xda1   :  { %7199 = vmatmul.mubr.bf16.vlgmr.msra.gmra.mrb[76].mxu0 %v3600_v15  ;;  %v7799_v15 = vld [vmem:[%s9173_s15 + $0x48] sm:$0xff]  }
 0xda2   :  { %7205 = vmatpush3.bf16.msra.mxu1 %v7767_v14  ;;  %7238 = vmatprep.mubr.msk.bf16.mxu0 %vm7962_vm1, %v7961_v1  ;;  %v7800_v14 = vld [vmem:[%s9173_s15] sm:$0xff]  }
 0xda3   :  { %7206 = vmatprep.subr.bf16.mxu1 %v7961_v1  ;;  %7223 = vmatpush3.bf16.msra.mxu0 %v7774_v25  ;;  %v7810_v25 = vld [vmem:[%s9173_s15 + $0x28] sm:$0xff]  }
 0xda4   :  { %7224 = vmatprep.subr.bf16.mxu0 %v7961_v1 }
 0xda6   :  { %7207 = vmatpush3.bf16.msra.mxu1 %v7768_v16  ;;  %v7802_v16 = vld [vmem:[%s9173_s15 + $0x8] sm:$0xff]  }
 0xda7   :  { %7208 = vmatprep.subr.bf16.mxu1 %v7961_v1  ;;  %7225 = vmatpush3.bf16.msra.mxu0 %v7775_v31  ;;  %v7812_v31 = vld [vmem:[%s9173_s15 + $0x30] sm:$0xff]  }
 0xda8   :  { %7226 = vmatprep.subr.bf16.mxu0 %v7961_v1 }
 0xdaa   :  { %7209 = vmatpush3.bf16.msra.mxu1 %v7769_v17  ;;  %v7801_v17 = vld [vmem:[%s9173_s15 + $0x50] sm:$0xff]  }
 0xdab   :  { %7210 = vmatprep.subr.bf16.mxu1 %v7961_v1  ;;  %7227 = vmatpush3.bf16.msra.mxu0 %v7777_v33 }
 0xdac   :  { %7228 = vmatprep.subr.bf16.mxu0 %v7961_v1 }
 0xdae   :  { %7211 = vmatpush3.bf16.msra.mxu1 %v7770_v18  ;;  %v7804_v18 = vld [vmem:[%s9173_s15 + $0x10] sm:$0xff]  }
 0xdaf   :  { %7212 = vmatprep.subr.bf16.mxu1 %v7961_v1  ;;  %7229 = vmatpush3.bf16.msra.mxu0 %v7779_v36 }
 0xdb0   :  { %7230 = vmatprep.subr.bf16.mxu0 %v7961_v1 }
 0xdb2   :  { %7213 = vmatpush3.bf16.msra.mxu1 %v7771_v19  ;;  %v7803_v19 = vld [vmem:[%s9173_s15 + $0x58] sm:$0xff]  }
 0xdb3   :  { %7214 = vmatprep.subr.bf16.mxu1 %v7961_v1  ;;  %7231 = vmatpush3.bf16.msra.mxu0 %v7781_v29 }
 0xdb4   :  { %7232 = vmatprep.subr.bf16.mxu0 %v7961_v1 }
 0xdb6   :  { %7215 = vmatpush3.bf16.msra.mxu1 %v7772_v20  ;;  %v7806_v20 = vld [vmem:[%s9173_s15 + $0x18] sm:$0xff]  }
 0xdb7   :  { %7216 = vmatprep.subr.bf16.mxu1 %v7961_v1  ;;  %7233 = vmatpush3.bf16.msra.mxu0 %v7783_v38 }
 0xdb8   :  { %7234 = vmatprep.subr.bf16.mxu0 %v7961_v1 }
 0xdba   :  { %7217 = vmatpush3.bf16.msra.mxu1 %v7773_v22  ;;  %v7808_v22 = vld [vmem:[%s9173_s15 + $0x20] sm:$0xff]  }
 0xdbb   :  { %7242 = vmatprep.subr.bf16.mxu1 %v7961_v1  ;;  %7235 = vmatpush3.bf16.msra.mxu0 %v7785_v40 }
 0xdbc   :  { %7236 = vmatprep.subr.bf16.mxu0 %v7961_v1 }
 0xdbd   :  { %7219 = vmatmul.mubr.bf16.vlgmr.msra.gmra.mrb[76].mxu1 %v3603_v24  ;;  %v7809_v24 = vld [vmem:[%s9173_s15 + $0x70] sm:$0xff]  }
 0xdbe   :  { %7258 = vmatprep.mubr.msk.bf16.mxu1 %vm7962_vm1, %v7961_v1  ;;  %7243 = vmatpush3.bf16.msra.mxu1 %v7776_v26  ;;  %v7811_v26 = vld [vmem:[%s9173_s15 + $0x78] sm:$0xff]  }
 0xdbf   :  { %7244 = vmatprep.subr.bf16.mxu1 %v7961_v1  ;;  %7237 = vmatpush3.bf16.msra.mxu0 %v7787_v41 }
 0xdc0   :  { %7262 = vmatprep.subr.bf16.mxu0 %v7961_v1 }
 0xdc2   :  { %7245 = vmatpush3.bf16.msra.mxu1 %v7778_v32  ;;  %v7814_v32 = vld [vmem:[%s9173_s15 + $0x38] sm:$0xff]  }
 0xdc3   :  { %7246 = vmatprep.subr.bf16.mxu1 %v7961_v1 }
 0xdc6   :  { %7247 = vmatpush3.bf16.msra.mxu1 %v7780_v34 }
 0xdc7   :  { %7248 = vmatprep.subr.bf16.mxu1 %v7961_v1 }
 0xdca   :  { %7249 = vmatpush3.bf16.msra.mxu1 %v7782_v37 }
 0xdcb   :  { %7250 = vmatprep.subr.bf16.mxu1 %v7961_v1 }
 0xdce   :  { %7251 = vmatpush3.bf16.msra.mxu1 %v7784_v39 }
 0xdcf   :  { %7252 = vmatprep.subr.bf16.mxu1 %v7961_v1 }
 0xdd2   :  { %7253 = vmatpush3.bf16.msra.mxu1 %v7786_v30 }
 0xdd3   :  { %7254 = vmatprep.subr.bf16.mxu1 %v7961_v1 }
 0xdd6   :  { %7255 = vmatpush3.bf16.msra.mxu1 %v7788_v42  ;;  %v6121_v42 = vld [vmem:[%s9174_s18] ss:$0 sm:$0xff] }
 0xdd7   :  { %7256 = vmatprep.subr.bf16.mxu1 %v7961_v1 }
 0xdda   :  { %7257 = vmatpush3.bf16.msra.mxu1 %v7790_v43 }
 0xddb   :  { %7282 = vmatprep.subr.bf16.mxu1 %v7961_v1 }
 0xe70   :  { %v3719_v44 = vpop.f32.mrb[72].mxu1 }
 0xe71   :  { %v7180_v45 = vpop.f32.mrb[73].mxu1 }
 0xe72   :  { %v3722_v47 = vpop.f32.mrb[74].mxu1 }
 0xe73   :  { %v7181_v48 = vpop.f32.mrb[75].mxu1 }
 0xe74   :  { %v3807_v49 = vpop.f32.mrb[76].mxu0 }
 0xe75   :  { %v3808_v50 = vadd.f32 %v3807_v49, %v3719_v44  ;;  %v7200_v51 = vpop.f32.mrb[77].mxu0 }
 0xe76   :  { %v3810_v28 = vpop.f32.mrb[78].mxu0 }
 0xe77   :  { %v7201_v52 = vpop.f32.mrb[79].mxu0 }
 0xe90   :  { %v3912_v53 = vpop.f32.mrb[76].mxu1 }
 0xe91   :  { %v3918_v55 = vadd.f32 %v3912_v53, %v3808_v50  ;;  %v7220_v56 = vpop.f32.mrb[77].mxu1  ;;  %v7813_v50 = vld [vmem:[%s9173_s15 + $0x80] sm:$0xff]   ;;  %v7815_v53 = vld [vmem:[%s9173_s15 + $0x88] sm:$0xff]  }
 0xe92   :  { %v3915_v57 = vpop.f32.mrb[78].mxu1  ;;  %v7817_v56 = vld [vmem:[%s9173_s15 + $0x98] sm:$0xff]  }
 0xe93   :  { %v3926_v58 = vadd.f32 %v6064_v54, %v3918_v55  ;;  %v7221_v59 = vpop.f32.mrb[79].mxu1  ;;  %v7816_v55 = vld [vmem:[%s9173_s15 + $0x90] sm:$0xff]   ;;  %v7818_v57 = vld [vmem:[%s9173_s15 + $0xa0] sm:$0xff]  }
 0xe94   :  { %v7820_v59 = vld [vmem:[%s9173_s15 + $0xb0] sm:$0xff]  }
 0xe95   :  { %v3927_v60 = vadd.f32 %v3926_v58, %v8711_v13  ;;  %v7819_v58 = vld [vmem:[%s9173_s15 + $0xa8] sm:$0xff]  }
 0xe97   :  { %v8848_v61 = vmax.f32 %v3927_v60, 0.0 }
 0xe99   :  { %v3929_v63 = vpack.c.bf16 %v8848_v61, %v8848_v61  ;;  %v3930_v0 = vrot.slane %v8848_v61, 7  ;;  %v3933_v8 = vrot.slane %v8848_v61, 1 }
 0xe9b   :  { %7239 = vmatmul.mubr.bf16.vlgmr.msra.gmra.mrb[80].mxu0 %v3929_v63  ;;  %v3931_v46 = vmul.f32 %v3930_v0, %v8257_v27  ;;  %v3934_v10 = vmul.f32 %v3933_v8, %v8269_v35  ;;  %v7829_v8 = vld [vmem:[%s9175_s0 + $0x60] sm:$0xff]  }
 0xe9c   :  { %7263 = vmatpush3.bf16.msra.mxu0 %v7789_v62  ;;  %7278 = vmatprep.mubr.msk.bf16.mxu0 %vm7962_vm1, %v7961_v1  ;;  %v7821_v62 = vld [vmem:[%s9173_s15 + $0xb8] sm:$0xff]  }
 0xe9d   :  { %7264 = vmatprep.subr.bf16.mxu0 %v7961_v1  ;;  %v3932_v13 = vpack.c.bf16 %v3931_v46, %v3931_v46  ;;  %v3935_v11 = vpack.c.bf16 %v3934_v10, %v3934_v10  ;;  %v7822_v46 = vld [vmem:[%s9175_s0 + $0x40] sm:$0xff]  }
 0xe9e   :  { %v7832_v10 = vld [vmem:[%s9175_s0 + $0x20] sm:$0xff]  }
 0xe9f   :  { %7259 = vmatmul.mubr.bf16.vlgmr.msra.gmra.mrb[80].mxu1 %v3932_v13  ;;  %v7823_v13 = vld [vmem:[%s9175_s0 + $0x48] sm:$0xff]  }
 0xea0   :  { %7265 = vmatpush3.bf16.msra.mxu0 %v7791_v2  ;;  %7298 = vmatprep.mubr.msk.bf16.mxu1 %vm7962_vm1, %v7961_v1  ;;  %v7824_v2 = vld [vmem:[%s9175_s0] sm:$0xff]  }
 0xea1   :  { %7266 = vmatprep.subr.bf16.mxu0 %v7961_v1  ;;  %7283 = vmatpush3.bf16.msra.mxu1 %v7798_v12  ;;  %v7834_v12 = vld [vmem:[%s9175_s0 + $0x28] sm:$0xff]  }
 0xea2   :  { %7284 = vmatprep.subr.bf16.mxu1 %v7961_v1 }
 0xea4   :  { %7267 = vmatpush3.bf16.msra.mxu0 %v7792_v3  ;;  %v7826_v3 = vld [vmem:[%s9175_s0 + $0x8] sm:$0xff]  }
 0xea5   :  { %7268 = vmatprep.subr.bf16.mxu0 %v7961_v1  ;;  %7285 = vmatpush3.bf16.msra.mxu1 %v7799_v15  ;;  %v7836_v15 = vld [vmem:[%s9175_s0 + $0x30] sm:$0xff]  }
 0xea6   :  { %7286 = vmatprep.subr.bf16.mxu1 %v7961_v1 }
 0xea8   :  { %7269 = vmatpush3.bf16.msra.mxu0 %v7793_v4  ;;  %v7825_v4 = vld [vmem:[%s9175_s0 + $0x50] sm:$0xff]  }
 0xea9   :  { %7270 = vmatprep.subr.bf16.mxu0 %v7961_v1  ;;  %7287 = vmatpush3.bf16.msra.mxu1 %v7801_v17 }
 0xeaa   :  { %7288 = vmatprep.subr.bf16.mxu1 %v7961_v1 }
 0xeac   :  { %7271 = vmatpush3.bf16.msra.mxu0 %v7794_v5  ;;  %v7828_v5 = vld [vmem:[%s9175_s0 + $0x10] sm:$0xff]  }
 0xead   :  { %7272 = vmatprep.subr.bf16.mxu0 %v7961_v1  ;;  %7289 = vmatpush3.bf16.msra.mxu1 %v7803_v19 }
 0xeae   :  { %7290 = vmatprep.subr.bf16.mxu1 %v7961_v1 }
 0xeb0   :  { %7273 = vmatpush3.bf16.msra.mxu0 %v7795_v6  ;;  %v7827_v6 = vld [vmem:[%s9175_s0 + $0x58] sm:$0xff]  }
 0xeb1   :  { %7274 = vmatprep.subr.bf16.mxu0 %v7961_v1  ;;  %7291 = vmatpush3.bf16.msra.mxu1 %v7805_v21 }
 0xeb2   :  { %7292 = vmatprep.subr.bf16.mxu1 %v7961_v1 }
 0xeb4   :  { %7275 = vmatpush3.bf16.msra.mxu0 %v7796_v7  ;;  %v7830_v7 = vld [vmem:[%s9175_s0 + $0x18] sm:$0xff]  }
 0xeb5   :  { %7276 = vmatprep.subr.bf16.mxu0 %v7961_v1  ;;  %7293 = vmatpush3.bf16.msra.mxu1 %v7807_v23 }
 0xeb6   :  { %7294 = vmatprep.subr.bf16.mxu1 %v7961_v1 }
 0xeb8   :  { %7277 = vmatpush3.bf16.msra.mxu0 %v7797_v9  ;;  %v7831_v9 = vld [vmem:[%s9175_s0 + $0x68] sm:$0xff]  }
 0xeb9   :  { %7302 = vmatprep.subr.bf16.mxu0 %v7961_v1  ;;  %7295 = vmatpush3.bf16.msra.mxu1 %v7809_v24 }
 0xeba   :  { %7296 = vmatprep.subr.bf16.mxu1 %v7961_v1 }
 0xebb   :  { %7279 = vmatmul.mubr.bf16.vlgmr.msra.gmra.mrb[84].mxu0 %v3935_v11  ;;  %v7833_v11 = vld [vmem:[%s9175_s0 + $0x70] sm:$0xff]  }
 0xebc   :  { %7318 = vmatprep.mubr.msk.bf16.mxu0 %vm7962_vm1, %v7961_v1  ;;  %7303 = vmatpush3.bf16.msra.mxu0 %v7800_v14  ;;  %v7835_v14 = vld [vmem:[%s9175_s0 + $0x78] sm:$0xff]  }
 0xebd   :  { %7304 = vmatprep.subr.bf16.mxu0 %v7961_v1  ;;  %7297 = vmatpush3.bf16.msra.mxu1 %v7811_v26 }
 0xebe   :  { %7322 = vmatprep.subr.bf16.mxu1 %v7961_v1 }
 0xec0   :  { %7305 = vmatpush3.bf16.msra.mxu0 %v7802_v16  ;;  %v7838_v16 = vld [vmem:[%s9175_s0 + $0x38] sm:$0xff]  }
 0xec1   :  { %7306 = vmatprep.subr.bf16.mxu0 %v7961_v1 }
 0xec4   :  { %7307 = vmatpush3.bf16.msra.mxu0 %v7804_v18 }
 0xec5   :  { %7308 = vmatprep.subr.bf16.mxu0 %v7961_v1 }
 0xec8   :  { %7309 = vmatpush3.bf16.msra.mxu0 %v7806_v20 }
 0xec9   :  { %7310 = vmatprep.subr.bf16.mxu0 %v7961_v1 }
 0xecc   :  { %7311 = vmatpush3.bf16.msra.mxu0 %v7808_v22 }
 0xecd   :  { %7312 = vmatprep.subr.bf16.mxu0 %v7961_v1 }
 0xed0   :  { %7313 = vmatpush3.bf16.msra.mxu0 %v7810_v25 }
 0xed1   :  { %7314 = vmatprep.subr.bf16.mxu0 %v7961_v1 }
 0xed4   :  { %7315 = vmatpush3.bf16.msra.mxu0 %v7812_v31  ;;  %v6178_v31 = vld [vmem:[%s9176_s5] ss:$0 sm:$0xff] }
 0xed5   :  { %7316 = vmatprep.subr.bf16.mxu0 %v7961_v1 }
 0xed8   :  { %7317 = vmatpush3.bf16.msra.mxu0 %v7814_v32 }
 0xed9   :  { %7342 = vmatprep.subr.bf16.mxu0 %v7961_v1 }
 0xf6e   :  { %v4051_v33 = vpop.f32.mrb[80].mxu0 }
 0xf6f   :  { %v7240_v34 = vpop.f32.mrb[81].mxu0 }
 0xf70   :  { %v4054_v36 = vpop.f32.mrb[82].mxu0 }
 0xf71   :  { %v7241_v37 = vpop.f32.mrb[83].mxu0 }
 0xf72   :  { %v4139_v29 = vpop.f32.mrb[80].mxu1 }
 0xf73   :  { %v4140_v38 = vadd.f32 %v4139_v29, %v4051_v33  ;;  %v7260_v39 = vpop.f32.mrb[81].mxu1 }
 0xf74   :  { %v4142_v40 = vpop.f32.mrb[82].mxu1  ;;  %v7837_v39 = vld [vmem:[%s9175_s0 + $0x80] sm:$0xff]  }
 0xf75   :  { %v7261_v30 = vpop.f32.mrb[83].mxu1 }
 0xf8e   :  { %v4244_v41 = vpop.f32.mrb[84].mxu0 }
 0xf8f   :  { %v4250_v43 = vadd.f32 %v4244_v41, %v4140_v38  ;;  %v7280_v44 = vpop.f32.mrb[85].mxu0 }
 0xf90   :  { %v4247_v45 = vpop.f32.mrb[86].mxu0  ;;  %v7841_v44 = vld [vmem:[%s9175_s0 + $0x98] sm:$0xff]  }
 0xf91   :  { %v4258_v47 = vadd.f32 %v6121_v42, %v4250_v43  ;;  %v7281_v48 = vpop.f32.mrb[87].mxu0  ;;  %v7839_v42 = vld [vmem:[%s9175_s0 + $0x88] sm:$0xff]   ;;  %v7840_v43 = vld [vmem:[%s9175_s0 + $0x90] sm:$0xff]   ;;  %v7842_v45 = vld [vmem:[%s9175_s0 + $0xa0] sm:$0xff]  }
 0xf92   :  { %v7844_v48 = vld [vmem:[%s9175_s0 + $0xb0] sm:$0xff]  }
 0xf93   :  { %v4259_v49 = vmax.f32 %v4258_v47, 0.0  ;;  %v7843_v47 = vld [vmem:[%s9175_s0 + $0xa8] sm:$0xff]  }
 0xf95   :  { %v4261_v51 = vrot.slane %v4259_v49, 7  ;;  %v4260_v28 = vpack.c.bf16 %v4259_v49, %v4259_v49  ;;  %v4264_v60 = vrot.slane %v4259_v49, 1 }
 0xf97   :  { %7299 = vmatmul.mubr.bf16.vlgmr.msra.gmra.mrb[84].mxu1 %v4260_v28  ;;  %v4262_v52 = vmul.f32 %v4261_v51, %v8257_v27  ;;  %v4265_v63 = vmul.f32 %v4264_v60, %v8269_v35  ;;  %v7853_v60 = vld [vmem:[%s9177_s9 + $0x60] sm:$0xff]  }
 0xf98   :  { %7323 = vmatpush3.bf16.msra.mxu1 %v7813_v50  ;;  %7338 = vmatprep.mubr.msk.bf16.mxu1 %vm7962_vm1, %v7961_v1  ;;  %v7845_v50 = vld [vmem:[%s9175_s0 + $0xb8] sm:$0xff]  }
 0xf99   :  { %7324 = vmatprep.subr.bf16.mxu1 %v7961_v1  ;;  %v4263_v54 = vpack.c.bf16 %v4262_v52, %v4262_v52  ;;  %v4266_v0 = vpack.c.bf16 %v4265_v63, %v4265_v63  ;;  %v7846_v52 = vld [vmem:[%s9177_s9 + $0x40] sm:$0xff]   ;;  %v7855_v63 = vld [vmem:[%s9177_s9 + $0x68] sm:$0xff]  }
 0xf9b   :  { %7319 = vmatmul.mubr.bf16.vlgmr.msra.gmra.mrb[88].mxu0 %v4263_v54  ;;  %v7847_v54 = vld [vmem:[%s9177_s9 + $0x48] sm:$0xff]  }
 0xf9c   :  { %7325 = vmatpush3.bf16.msra.mxu1 %v7815_v53  ;;  %7358 = vmatprep.mubr.msk.bf16.mxu0 %vm7962_vm1, %v7961_v1  ;;  %v7848_v53 = vld [vmem:[%s9177_s9] sm:$0xff]  }
 0xf9d   :  { %7326 = vmatprep.subr.bf16.mxu1 %v7961_v1  ;;  %7343 = vmatpush3.bf16.msra.mxu0 %v7822_v46  ;;  %v7858_v46 = vld [vmem:[%s9177_s9 + $0x28] sm:$0xff]  }
 0xf9e   :  { %7344 = vmatprep.subr.bf16.mxu0 %v7961_v1 }
 0xfa0   :  { %7327 = vmatpush3.bf16.msra.mxu1 %v7816_v55  ;;  %v7850_v55 = vld [vmem:[%s9177_s9 + $0x8] sm:$0xff]  }
 0xfa1   :  { %7328 = vmatprep.subr.bf16.mxu1 %v7961_v1  ;;  %7345 = vmatpush3.bf16.msra.mxu0 %v7823_v13  ;;  %v7860_v13 = vld [vmem:[%s9177_s9 + $0x30] sm:$0xff]  }
 0xfa2   :  { %7346 = vmatprep.subr.bf16.mxu0 %v7961_v1 }
 0xfa4   :  { %7329 = vmatpush3.bf16.msra.mxu1 %v7817_v56  ;;  %v7849_v56 = vld [vmem:[%s9177_s9 + $0x50] sm:$0xff]  }
 0xfa5   :  { %7330 = vmatprep.subr.bf16.mxu1 %v7961_v1  ;;  %7347 = vmatpush3.bf16.msra.mxu0 %v7825_v4 }
 0xfa6   :  { %7348 = vmatprep.subr.bf16.mxu0 %v7961_v1 }
 0xfa8   :  { %7331 = vmatpush3.bf16.msra.mxu1 %v7818_v57  ;;  %v7852_v57 = vld [vmem:[%s9177_s9 + $0x10] sm:$0xff]  }
 0xfa9   :  { %7332 = vmatprep.subr.bf16.mxu1 %v7961_v1  ;;  %7349 = vmatpush3.bf16.msra.mxu0 %v7827_v6 }
 0xfaa   :  { %7350 = vmatprep.subr.bf16.mxu0 %v7961_v1 }
 0xfac   :  { %7333 = vmatpush3.bf16.msra.mxu1 %v7819_v58  ;;  %v7851_v58 = vld [vmem:[%s9177_s9 + $0x58] sm:$0xff]  }
 0xfad   :  { %7334 = vmatprep.subr.bf16.mxu1 %v7961_v1  ;;  %7351 = vmatpush3.bf16.msra.mxu0 %v7829_v8 }
 0xfae   :  { %7352 = vmatprep.subr.bf16.mxu0 %v7961_v1 }
 0xfb0   :  { %7335 = vmatpush3.bf16.msra.mxu1 %v7820_v59  ;;  %v7854_v59 = vld [vmem:[%s9177_s9 + $0x18] sm:$0xff]  }
 0xfb1   :  { %7336 = vmatprep.subr.bf16.mxu1 %v7961_v1  ;;  %7353 = vmatpush3.bf16.msra.mxu0 %v7831_v9 }
 0xfb2   :  { %7354 = vmatprep.subr.bf16.mxu0 %v7961_v1 }
 0xfb4   :  { %7337 = vmatpush3.bf16.msra.mxu1 %v7821_v62  ;;  %v7856_v62 = vld [vmem:[%s9177_s9 + $0x20] sm:$0xff]  }
 0xfb5   :  { %7362 = vmatprep.subr.bf16.mxu1 %v7961_v1  ;;  %7355 = vmatpush3.bf16.msra.mxu0 %v7833_v11 }
 0xfb6   :  { %7356 = vmatprep.subr.bf16.mxu0 %v7961_v1 }
 0xfb7   :  { %7339 = vmatmul.mubr.bf16.vlgmr.msra.gmra.mrb[88].mxu1 %v4266_v0  ;;  %v7857_v0 = vld [vmem:[%s9177_s9 + $0x70] sm:$0xff]  }
 0xfb8   :  { %7378 = vmatprep.mubr.msk.bf16.mxu1 %vm7962_vm1, %v7961_v1  ;;  %7363 = vmatpush3.bf16.msra.mxu1 %v7824_v2  ;;  %v7859_v2 = vld [vmem:[%s9177_s9 + $0x78] sm:$0xff]  }
 0xfb9   :  { %7364 = vmatprep.subr.bf16.mxu1 %v7961_v1  ;;  %7357 = vmatpush3.bf16.msra.mxu0 %v7835_v14 }
 0xfba   :  { %7382 = vmatprep.subr.bf16.mxu0 %v7961_v1 }
 0xfbc   :  { %7365 = vmatpush3.bf16.msra.mxu1 %v7826_v3  ;;  %v7862_v3 = vld [vmem:[%s9177_s9 + $0x38] sm:$0xff]  }
 0xfbd   :  { %7366 = vmatprep.subr.bf16.mxu1 %v7961_v1 }
 0xfc0   :  { %7367 = vmatpush3.bf16.msra.mxu1 %v7828_v5 }
 0xfc1   :  { %7368 = vmatprep.subr.bf16.mxu1 %v7961_v1 }
 0xfc4   :  { %7369 = vmatpush3.bf16.msra.mxu1 %v7830_v7 }
 0xfc5   :  { %7370 = vmatprep.subr.bf16.mxu1 %v7961_v1 }
 0xfc8   :  { %7371 = vmatpush3.bf16.msra.mxu1 %v7832_v10 }
 0xfc9   :  { %7372 = vmatprep.subr.bf16.mxu1 %v7961_v1 }
 0xfcc   :  { %7373 = vmatpush3.bf16.msra.mxu1 %v7834_v12 }
 0xfcd   :  { %7374 = vmatprep.subr.bf16.mxu1 %v7961_v1 }
 0xfd0   :  { %7375 = vmatpush3.bf16.msra.mxu1 %v7836_v15  ;;  %v6235_v15 = vld [vmem:[%s9178_s13] ss:$0 sm:$0xff] }
 0xfd1   :  { %7376 = vmatprep.subr.bf16.mxu1 %v7961_v1 }
 0xfd4   :  { %7377 = vmatpush3.bf16.msra.mxu1 %v7838_v16 }
 0xfd5   :  { %7402 = vmatprep.subr.bf16.mxu1 %v7961_v1 }
0x106a   :  { %v4382_v17 = vpop.f32.mrb[84].mxu1 }
0x106b   :  { %v7300_v18 = vpop.f32.mrb[85].mxu1 }
0x106c   :  { %v4385_v19 = vpop.f32.mrb[86].mxu1 }
0x106d   :  { %v7301_v20 = vpop.f32.mrb[87].mxu1 }
0x106e   :  { %v4470_v21 = vpop.f32.mrb[88].mxu0 }
0x106f   :  { %v4471_v22 = vadd.f32 %v4470_v21, %v4382_v17  ;;  %v7320_v23 = vpop.f32.mrb[89].mxu0 }
0x1070   :  { %v4473_v24 = vpop.f32.mrb[90].mxu0 }
0x1071   :  { %v7321_v25 = vpop.f32.mrb[91].mxu0 }
0x108a   :  { %v4575_v26 = vpop.f32.mrb[88].mxu1 }
0x108b   :  { %v4581_v32 = vadd.f32 %v4575_v26, %v4471_v22  ;;  %v7340_v33 = vpop.f32.mrb[89].mxu1  ;;  %v7861_v22 = vld [vmem:[%s9177_s9 + $0x80] sm:$0xff]   ;;  %v7863_v26 = vld [vmem:[%s9177_s9 + $0x88] sm:$0xff]  }
0x108c   :  { %v4578_v34 = vpop.f32.mrb[90].mxu1  ;;  %v7866_v33 = vld [vmem:[%s9177_s9 + $0xa0] sm:$0xff]  }
0x108d   :  { %v4589_v36 = vadd.f32 %v6178_v31, %v4581_v32  ;;  %v7341_v37 = vpop.f32.mrb[91].mxu1  ;;  %v7864_v32 = vld [vmem:[%s9177_s9 + $0x90] sm:$0xff]   ;;  %v7867_v34 = vld [vmem:[%s9177_s9 + $0xa8] sm:$0xff]  }
0x108f   :  { %v4590_v29 = vadd.f32 %v4589_v36, %v8848_v61  ;;  %v7868_v36 = vld [vmem:[%s9177_s9 + $0xb0] sm:$0xff]  }
0x1091   :  { %v8969_v38 = vmax.f32 %v4590_v29, 0.0  ;;  %v7869_v29 = vld [vmem:[%s9177_s9 + $0xb8] sm:$0xff]  }
0x1093   :  { %v4592_v40 = vpack.c.bf16 %v8969_v38, %v8969_v38  ;;  %v4593_v30 = vrot.slane %v8969_v38, 7  ;;  %v4596_v49 = vrot.slane %v8969_v38, 1 }
0x1095   :  { %7359 = vmatmul.mubr.bf16.vlgmr.msra.gmra.mrb[92].mxu0 %v4592_v40  ;;  %v4594_v41 = vmul.f32 %v4593_v30, %v8257_v27  ;;  %v4597_v51 = vmul.f32 %v4596_v49, %v8269_v35  ;;  %v6292_v49 = vld [vmem:[%s9179_s17] ss:$0 sm:$0xff] }
0x1096   :  { %7383 = vmatpush3.bf16.msra.mxu0 %v7837_v39  ;;  %7398 = vmatprep.mubr.msk.bf16.mxu0 %vm7962_vm1, %v7961_v1 }
0x1097   :  { %7384 = vmatprep.subr.bf16.mxu0 %v7961_v1  ;;  %v4595_v61 = vpack.c.bf16 %v4594_v41, %v4594_v41  ;;  %v4598_v28 = vpack.c.bf16 %v4597_v51, %v4597_v51 }
0x1099   :  { %7379 = vmatmul.mubr.bf16.vlgmr.msra.gmra.mrb[92].mxu1 %v4595_v61 }
0x109a   :  { %7385 = vmatpush3.bf16.msra.mxu0 %v7839_v42  ;;  %7418 = vmatprep.mubr.msk.bf16.mxu1 %vm7962_vm1, %v7961_v1 }
0x109b   :  { %7386 = vmatprep.subr.bf16.mxu0 %v7961_v1  ;;  %7403 = vmatpush3.bf16.msra.mxu1 %v7846_v52 }
0x109c   :  { %7404 = vmatprep.subr.bf16.mxu1 %v7961_v1 }
0x109e   :  { %7387 = vmatpush3.bf16.msra.mxu0 %v7840_v43 }
0x109f   :  { %7388 = vmatprep.subr.bf16.mxu0 %v7961_v1  ;;  %7405 = vmatpush3.bf16.msra.mxu1 %v7847_v54 }
0x10a0   :  { %7406 = vmatprep.subr.bf16.mxu1 %v7961_v1 }
0x10a2   :  { %7389 = vmatpush3.bf16.msra.mxu0 %v7841_v44 }
0x10a3   :  { %7390 = vmatprep.subr.bf16.mxu0 %v7961_v1  ;;  %7407 = vmatpush3.bf16.msra.mxu1 %v7849_v56 }
0x10a4   :  { %7408 = vmatprep.subr.bf16.mxu1 %v7961_v1 }
0x10a6   :  { %7391 = vmatpush3.bf16.msra.mxu0 %v7842_v45 }
0x10a7   :  { %7392 = vmatprep.subr.bf16.mxu0 %v7961_v1  ;;  %7409 = vmatpush3.bf16.msra.mxu1 %v7851_v58  ;;  %v5255_v58 = vld [vmem:[%s9180_s25] sm:$0x1] }
0x10a8   :  { %7410 = vmatprep.subr.bf16.mxu1 %v7961_v1 }
0x10aa   :  { %7393 = vmatpush3.bf16.msra.mxu0 %v7843_v47 }
0x10ab   :  { %7394 = vmatprep.subr.bf16.mxu0 %v7961_v1  ;;  %7411 = vmatpush3.bf16.msra.mxu1 %v7853_v60  ;;  %v7871_v60 = vld [vmem:[%s8216_s21 + $0x8] sm:$0xff]  }
0x10ac   :  { %7412 = vmatprep.subr.bf16.mxu1 %v7961_v1 }
0x10ae   :  { %7395 = vmatpush3.bf16.msra.mxu0 %v7844_v48 }
0x10af   :  { %7396 = vmatprep.subr.bf16.mxu0 %v7961_v1  ;;  %7413 = vmatpush3.bf16.msra.mxu1 %v7855_v63  ;;  %v7874_v63 = vld [vmem:[%s8216_s21 + $0x20] sm:$0xff]  }
0x10b0   :  { %7414 = vmatprep.subr.bf16.mxu1 %v7961_v1 }
0x10b2   :  { %7397 = vmatpush3.bf16.msra.mxu0 %v7845_v50 }
0x10b3   :  { %7422 = vmatprep.subr.bf16.mxu0 %v7961_v1  ;;  %7415 = vmatpush3.bf16.msra.mxu1 %v7857_v0  ;;  %v7875_v0 = vld [vmem:[%s8216_s21 + $0x28] sm:$0xff]  }
0x10b4   :  { %7416 = vmatprep.subr.bf16.mxu1 %v7961_v1 }
0x10b5   :  { %7399 = vmatmul.mubr.bf16.vlgmr.msra.gmra.mrb[96].mxu0 %v4598_v28 }
0x10b6   :  { %7438 = vmatprep.mubr.msk.bf16.mxu0 %vm7962_vm1, %v7961_v1  ;;  %7423 = vmatpush3.bf16.msra.mxu0 %v7848_v53 }
0x10b7   :  { %7424 = vmatprep.subr.bf16.mxu0 %v7961_v1  ;;  %7417 = vmatpush3.bf16.msra.mxu1 %v7859_v2  ;;  %v7877_v2 = vld [vmem:[%s8216_s21 + $0x38] sm:$0xff]  }
0x10b8   :  { %7442 = vmatprep.subr.bf16.mxu1 %v7961_v1 }
0x10ba   :  { %7425 = vmatpush3.bf16.msra.mxu0 %v7850_v55 }
0x10bb   :  { %7426 = vmatprep.subr.bf16.mxu0 %v7961_v1 }
0x10be   :  { %7427 = vmatpush3.bf16.msra.mxu0 %v7852_v57 }
0x10bf   :  { %7428 = vmatprep.subr.bf16.mxu0 %v7961_v1 }
0x10c2   :  { %7429 = vmatpush3.bf16.msra.mxu0 %v7854_v59  ;;  %v7870_v59 = vld [vmem:[%s8216_s21] sm:$0xff]  }
0x10c3   :  { %7430 = vmatprep.subr.bf16.mxu0 %v7961_v1 }
0x10c6   :  { %7431 = vmatpush3.bf16.msra.mxu0 %v7856_v62  ;;  %v7873_v62 = vld [vmem:[%s8216_s21 + $0x18] sm:$0xff]  }
0x10c7   :  { %7432 = vmatprep.subr.bf16.mxu0 %v7961_v1 }
0x10ca   :  { %7433 = vmatpush3.bf16.msra.mxu0 %v7858_v46  ;;  %v7876_v46 = vld [vmem:[%s8216_s21 + $0x30] sm:$0xff]  }
0x10cb   :  { %7434 = vmatprep.subr.bf16.mxu0 %v7961_v1 }
0x10ce   :  { %7435 = vmatpush3.bf16.msra.mxu0 %v7860_v13  ;;  %v7878_v13 = vld [vmem:[%s8221_s24] sm:$0xff]  }
0x10cf   :  { %7436 = vmatprep.subr.bf16.mxu0 %v7961_v1 }
0x10d2   :  { %7437 = vmatpush3.bf16.msra.mxu0 %v7862_v3  ;;  %v7879_v3 = vld [vmem:[%s8221_s24 + $0x8] sm:$0xff]  }
0x10d3   :  { %7462 = vmatprep.subr.bf16.mxu0 %v7961_v1 }
0x1168   :  { %v4714_v4 = vpop.f32.mrb[92].mxu0 }
0x1169   :  { %v7360_v5 = vpop.f32.mrb[93].mxu0 }
0x116a   :  { %v4717_v6 = vpop.f32.mrb[94].mxu0  ;;  %v7881_v5 = vld [vmem:[%s8221_s24 + $0x18] sm:$0xff]  }
0x116b   :  { %v7361_v7 = vpop.f32.mrb[95].mxu0  ;;  %v7882_v6 = vld [vmem:[%s8221_s24 + $0x20] sm:$0xff]  }
0x116c   :  { %v4802_v8 = vpop.f32.mrb[92].mxu1  ;;  %v7883_v7 = vld [vmem:[%s8221_s24 + $0x28] sm:$0xff]  }
0x116d   :  { %v4803_v9 = vadd.f32 %v4802_v8, %v4714_v4  ;;  %v7380_v10 = vpop.f32.mrb[93].mxu1  ;;  %v7880_v4 = vld [vmem:[%s8221_s24 + $0x10] sm:$0xff]  }
0x116e   :  { %v4805_v11 = vpop.f32.mrb[94].mxu1 }
0x116f   :  { %v7381_v12 = vpop.f32.mrb[95].mxu1 }
0x1188   :  { %v4907_v14 = vpop.f32.mrb[96].mxu0 }
0x1189   :  { %v4913_v16 = vadd.f32 %v4907_v14, %v4803_v9  ;;  %v7400_v17 = vpop.f32.mrb[97].mxu0 }
0x118a   :  { %v4910_v18 = vpop.f32.mrb[98].mxu0  ;;  %v6294_v17 = vld [vmem:[%s8211_s6] ss:$0 sm:$0xff] }
0x118b   :  { %v4921_v19 = vadd.f32 %v6235_v15, %v4913_v16  ;;  %v7401_v20 = vpop.f32.mrb[99].mxu0  ;;  %v7884_v15 = vld [vmem:[%s8221_s24 + $0x30] sm:$0xff]   ;;  %v7885_v16 = vld [vmem:[%s8221_s24 + $0x38] sm:$0xff]   ;;  %s7886_s24 = scalar_lea.vmem %s5539_s3, 32 }
0x118c   :  { %p7887_p0 = scmp.ne.s32.totalorder %s5539_s3, %s7886_s24  ;;  %p7892_p2 = scmp.lt.s32.totalorder %s7886_s24, %s7886_s24 }
0x118d   :  { %v4922_v21 = vmax.f32 %v4921_v19, 0.0 }
0x118e   :  { %p7893_p3 = por %p7892_p2, %p7891_p1 }
0x118f   :  { %v4924_v23 = vrot.slane %v4922_v21, 7  ;;  %v4923_v24 = vpack.c.bf16 %v4922_v21, %v4922_v21  ;;  %v4927_v37 = vrot.slane %v4922_v21, 1 }
0x1190   :  { %p7894_p4 = pnand %p7893_p3, %p7887_p0 }
0x1191   :  { %7419 = vmatmul.mubr.bf16.vlgmr.msra.gmra.mrb[96].mxu1 %v4923_v24  ;;  %v4925_v25 = vmul.f32 %v4924_v23, %v8257_v27  ;;  %v7865_v27 = vld [vmem:[%s9177_s9 + $0x98] sm:$0xff]   ;;  %v4928_v39 = vmul.f32 %v4927_v37, %v8269_v35 }
0x1192   :  { %7443 = vmatpush3.bf16.msra.mxu1 %v7861_v22  ;;  %7458 = vmatprep.mubr.msk.bf16.mxu1 %vm7962_vm1, %v7961_v1 }
0x1193   :  { %7444 = vmatprep.subr.bf16.mxu1 %v7961_v1  ;;  %v4926_v31 = vpack.c.bf16 %v4925_v25, %v4925_v25  ;;  %v4929_v40 = vpack.c.bf16 %v4928_v39, %v4928_v39 }
0x1195   :  { %7439 = vmatmul.mubr.bf16.vlgmr.msra.gmra.mrb[100].mxu0 %v4926_v31 }
0x1196   :  { %7445 = vmatpush3.bf16.msra.mxu1 %v7863_v26  ;;  %7464 = vmatprep.mubr.msk.bf16.mxu0 %vm7962_vm1, %v7961_v1 }
0x1197   :  { %7446 = vmatprep.subr.bf16.mxu1 %v7961_v1 }
0x119a   :  { %7447 = vmatpush3.bf16.msra.mxu1 %v7864_v32 }
0x119b   :  { %7448 = vmatprep.subr.bf16.mxu1 %v7961_v1 }
0x119e   :  { %7449 = vmatpush3.bf16.msra.mxu1 %v7865_v27 }
0x119f   :  { %7450 = vmatprep.subr.bf16.mxu1 %v7961_v1 }
0x11a2   :  { %7451 = vmatpush3.bf16.msra.mxu1 %v7866_v33 }
0x11a3   :  { %7452 = vmatprep.subr.bf16.mxu1 %v7961_v1 }
0x11a6   :  { %7453 = vmatpush3.bf16.msra.mxu1 %v7867_v34 }
0x11a7   :  { %7454 = vmatprep.subr.bf16.mxu1 %v7961_v1 }
0x11aa   :  { %7455 = vmatpush3.bf16.msra.mxu1 %v7868_v36 }
0x11ab   :  { %7456 = vmatprep.subr.bf16.mxu1 %v7961_v1 }
0x11ae   :  { %7457 = vmatpush3.bf16.msra.mxu1 %v7869_v29 }
0x11af   :  { %7488 = vmatprep.subr.bf16.mxu1 %v7961_v1 }
0x11b1   :  { %7459 = vmatmul.mubr.bf16.vlgmr.msra.gmra.mrb[100].mxu1 %v4929_v40 }
0x11b2   :  { %7504 = vmatprep.mubr.msk.bf16.mxu1 %vm7962_vm1, %v7961_v1  ;;  %7489 = vmatpush3.bf16.msra.mxu1 %v7878_v13 }
0x11b3   :  { %7490 = vmatprep.subr.bf16.mxu1 %v7961_v1 }
0x11b6   :  { %7491 = vmatpush3.bf16.msra.mxu1 %v7879_v3 }
0x11b7   :  { %7492 = vmatprep.subr.bf16.mxu1 %v7961_v1 }
0x11ba   :  { %7493 = vmatpush3.bf16.msra.mxu1 %v7880_v4 }
0x11bb   :  { %7494 = vmatprep.subr.bf16.mxu1 %v7961_v1 }
0x11be   :  { %7495 = vmatpush3.bf16.msra.mxu1 %v7881_v5 }
0x11bf   :  { %7496 = vmatprep.subr.bf16.mxu1 %v7961_v1 }
0x11c2   :  { %7497 = vmatpush3.bf16.msra.mxu1 %v7882_v6 }
0x11c3   :  { %7498 = vmatprep.subr.bf16.mxu1 %v7961_v1 }
0x11c6   :  { %7499 = vmatpush3.bf16.msra.mxu1 %v7883_v7 }
0x11c7   :  { %7500 = vmatprep.subr.bf16.mxu1 %v7961_v1 }
0x11ca   :  { %7501 = vmatpush3.bf16.msra.mxu1 %v7884_v15 }
0x11cb   :  { %7502 = vmatprep.subr.bf16.mxu1 %v7961_v1 }
0x11ce   :  { %7503 = vmatpush3.bf16.msra.mxu1 %v7885_v16 }
0x1264   :  { %v5045_v30 = vpop.f32.mrb[96].mxu1 }
0x1265   :  { %v7420_v41 = vpop.f32.mrb[97].mxu1 }
0x1266   :  { %v5048_v42 = vpop.f32.mrb[98].mxu1 }
0x1267   :  { %v7421_v61 = vpop.f32.mrb[99].mxu1 }
0x1268   :  { %v5133_v43 = vpop.f32.mrb[100].mxu0 }
0x1269   :  { %v5134_v44 = vadd.f32 %v5133_v43, %v5045_v30  ;;  %v7440_v45 = vpop.f32.mrb[101].mxu0 }
0x126a   :  { %v5136_v47 = vpop.f32.mrb[102].mxu0 }
0x126b   :  { %v7441_v48 = vpop.f32.mrb[103].mxu0 }
0x1284   :  { %v5238_v35 = vpop.f32.mrb[100].mxu1 }
0x1285   :  { %v5244_v50 = vadd.f32 %v5238_v35, %v5134_v44  ;;  %v7460_v51 = vpop.f32.mrb[101].mxu1 }
0x1286   :  { %v5241_v28 = vpop.f32.mrb[102].mxu1 }
0x1287   :  { %v5252_v52 = vadd.f32 %v6292_v49, %v5244_v50  ;;  %v7461_v53 = vpop.f32.mrb[103].mxu1 }
0x1289   :  { %v5253_v54 = vadd.f32 %v5252_v52, %v8969_v38  ;;  %v7872_v38 = vld [vmem:[%s8216_s21 + $0x10] sm:$0xff]   ;;  %s9181_s21 = sld [smem:[#allocation38_spill]] }
0x128b   :  { %v5254_v55 = vmax.f32 %v5253_v54, 0.0 }
0x128d   :  { %v5256_v56 = vpack.c.bf16 %v5254_v55, %v5254_v55 }
0x128f   :  { %v5263_v57 = vsel %vm5261_vm3, %v5256_v56, 0  ;;  %v6303_v25 = vld [vmem:[%s9181_s21] ss:$0 sm:$0xff] }
0x1290   :  { %7463 = vmatpush3.bf16.msra.mxu0 %v5263_v57 }
0x1291   :  { %7468 = vmatprep.subr.bf16.mxu0 %v7961_v1 }
0x1293   :  { %7465 = vmatmul.mubr.msk.bf16.vlgmr.msra.gmra.mrb[104].mxu0 %vm5257_vm4, %v5255_v58 }
0x1294   :  { %7469 = vmatpush3.bf16.msra.mxu0 %v7870_v59  ;;  %7484 = vmatprep.mubr.msk.bf16.mxu0 %vm7962_vm1, %v7961_v1 }
0x1295   :  { %7470 = vmatprep.subr.bf16.mxu0 %v7961_v1 }
0x1298   :  { %7471 = vmatpush3.bf16.msra.mxu0 %v7871_v60 }
0x1299   :  { %7472 = vmatprep.subr.bf16.mxu0 %v7961_v1 }
0x129c   :  { %7473 = vmatpush3.bf16.msra.mxu0 %v7872_v38 }
0x129d   :  { %7474 = vmatprep.subr.bf16.mxu0 %v7961_v1 }
0x12a0   :  { %7475 = vmatpush3.bf16.msra.mxu0 %v7873_v62 }
0x12a1   :  { %7476 = vmatprep.subr.bf16.mxu0 %v7961_v1 }
0x12a4   :  { %7477 = vmatpush3.bf16.msra.mxu0 %v7874_v63 }
0x12a5   :  { %7478 = vmatprep.subr.bf16.mxu0 %v7961_v1 }
0x12a8   :  { %7479 = vmatpush3.bf16.msra.mxu0 %v7875_v0 }
0x12a9   :  { %7480 = vmatprep.subr.bf16.mxu0 %v7961_v1 }
0x12ac   :  { %7481 = vmatpush3.bf16.msra.mxu0 %v7876_v46 }
0x12ad   :  { %7482 = vmatprep.subr.bf16.mxu0 %v7961_v1 }
0x12b0   :  { %7483 = vmatpush3.bf16.msra.mxu0 %v7877_v2 }
0x1366   :  { %v5299_v8 = vpop.f32.mrb[104].mxu0 }
0x1367   :  { %v5305_v9 = vmul.f32 0.25, %v5299_v8  ;;  %v7466_v10 = vpop.f32.mrb[105].mxu0 }
0x1368   :  { %v5302_v11 = vpop.f32.mrb[106].mxu0 }
0x1369   :  { %v5306_v12 = vpack.c.bf16 %v5305_v9, %v5305_v9  ;;  %v7467_v14 = vpop.f32.mrb[107].mxu0 }
0x136b   :  { %7485 = vmatmul.mubr.bf16.vlgmr.msra.gmra.mrb[108].mxu0 %v5306_v12 }
0x143e   :  { %v5412_v18 = vpop.f32.mrb[108].mxu0 }
0x143f   :  { %v5413_v19 = vadd.f32 %v6294_v17, %v5412_v18  ;;  %v7486_v20 = vpop.f32.mrb[109].mxu0 }
0x1440   :  { %v5415_v21 = vpop.f32.mrb[110].mxu0 }
0x1441   :  { %v5418_v22 = vmax.f32 %v5413_v19, 0.0  ;;  %v7487_v23 = vpop.f32.mrb[111].mxu0 }
0x1443   :  { %v5419_v24 = vpack.c.bf16 %v5418_v22, %v5418_v22 }
0x1445   :  { %7505 = vmatmul.mubr.bf16.vlgmr.msra.gmra.mrb[104].mxu1 %v5419_v24 }
0x1518   :  { %v5525_v26 = vpop.f32.mrb[104].mxu1 }
0x1519   :  { %v5526_v31 = vadd.f32 %v6303_v25, %v5525_v26  ;;  %v7506_v32 = vpop.f32.mrb[105].mxu1 }
0x151a   :  { %v5528_v27 = vpop.f32.mrb[106].mxu1 }
0x151b   :  { %5531 = vst [vmem:[#allocation2] sm:$0x3] %v5526_v31  ;;  %v7507_v1 = vpop.f32.mrb[107].mxu1 }
0x151c   :  { %7897 = shalt.err (!%p7894_p4)
}
0x151d   :  { %s7898_s6 = scalar_lea.hbm %s8226_s20, 32 }
0x151e   :  { %p7899_p5 = scmp.ne.s32.totalorder %s8226_s20, %s7898_s6  ;;  %p7902_p6 = scmp.lt.u32.totalorder %s7898_s6, %s8226_s20 }
0x1520   :  { %p7904_p7 = pnand %p7902_p6, %p7899_p5 }
0x1522   :  { %7907 = shalt.err (!%p7904_p7)
}
0x1523   :  { %5541 = dma.vmem_to_hbm [thread:$0]  %s5539_s3, 32, %s8226_s20, [#allocation3]  }
0x1524   :  { %7908 = dma.done.wait [#allocation3], 32  }
0x1525   :  { %7909 = vsyncadd [#allocation3], 4294967264 }
0x1526   :  { %5545 = vsyncpa [#allocation3], 1 }

</bundles_post_ra>
